<compile_context>
chip_gen: v5e
topology: v5e:2x2
jax: 0.10.0
libtpu: 0.0.40
codegen_flags: <defaults>
</compile_context>

<pallas_src>
import math

import jax
import jax.numpy as jnp
from jax import lax
from jax.experimental import pallas as pl
from jax.experimental.pallas import tpu as pltpu

LEAKY_SLOPE = 0.2
BN_EPS = 0.8                     # nn.BatchNorm2d(out_filters, 0.8) -> eps = 0.8
IMG_CHANNEL = 1
IMG_SIZE = 32
HEAD_N_PAD = 128                 # pad the 1-wide head output to a full lane width
CHANNELS = (IMG_CHANNEL, 16, 32, 64, 128)
NORMALIZE = (False, True, True, True)
DS = IMG_SIZE // 2 ** 4          # 2
FEAT = CHANNELS[-1] * DS * DS    # 512


# ----------------------------------------------------------------------------
# In-kernel helpers (pure values, straight-line code -> everything lowers)
# ----------------------------------------------------------------------------
def _epilogue(acc, e_ref):
    """f32 bias + LeakyReLU(0.2) + (eval Dropout2d = id) + BN affine."""
    e = e_ref[...]                               # (3, C) f32: bias/scale/shift
    z = acc + e[0:1, :]
    z = jnp.where(z >= 0.0, z, LEAKY_SLOPE * z)
    return z * e[1:2, :] + e[2:3, :]


def _tap_conv(y_prev, s_ref, w_ref, e_ref):
    """Stride-2 3x3 conv of ONE image as 9 (gather-matmul, weight-matmul) pairs.

    s_ref[t] is a constant 0/1 row-selection matrix: S_t @ y_prev is exactly
    the im2col tap t (including the zero padding, encoded as all-zero rows),
    computed on the MXU so no expanded patches array is ever materialized.
    y_prev: (IH*IW, Cin) bf16 activation matrix, rows in row-major (i, j) order.
    """
    m_out = s_ref.shape[1]
    c_out = w_ref.shape[2]
    acc = jnp.zeros((m_out, c_out), jnp.float32)
    for t in range(9):                                        # static unroll
        p_t = jnp.dot(s_ref[t], y_prev,
                      preferred_element_type=jnp.float32)     # (m_out, Cin)
        acc = acc + jnp.dot(p_t.astype(jnp.bfloat16), w_ref[t],
                            preferred_element_type=jnp.float32)
    return _epilogue(acc, e_ref)                              # (m_out, Cout) f32


def _discriminator_kernel(p1_ref, w1_ref, e1_ref,
                          s2_ref, w2_ref, e2_ref,
                          s3_ref, w3_ref, e3_ref,
                          s4_ref, w4_ref, e4_ref,
                          wh_ref, bh_ref, o_ref):
    """Whole Discriminator for ONE image per grid step (activations in VMEM)."""
    # Block 1 (Cin=1): wrapper-side im2col -> single (256, 9) @ (9, 16) matmul.
    y = _epilogue(
        jnp.dot(p1_ref[0], w1_ref[...], preferred_element_type=jnp.float32),
        e1_ref).astype(jnp.bfloat16)                                   # (256, 16)
    # Blocks 2-4: in-kernel im2col via one-hot selection matmuls.
    y = _tap_conv(y, s2_ref, w2_ref, e2_ref).astype(jnp.bfloat16)      # (64, 32)
    y = _tap_conv(y, s3_ref, w3_ref, e3_ref).astype(jnp.bfloat16)      # (16, 64)
    y = _tap_conv(y, s4_ref, w4_ref, e4_ref).astype(jnp.bfloat16)      # (4, 128)
    # Adv head: Linear(512 -> 1, zero-padded to 128 lanes) + Sigmoid, fused.
    # Head weight is pre-reshaped to (ds*ds, 128, 128) so the flatten is just a
    # sum of 4 per-position matmuls (no in-kernel reshape needed).
    h = jnp.zeros((1, HEAD_N_PAD), jnp.float32)
    for p in range(wh_ref.shape[0]):                          # ds*ds = 4
        h = h + jnp.dot(y[p:p + 1, :], wh_ref[p],
                        preferred_element_type=jnp.float32)
    o_ref[0] = jax.nn.sigmoid(h + bh_ref[...])                # (1, 128) f32


# ----------------------------------------------------------------------------
# Wrapper-side constant construction
# ----------------------------------------------------------------------------
def _im2col_s2_k3_p1_c1(x):
    """(B, H, W, 1) NHWC -> (B, OH*OW, 9) patches (first block only, Cin=1)."""
    B, H, W, _ = x.shape
    OH, OW = H // 2, W // 2
    xp = jnp.pad(x, ((0, 0), (1, 1), (1, 1), (0, 0)))
    cols = [xp[:, kh:kh + 2 * OH:2, kw:kw + 2 * OW:2, 0]
            for kh in range(3) for kw in range(3)]
    return jnp.stack(cols, axis=-1).reshape(B, OH * OW, 9)


def _make_tap_selectors(ih, iw, dtype=jnp.bfloat16):
    """0/1 matrices S[t] (oh*ow, ih*iw) s.t. S[t] @ x_flat == im2col tap t of a
    3x3 / stride-2 / pad-1 conv (all-zero rows encode the zero padding)."""
    oh, ow = ih // 2, iw // 2
    a = jnp.arange(oh)[:, None]
    b = jnp.arange(ow)[None, :]
    sels = []
    for kh in range(3):
        for kw in range(3):
            si = 2 * a + kh - 1                      # (oh, 1) source row
            sj = 2 * b + kw - 1                      # (1, ow) source col
            valid = (si >= 0) & (si < ih) & (sj >= 0) & (sj < iw)
            src = jnp.where(valid, si * iw + sj, -1).reshape(-1)   # -1 -> zero row
            sels.append(src[:, None] == jnp.arange(ih * iw)[None, :])
    return jnp.stack(sels, axis=0).astype(dtype)     # (9, oh*ow, ih*iw)


def init_params(key):
    """Deterministic synthetic params; returns kernel operands + f32 reference."""
    spatial = [IMG_SIZE // 2 ** i for i in range(5)]          # 32, 16, 8, 4, 2
    kernel_ops = []
    ref_blocks = []
    for i in range(4):
        cin, cout = CHANNELS[i], CHANNELS[i + 1]
        key, kw, kb, kg, kbeta = jax.random.split(key, 5)
        w = jax.random.normal(kw, (3, 3, cin, cout), jnp.float32) \
            * (2.0 / (9 * cin)) ** 0.5
        b = jax.random.normal(kb, (cout,), jnp.float32) * 0.01
        if NORMALIZE[i]:
            gamma = 1.0 + 0.1 * jax.random.normal(kg, (cout,), jnp.float32)
            beta = 0.1 * jax.random.normal(kbeta, (cout,), jnp.float32)
            running_mean = jnp.zeros((cout,), jnp.float32)
            running_var = jnp.ones((cout,), jnp.float32)
            scale = gamma / jnp.sqrt(running_var + BN_EPS)
            shift = beta - running_mean * scale
        else:
            scale = jnp.ones((cout,), jnp.float32)
            shift = jnp.zeros((cout,), jnp.float32)
        ref_blocks.append((w, b, scale, shift))
        epi = jnp.stack([b, scale, shift], axis=0)            # (3, cout) f32
        if i == 0:
            kernel_ops += [w.reshape(9 * cin, cout).astype(jnp.bfloat16), epi]
        else:
            kernel_ops += [_make_tap_selectors(spatial[i], spatial[i]),
                           w.reshape(9, cin, cout).astype(jnp.bfloat16), epi]

    # Adv head.  Weight generated in PyTorch (C,H,W)-flatten order, permuted
    # once at init to NHWC flatten order (no runtime transpose), zero-padded to
    # 128 output lanes, and reshaped to (ds*ds, 128, 128) per-position slabs.
    key, kw, kb = jax.random.split(key, 3)
    w_chw = jax.random.normal(kw, (FEAT, 1), jnp.float32) * (1.0 / FEAT ** 0.5)
    w_hwc = jnp.transpose(w_chw.reshape(CHANNELS[-1], DS, DS, 1),
                          (1, 2, 0, 3)).reshape(FEAT, 1)
    w_pad = jnp.pad(w_hwc, ((0, 0), (0, HEAD_N_PAD - 1)))
    b = jax.random.normal(kb, (1,), jnp.float32) * 0.01
    b_pad = jnp.pad(b.reshape(1, 1), ((0, 0), (0, HEAD_N_PAD - 1)))
    kernel_ops += [
        w_pad.reshape(DS * DS, CHANNELS[-1], HEAD_N_PAD).astype(jnp.bfloat16),
        b_pad,
    ]
    return {"kernel": tuple(kernel_ops),
            "ref": {"blocks": ref_blocks, "head_w": w_hwc, "head_b": b}}


# ----------------------------------------------------------------------------
# Forward
# ----------------------------------------------------------------------------
def _pinned_spec(a):
    """Full-array block, constant block index -> DMA'd once, VMEM-resident."""
    return pl.BlockSpec(a.shape, lambda i, n=a.ndim: (0,) * n)


@jax.jit
def discriminator_forward(img_nchw, params):
    x = jnp.transpose(img_nchw, (0, 2, 3, 1)).astype(jnp.float32)  # NCHW -> NHWC
    patches = _im2col_s2_k3_p1_c1(x).astype(jnp.bfloat16)          # (B, 256, 9)
    B = patches.shape[0]
    ops = params["kernel"]

    in_specs = ([pl.BlockSpec((1,) + patches.shape[1:], lambda i: (i, 0, 0))]
                + [_pinned_spec(a) for a in ops])
    out_spec = pl.BlockSpec((1, 1, HEAD_N_PAD), lambda i: (i, 0, 0))

    flops_per_img = (2 * 256 * 9 * 16
                     + 9 * 2 * 64 * (256 * 16 + 16 * 32)
                     + 9 * 2 * 16 * (64 * 32 + 32 * 64)
                     + 9 * 2 * 4 * (16 * 64 + 64 * 128)
                     + 2 * DS * DS * CHANNELS[-1] * HEAD_N_PAD)
    const_bytes = sum(math.prod(a.shape) * a.dtype.itemsize for a in ops)
    cost = pl.CostEstimate(
        flops=B * flops_per_img,
        transcendentals=B * HEAD_N_PAD,
        bytes_accessed=B * 256 * 9 * 2 + const_bytes + B * HEAD_N_PAD * 4)

    out = pl.pallas_call(
        _discriminator_kernel,
        out_shape=jax.ShapeDtypeStruct((B, 1, HEAD_N_PAD), jnp.float32),
        grid=(B,),
        in_specs=in_specs,
        out_specs=out_spec,
        compiler_params=pltpu.CompilerParams(
            dimension_semantics=("parallel",)),
        cost_estimate=cost,
    )(patches, *ops)
    return out[:, 0, :1]                                      # (B, 1)


def reference_forward(img_nchw, ref):
    """Pure-JAX f32 reference (eval-mode Dropout/BN), for the self-check."""
    x = jnp.transpose(img_nchw, (0, 2, 3, 1)).astype(jnp.float32)
    for (w, b, scale, shift) in ref["blocks"]:
        y = lax.conv_general_dilated(
            x, w, window_strides=(2, 2), padding=((1, 1), (1, 1)),
            dimension_numbers=("NHWC", "HWIO", "NHWC"))
        y = y + b
        y = jnp.where(y >= 0.0, y, LEAKY_SLOPE * y)
        x = y * scale + shift
    flat = x.reshape(x.shape[0], -1)                          # NHWC flatten
    return jax.nn.sigmoid(flat @ ref["head_w"] + ref["head_b"])


if __name__ == "__main__":
    key = jax.random.PRNGKey(0)
    k_img, k_par = jax.random.split(key)
    img = jax.random.normal(k_img, (2, IMG_CHANNEL, IMG_SIZE, IMG_SIZE),
                            jnp.float32)
    params = init_params(k_par)

    validity = discriminator_forward(img, params)
    jax.block_until_ready(validity)

    assert validity.shape == (2, 1)
    assert bool(jnp.all(jnp.isfinite(validity)))
    assert bool(jnp.all((validity >= 0.0) & (validity <= 1.0)))

    # Self-check vs. f32 reference (kernel runs bf16 on the MXU -> loose atol).
    ref_out = reference_forward(img, params["ref"])
    assert bool(jnp.allclose(validity, ref_out, atol=5e-2)), (
        float(jnp.max(jnp.abs(validity - ref_out))))
    print("KERNEL_OK")
</pallas_src>

<mosaic_0001>
module attributes {stable_mosaic.version = 11 : i64} {
  func.func @_discriminator_kernel(%arg0: i32, %arg1: memref<1x256x9xbf16, #tpu.memory_space<vmem>>, %arg2: memref<9x16xbf16, #tpu.memory_space<vmem>>, %arg3: memref<3x16xf32, #tpu.memory_space<vmem>>, %arg4: memref<9x64x256xbf16, #tpu.memory_space<vmem>>, %arg5: memref<9x16x32xbf16, #tpu.memory_space<vmem>>, %arg6: memref<3x32xf32, #tpu.memory_space<vmem>>, %arg7: memref<9x16x64xbf16, #tpu.memory_space<vmem>>, %arg8: memref<9x32x64xbf16, #tpu.memory_space<vmem>>, %arg9: memref<3x64xf32, #tpu.memory_space<vmem>>, %arg10: memref<9x4x16xbf16, #tpu.memory_space<vmem>>, %arg11: memref<9x64x128xbf16, #tpu.memory_space<vmem>>, %arg12: memref<3x128xf32, #tpu.memory_space<vmem>>, %arg13: memref<4x128x128xbf16, #tpu.memory_space<vmem>>, %arg14: memref<1x128xf32, #tpu.memory_space<vmem>>, %arg15: memref<1x1x128xf32, #tpu.memory_space<vmem>>) attributes {dimension_semantics = [#tpu.dimension_semantics<parallel>], iteration_bounds = array<i64: 2>, scalar_prefetch = 0 : i64, scratch_operands = 0 : i64, tpu.core_type = #tpu.core_type<tc>, window_params = [{transform_indices = @transform_0, window_bounds = array<i64: 1, 256, 9>}, {pipeline_mode = #tpu.pipeline_mode<synchronous>, transform_indices = @transform_1, window_bounds = array<i64: 9, 16>}, {pipeline_mode = #tpu.pipeline_mode<synchronous>, transform_indices = @transform_2, window_bounds = array<i64: 3, 16>}, {pipeline_mode = #tpu.pipeline_mode<synchronous>, transform_indices = @transform_3, window_bounds = array<i64: 9, 64, 256>}, {pipeline_mode = #tpu.pipeline_mode<synchronous>, transform_indices = @transform_4, window_bounds = array<i64: 9, 16, 32>}, {pipeline_mode = #tpu.pipeline_mode<synchronous>, transform_indices = @transform_5, window_bounds = array<i64: 3, 32>}, {pipeline_mode = #tpu.pipeline_mode<synchronous>, transform_indices = @transform_6, window_bounds = array<i64: 9, 16, 64>}, {pipeline_mode = #tpu.pipeline_mode<synchronous>, transform_indices = @transform_7, window_bounds = array<i64: 9, 32, 64>}, {pipeline_mode = #tpu.pipeline_mode<synchronous>, transform_indices = @transform_8, window_bounds = array<i64: 3, 64>}, {pipeline_mode = #tpu.pipeline_mode<synchronous>, transform_indices = @transform_9, window_bounds = array<i64: 9, 4, 16>}, {pipeline_mode = #tpu.pipeline_mode<synchronous>, transform_indices = @transform_10, window_bounds = array<i64: 9, 64, 128>}, {pipeline_mode = #tpu.pipeline_mode<synchronous>, transform_indices = @transform_11, window_bounds = array<i64: 3, 128>}, {pipeline_mode = #tpu.pipeline_mode<synchronous>, transform_indices = @transform_12, window_bounds = array<i64: 4, 128, 128>}, {pipeline_mode = #tpu.pipeline_mode<synchronous>, transform_indices = @transform_13, window_bounds = array<i64: 1, 128>}, {transform_indices = @transform_14, window_bounds = array<i64: 1, 1, 128>}]} {
    %c0 = arith.constant 0 : index
    %c0_0 = arith.constant 0 : index
    %c0_1 = arith.constant 0 : index
    %0 = vector.load %arg1[%c0, %c0_0, %c0_1] : memref<1x256x9xbf16, #tpu.memory_space<vmem>>, vector<1x256x9xbf16>
    %1 = vector.shape_cast %0 : vector<1x256x9xbf16> to vector<256x9xbf16>
    %c0_2 = arith.constant 0 : index
    %c0_3 = arith.constant 0 : index
    %2 = vector.load %arg2[%c0_2, %c0_3] : memref<9x16xbf16, #tpu.memory_space<vmem>>, vector<9x16xbf16>
    %cst = arith.constant dense<0.000000e+00> : vector<256x16xf32>
    %3 = tpu.matmul %1, %2, %cst {dimension_numbers = #tpu.dot_dimension_numbers<[1], [0], [0], [1], [0, 0, 1, 1], [], []>} : vector<256x9xbf16>, vector<9x16xbf16>, vector<256x16xf32> -> vector<256x16xf32>
    %c0_4 = arith.constant 0 : index
    %c0_5 = arith.constant 0 : index
    %4 = vector.load %arg3[%c0_4, %c0_5] : memref<3x16xf32, #tpu.memory_space<vmem>>, vector<3x16xf32>
    %5 = vector.extract_strided_slice %4 {offsets = [0, 0], sizes = [1, 16], strides = [1, 1]} : vector<3x16xf32> to vector<1x16xf32>
    %6 = vector.broadcast %5 : vector<1x16xf32> to vector<256x16xf32>
    %7 = arith.addf %3, %6 : vector<256x16xf32>
    %cst_6 = arith.constant 0.000000e+00 : f32
    %8 = vector.broadcast %cst_6 : f32 to vector<256x16xf32>
    %9 = arith.cmpf oge, %7, %8 : vector<256x16xf32>
    %cst_7 = arith.constant 2.000000e-01 : f32
    %10 = vector.broadcast %cst_7 : f32 to vector<256x16xf32>
    %11 = arith.mulf %10, %7 : vector<256x16xf32>
    %12 = arith.select %9, %7, %11 : vector<256x16xi1>, vector<256x16xf32>
    %13 = vector.extract_strided_slice %4 {offsets = [1, 0], sizes = [1, 16], strides = [1, 1]} : vector<3x16xf32> to vector<1x16xf32>
    %14 = vector.broadcast %13 : vector<1x16xf32> to vector<256x16xf32>
    %15 = arith.mulf %12, %14 : vector<256x16xf32>
    %16 = vector.extract_strided_slice %4 {offsets = [2, 0], sizes = [1, 16], strides = [1, 1]} : vector<3x16xf32> to vector<1x16xf32>
    %17 = vector.broadcast %16 : vector<1x16xf32> to vector<256x16xf32>
    %18 = arith.addf %15, %17 : vector<256x16xf32>
    %19 = arith.truncf %18 : vector<256x16xf32> to vector<256x16xbf16>
    %cst_8 = arith.constant 0.000000e+00 : f32
    %20 = vector.broadcast %cst_8 : f32 to vector<64x32xf32>
    %c0_9 = arith.constant 0 : index
    %c0_10 = arith.constant 0 : index
    %c0_11 = arith.constant 0 : index
    %21 = vector.load %arg4[%c0_9, %c0_10, %c0_11] : memref<9x64x256xbf16, #tpu.memory_space<vmem>>, vector<1x64x256xbf16>
    %22 = vector.shape_cast %21 : vector<1x64x256xbf16> to vector<64x256xbf16>
    %cst_12 = arith.constant dense<0.000000e+00> : vector<64x16xf32>
    %23 = tpu.matmul %22, %19, %cst_12 {dimension_numbers = #tpu.dot_dimension_numbers<[1], [0], [0], [1], [0, 0, 1, 1], [], []>} : vector<64x256xbf16>, vector<256x16xbf16>, vector<64x16xf32> -> vector<64x16xf32>
    %24 = arith.truncf %23 : vector<64x16xf32> to vector<64x16xbf16>
    %c0_13 = arith.constant 0 : index
    %c0_14 = arith.constant 0 : index
    %c0_15 = arith.constant 0 : index
    %25 = vector.load %arg5[%c0_13, %c0_14, %c0_15] : memref<9x16x32xbf16, #tpu.memory_space<vmem>>, vector<1x16x32xbf16>
    %26 = vector.shape_cast %25 : vector<1x16x32xbf16> to vector<16x32xbf16>
    %cst_16 = arith.constant dense<0.000000e+00> : vector<64x32xf32>
    %27 = tpu.matmul %24, %26, %cst_16 {dimension_numbers = #tpu.dot_dimension_numbers<[1], [0], [0], [1], [0, 0, 1, 1], [], []>} : vector<64x16xbf16>, vector<16x32xbf16>, vector<64x32xf32> -> vector<64x32xf32>
    %28 = arith.addf %20, %27 : vector<64x32xf32>
    %c1 = arith.constant 1 : index
    %c0_17 = arith.constant 0 : index
    %c0_18 = arith.constant 0 : index
    %29 = vector.load %arg4[%c1, %c0_17, %c0_18] : memref<9x64x256xbf16, #tpu.memory_space<vmem>>, vector<1x64x256xbf16>
    %30 = vector.shape_cast %29 : vector<1x64x256xbf16> to vector<64x256xbf16>
    %cst_19 = arith.constant dense<0.000000e+00> : vector<64x16xf32>
    %31 = tpu.matmul %30, %19, %cst_19 {dimension_numbers = #tpu.dot_dimension_numbers<[1], [0], [0], [1], [0, 0, 1, 1], [], []>} : vector<64x256xbf16>, vector<256x16xbf16>, vector<64x16xf32> -> vector<64x16xf32>
    %32 = arith.truncf %31 : vector<64x16xf32> to vector<64x16xbf16>
    %c1_20 = arith.constant 1 : index
    %c0_21 = arith.constant 0 : index
    %c0_22 = arith.constant 0 : index
    %33 = vector.load %arg5[%c1_20, %c0_21, %c0_22] : memref<9x16x32xbf16, #tpu.memory_space<vmem>>, vector<1x16x32xbf16>
    %34 = vector.shape_cast %33 : vector<1x16x32xbf16> to vector<16x32xbf16>
    %cst_23 = arith.constant dense<0.000000e+00> : vector<64x32xf32>
    %35 = tpu.matmul %32, %34, %cst_23 {dimension_numbers = #tpu.dot_dimension_numbers<[1], [0], [0], [1], [0, 0, 1, 1], [], []>} : vector<64x16xbf16>, vector<16x32xbf16>, vector<64x32xf32> -> vector<64x32xf32>
    %36 = arith.addf %28, %35 : vector<64x32xf32>
    %c2 = arith.constant 2 : index
    %c0_24 = arith.constant 0 : index
    %c0_25 = arith.constant 0 : index
    %37 = vector.load %arg4[%c2, %c0_24, %c0_25] : memref<9x64x256xbf16, #tpu.memory_space<vmem>>, vector<1x64x256xbf16>
    %38 = vector.shape_cast %37 : vector<1x64x256xbf16> to vector<64x256xbf16>
    %cst_26 = arith.constant dense<0.000000e+00> : vector<64x16xf32>
    %39 = tpu.matmul %38, %19, %cst_26 {dimension_numbers = #tpu.dot_dimension_numbers<[1], [0], [0], [1], [0, 0, 1, 1], [], []>} : vector<64x256xbf16>, vector<256x16xbf16>, vector<64x16xf32> -> vector<64x16xf32>
    %40 = arith.truncf %39 : vector<64x16xf32> to vector<64x16xbf16>
    %c2_27 = arith.constant 2 : index
    %c0_28 = arith.constant 0 : index
    %c0_29 = arith.constant 0 : index
    %41 = vector.load %arg5[%c2_27, %c0_28, %c0_29] : memref<9x16x32xbf16, #tpu.memory_space<vmem>>, vector<1x16x32xbf16>
    %42 = vector.shape_cast %41 : vector<1x16x32xbf16> to vector<16x32xbf16>
    %cst_30 = arith.constant dense<0.000000e+00> : vector<64x32xf32>
    %43 = tpu.matmul %40, %42, %cst_30 {dimension_numbers = #tpu.dot_dimension_numbers<[1], [0], [0], [1], [0, 0, 1, 1], [], []>} : vector<64x16xbf16>, vector<16x32xbf16>, vector<64x32xf32> -> vector<64x32xf32>
    %44 = arith.addf %36, %43 : vector<64x32xf32>
    %c3 = arith.constant 3 : index
    %c0_31 = arith.constant 0 : index
    %c0_32 = arith.constant 0 : index
    %45 = vector.load %arg4[%c3, %c0_31, %c0_32] : memref<9x64x256xbf16, #tpu.memory_space<vmem>>, vector<1x64x256xbf16>
    %46 = vector.shape_cast %45 : vector<1x64x256xbf16> to vector<64x256xbf16>
    %cst_33 = arith.constant dense<0.000000e+00> : vector<64x16xf32>
    %47 = tpu.matmul %46, %19, %cst_33 {dimension_numbers = #tpu.dot_dimension_numbers<[1], [0], [0], [1], [0, 0, 1, 1], [], []>} : vector<64x256xbf16>, vector<256x16xbf16>, vector<64x16xf32> -> vector<64x16xf32>
    %48 = arith.truncf %47 : vector<64x16xf32> to vector<64x16xbf16>
    %c3_34 = arith.constant 3 : index
    %c0_35 = arith.constant 0 : index
    %c0_36 = arith.constant 0 : index
    %49 = vector.load %arg5[%c3_34, %c0_35, %c0_36] : memref<9x16x32xbf16, #tpu.memory_space<vmem>>, vector<1x16x32xbf16>
    %50 = vector.shape_cast %49 : vector<1x16x32xbf16> to vector<16x32xbf16>
    %cst_37 = arith.constant dense<0.000000e+00> : vector<64x32xf32>
    %51 = tpu.matmul %48, %50, %cst_37 {dimension_numbers = #tpu.dot_dimension_numbers<[1], [0], [0], [1], [0, 0, 1, 1], [], []>} : vector<64x16xbf16>, vector<16x32xbf16>, vector<64x32xf32> -> vector<64x32xf32>
    %52 = arith.addf %44, %51 : vector<64x32xf32>
    %c4 = arith.constant 4 : index
    %c0_38 = arith.constant 0 : index
    %c0_39 = arith.constant 0 : index
    %53 = vector.load %arg4[%c4, %c0_38, %c0_39] : memref<9x64x256xbf16, #tpu.memory_space<vmem>>, vector<1x64x256xbf16>
    %54 = vector.shape_cast %53 : vector<1x64x256xbf16> to vector<64x256xbf16>
    %cst_40 = arith.constant dense<0.000000e+00> : vector<64x16xf32>
    %55 = tpu.matmul %54, %19, %cst_40 {dimension_numbers = #tpu.dot_dimension_numbers<[1], [0], [0], [1], [0, 0, 1, 1], [], []>} : vector<64x256xbf16>, vector<256x16xbf16>, vector<64x16xf32> -> vector<64x16xf32>
    %56 = arith.truncf %55 : vector<64x16xf32> to vector<64x16xbf16>
    %c4_41 = arith.constant 4 : index
    %c0_42 = arith.constant 0 : index
    %c0_43 = arith.constant 0 : index
    %57 = vector.load %arg5[%c4_41, %c0_42, %c0_43] : memref<9x16x32xbf16, #tpu.memory_space<vmem>>, vector<1x16x32xbf16>
    %58 = vector.shape_cast %57 : vector<1x16x32xbf16> to vector<16x32xbf16>
    %cst_44 = arith.constant dense<0.000000e+00> : vector<64x32xf32>
    %59 = tpu.matmul %56, %58, %cst_44 {dimension_numbers = #tpu.dot_dimension_numbers<[1], [0], [0], [1], [0, 0, 1, 1], [], []>} : vector<64x16xbf16>, vector<16x32xbf16>, vector<64x32xf32> -> vector<64x32xf32>
    %60 = arith.addf %52, %59 : vector<64x32xf32>
    %c5 = arith.constant 5 : index
    %c0_45 = arith.constant 0 : index
    %c0_46 = arith.constant 0 : index
    %61 = vector.load %arg4[%c5, %c0_45, %c0_46] : memref<9x64x256xbf16, #tpu.memory_space<vmem>>, vector<1x64x256xbf16>
    %62 = vector.shape_cast %61 : vector<1x64x256xbf16> to vector<64x256xbf16>
    %cst_47 = arith.constant dense<0.000000e+00> : vector<64x16xf32>
    %63 = tpu.matmul %62, %19, %cst_47 {dimension_numbers = #tpu.dot_dimension_numbers<[1], [0], [0], [1], [0, 0, 1, 1], [], []>} : vector<64x256xbf16>, vector<256x16xbf16>, vector<64x16xf32> -> vector<64x16xf32>
    %64 = arith.truncf %63 : vector<64x16xf32> to vector<64x16xbf16>
    %c5_48 = arith.constant 5 : index
    %c0_49 = arith.constant 0 : index
    %c0_50 = arith.constant 0 : index
    %65 = vector.load %arg5[%c5_48, %c0_49, %c0_50] : memref<9x16x32xbf16, #tpu.memory_space<vmem>>, vector<1x16x32xbf16>
    %66 = vector.shape_cast %65 : vector<1x16x32xbf16> to vector<16x32xbf16>
    %cst_51 = arith.constant dense<0.000000e+00> : vector<64x32xf32>
    %67 = tpu.matmul %64, %66, %cst_51 {dimension_numbers = #tpu.dot_dimension_numbers<[1], [0], [0], [1], [0, 0, 1, 1], [], []>} : vector<64x16xbf16>, vector<16x32xbf16>, vector<64x32xf32> -> vector<64x32xf32>
    %68 = arith.addf %60, %67 : vector<64x32xf32>
    %c6 = arith.constant 6 : index
    %c0_52 = arith.constant 0 : index
    %c0_53 = arith.constant 0 : index
    %69 = vector.load %arg4[%c6, %c0_52, %c0_53] : memref<9x64x256xbf16, #tpu.memory_space<vmem>>, vector<1x64x256xbf16>
    %70 = vector.shape_cast %69 : vector<1x64x256xbf16> to vector<64x256xbf16>
    %cst_54 = arith.constant dense<0.000000e+00> : vector<64x16xf32>
    %71 = tpu.matmul %70, %19, %cst_54 {dimension_numbers = #tpu.dot_dimension_numbers<[1], [0], [0], [1], [0, 0, 1, 1], [], []>} : vector<64x256xbf16>, vector<256x16xbf16>, vector<64x16xf32> -> vector<64x16xf32>
    %72 = arith.truncf %71 : vector<64x16xf32> to vector<64x16xbf16>
    %c6_55 = arith.constant 6 : index
    %c0_56 = arith.constant 0 : index
    %c0_57 = arith.constant 0 : index
    %73 = vector.load %arg5[%c6_55, %c0_56, %c0_57] : memref<9x16x32xbf16, #tpu.memory_space<vmem>>, vector<1x16x32xbf16>
    %74 = vector.shape_cast %73 : vector<1x16x32xbf16> to vector<16x32xbf16>
    %cst_58 = arith.constant dense<0.000000e+00> : vector<64x32xf32>
    %75 = tpu.matmul %72, %74, %cst_58 {dimension_numbers = #tpu.dot_dimension_numbers<[1], [0], [0], [1], [0, 0, 1, 1], [], []>} : vector<64x16xbf16>, vector<16x32xbf16>, vector<64x32xf32> -> vector<64x32xf32>
    %76 = arith.addf %68, %75 : vector<64x32xf32>
    %c7 = arith.constant 7 : index
    %c0_59 = arith.constant 0 : index
    %c0_60 = arith.constant 0 : index
    %77 = vector.load %arg4[%c7, %c0_59, %c0_60] : memref<9x64x256xbf16, #tpu.memory_space<vmem>>, vector<1x64x256xbf16>
    %78 = vector.shape_cast %77 : vector<1x64x256xbf16> to vector<64x256xbf16>
    %cst_61 = arith.constant dense<0.000000e+00> : vector<64x16xf32>
    %79 = tpu.matmul %78, %19, %cst_61 {dimension_numbers = #tpu.dot_dimension_numbers<[1], [0], [0], [1], [0, 0, 1, 1], [], []>} : vector<64x256xbf16>, vector<256x16xbf16>, vector<64x16xf32> -> vector<64x16xf32>
    %80 = arith.truncf %79 : vector<64x16xf32> to vector<64x16xbf16>
    %c7_62 = arith.constant 7 : index
    %c0_63 = arith.constant 0 : index
    %c0_64 = arith.constant 0 : index
    %81 = vector.load %arg5[%c7_62, %c0_63, %c0_64] : memref<9x16x32xbf16, #tpu.memory_space<vmem>>, vector<1x16x32xbf16>
    %82 = vector.shape_cast %81 : vector<1x16x32xbf16> to vector<16x32xbf16>
    %cst_65 = arith.constant dense<0.000000e+00> : vector<64x32xf32>
    %83 = tpu.matmul %80, %82, %cst_65 {dimension_numbers = #tpu.dot_dimension_numbers<[1], [0], [0], [1], [0, 0, 1, 1], [], []>} : vector<64x16xbf16>, vector<16x32xbf16>, vector<64x32xf32> -> vector<64x32xf32>
    %84 = arith.addf %76, %83 : vector<64x32xf32>
    %c8 = arith.constant 8 : index
    %c0_66 = arith.constant 0 : index
    %c0_67 = arith.constant 0 : index
    %85 = vector.load %arg4[%c8, %c0_66, %c0_67] : memref<9x64x256xbf16, #tpu.memory_space<vmem>>, vector<1x64x256xbf16>
    %86 = vector.shape_cast %85 : vector<1x64x256xbf16> to vector<64x256xbf16>
    %cst_68 = arith.constant dense<0.000000e+00> : vector<64x16xf32>
    %87 = tpu.matmul %86, %19, %cst_68 {dimension_numbers = #tpu.dot_dimension_numbers<[1], [0], [0], [1], [0, 0, 1, 1], [], []>} : vector<64x256xbf16>, vector<256x16xbf16>, vector<64x16xf32> -> vector<64x16xf32>
    %88 = arith.truncf %87 : vector<64x16xf32> to vector<64x16xbf16>
    %c8_69 = arith.constant 8 : index
    %c0_70 = arith.constant 0 : index
    %c0_71 = arith.constant 0 : index
    %89 = vector.load %arg5[%c8_69, %c0_70, %c0_71] : memref<9x16x32xbf16, #tpu.memory_space<vmem>>, vector<1x16x32xbf16>
    %90 = vector.shape_cast %89 : vector<1x16x32xbf16> to vector<16x32xbf16>
    %cst_72 = arith.constant dense<0.000000e+00> : vector<64x32xf32>
    %91 = tpu.matmul %88, %90, %cst_72 {dimension_numbers = #tpu.dot_dimension_numbers<[1], [0], [0], [1], [0, 0, 1, 1], [], []>} : vector<64x16xbf16>, vector<16x32xbf16>, vector<64x32xf32> -> vector<64x32xf32>
    %92 = arith.addf %84, %91 : vector<64x32xf32>
    %c0_73 = arith.constant 0 : index
    %c0_74 = arith.constant 0 : index
    %93 = vector.load %arg6[%c0_73, %c0_74] : memref<3x32xf32, #tpu.memory_space<vmem>>, vector<3x32xf32>
    %94 = vector.extract_strided_slice %93 {offsets = [0, 0], sizes = [1, 32], strides = [1, 1]} : vector<3x32xf32> to vector<1x32xf32>
    %95 = vector.broadcast %94 : vector<1x32xf32> to vector<64x32xf32>
    %96 = arith.addf %92, %95 : vector<64x32xf32>
    %cst_75 = arith.constant 0.000000e+00 : f32
    %97 = vector.broadcast %cst_75 : f32 to vector<64x32xf32>
    %98 = arith.cmpf oge, %96, %97 : vector<64x32xf32>
    %cst_76 = arith.constant 2.000000e-01 : f32
    %99 = vector.broadcast %cst_76 : f32 to vector<64x32xf32>
    %100 = arith.mulf %99, %96 : vector<64x32xf32>
    %101 = arith.select %98, %96, %100 : vector<64x32xi1>, vector<64x32xf32>
    %102 = vector.extract_strided_slice %93 {offsets = [1, 0], sizes = [1, 32], strides = [1, 1]} : vector<3x32xf32> to vector<1x32xf32>
    %103 = vector.broadcast %102 : vector<1x32xf32> to vector<64x32xf32>
    %104 = arith.mulf %101, %103 : vector<64x32xf32>
    %105 = vector.extract_strided_slice %93 {offsets = [2, 0], sizes = [1, 32], strides = [1, 1]} : vector<3x32xf32> to vector<1x32xf32>
    %106 = vector.broadcast %105 : vector<1x32xf32> to vector<64x32xf32>
    %107 = arith.addf %104, %106 : vector<64x32xf32>
    %108 = arith.truncf %107 : vector<64x32xf32> to vector<64x32xbf16>
    %cst_77 = arith.constant 0.000000e+00 : f32
    %109 = vector.broadcast %cst_77 : f32 to vector<16x64xf32>
    %c0_78 = arith.constant 0 : index
    %c0_79 = arith.constant 0 : index
    %c0_80 = arith.constant 0 : index
    %110 = vector.load %arg7[%c0_78, %c0_79, %c0_80] : memref<9x16x64xbf16, #tpu.memory_space<vmem>>, vector<1x16x64xbf16>
    %111 = vector.shape_cast %110 : vector<1x16x64xbf16> to vector<16x64xbf16>
    %cst_81 = arith.constant dense<0.000000e+00> : vector<16x32xf32>
    %112 = tpu.matmul %111, %108, %cst_81 {dimension_numbers = #tpu.dot_dimension_numbers<[1], [0], [0], [1], [0, 0, 1, 1], [], []>} : vector<16x64xbf16>, vector<64x32xbf16>, vector<16x32xf32> -> vector<16x32xf32>
    %113 = arith.truncf %112 : vector<16x32xf32> to vector<16x32xbf16>
    %c0_82 = arith.constant 0 : index
    %c0_83 = arith.constant 0 : index
    %c0_84 = arith.constant 0 : index
    %114 = vector.load %arg8[%c0_82, %c0_83, %c0_84] : memref<9x32x64xbf16, #tpu.memory_space<vmem>>, vector<1x32x64xbf16>
    %115 = vector.shape_cast %114 : vector<1x32x64xbf16> to vector<32x64xbf16>
    %cst_85 = arith.constant dense<0.000000e+00> : vector<16x64xf32>
    %116 = tpu.matmul %113, %115, %cst_85 {dimension_numbers = #tpu.dot_dimension_numbers<[1], [0], [0], [1], [0, 0, 1, 1], [], []>} : vector<16x32xbf16>, vector<32x64xbf16>, vector<16x64xf32> -> vector<16x64xf32>
    %117 = arith.addf %109, %116 : vector<16x64xf32>
    %c1_86 = arith.constant 1 : index
    %c0_87 = arith.constant 0 : index
    %c0_88 = arith.constant 0 : index
    %118 = vector.load %arg7[%c1_86, %c0_87, %c0_88] : memref<9x16x64xbf16, #tpu.memory_space<vmem>>, vector<1x16x64xbf16>
    %119 = vector.shape_cast %118 : vector<1x16x64xbf16> to vector<16x64xbf16>
    %cst_89 = arith.constant dense<0.000000e+00> : vector<16x32xf32>
    %120 = tpu.matmul %119, %108, %cst_89 {dimension_numbers = #tpu.dot_dimension_numbers<[1], [0], [0], [1], [0, 0, 1, 1], [], []>} : vector<16x64xbf16>, vector<64x32xbf16>, vector<16x32xf32> -> vector<16x32xf32>
    %121 = arith.truncf %120 : vector<16x32xf32> to vector<16x32xbf16>
    %c1_90 = arith.constant 1 : index
    %c0_91 = arith.constant 0 : index
    %c0_92 = arith.constant 0 : index
    %122 = vector.load %arg8[%c1_90, %c0_91, %c0_92] : memref<9x32x64xbf16, #tpu.memory_space<vmem>>, vector<1x32x64xbf16>
    %123 = vector.shape_cast %122 : vector<1x32x64xbf16> to vector<32x64xbf16>
    %cst_93 = arith.constant dense<0.000000e+00> : vector<16x64xf32>
    %124 = tpu.matmul %121, %123, %cst_93 {dimension_numbers = #tpu.dot_dimension_numbers<[1], [0], [0], [1], [0, 0, 1, 1], [], []>} : vector<16x32xbf16>, vector<32x64xbf16>, vector<16x64xf32> -> vector<16x64xf32>
    %125 = arith.addf %117, %124 : vector<16x64xf32>
    %c2_94 = arith.constant 2 : index
    %c0_95 = arith.constant 0 : index
    %c0_96 = arith.constant 0 : index
    %126 = vector.load %arg7[%c2_94, %c0_95, %c0_96] : memref<9x16x64xbf16, #tpu.memory_space<vmem>>, vector<1x16x64xbf16>
    %127 = vector.shape_cast %126 : vector<1x16x64xbf16> to vector<16x64xbf16>
    %cst_97 = arith.constant dense<0.000000e+00> : vector<16x32xf32>
    %128 = tpu.matmul %127, %108, %cst_97 {dimension_numbers = #tpu.dot_dimension_numbers<[1], [0], [0], [1], [0, 0, 1, 1], [], []>} : vector<16x64xbf16>, vector<64x32xbf16>, vector<16x32xf32> -> vector<16x32xf32>
    %129 = arith.truncf %128 : vector<16x32xf32> to vector<16x32xbf16>
    %c2_98 = arith.constant 2 : index
    %c0_99 = arith.constant 0 : index
    %c0_100 = arith.constant 0 : index
    %130 = vector.load %arg8[%c2_98, %c0_99, %c0_100] : memref<9x32x64xbf16, #tpu.memory_space<vmem>>, vector<1x32x64xbf16>
    %131 = vector.shape_cast %130 : vector<1x32x64xbf16> to vector<32x64xbf16>
    %cst_101 = arith.constant dense<0.000000e+00> : vector<16x64xf32>
    %132 = tpu.matmul %129, %131, %cst_101 {dimension_numbers = #tpu.dot_dimension_numbers<[1], [0], [0], [1], [0, 0, 1, 1], [], []>} : vector<16x32xbf16>, vector<32x64xbf16>, vector<16x64xf32> -> vector<16x64xf32>
    %133 = arith.addf %125, %132 : vector<16x64xf32>
    %c3_102 = arith.constant 3 : index
    %c0_103 = arith.constant 0 : index
    %c0_104 = arith.constant 0 : index
    %134 = vector.load %arg7[%c3_102, %c0_103, %c0_104] : memref<9x16x64xbf16, #tpu.memory_space<vmem>>, vector<1x16x64xbf16>
    %135 = vector.shape_cast %134 : vector<1x16x64xbf16> to vector<16x64xbf16>
    %cst_105 = arith.constant dense<0.000000e+00> : vector<16x32xf32>
    %136 = tpu.matmul %135, %108, %cst_105 {dimension_numbers = #tpu.dot_dimension_numbers<[1], [0], [0], [1], [0, 0, 1, 1], [], []>} : vector<16x64xbf16>, vector<64x32xbf16>, vector<16x32xf32> -> vector<16x32xf32>
    %137 = arith.truncf %136 : vector<16x32xf32> to vector<16x32xbf16>
    %c3_106 = arith.constant 3 : index
    %c0_107 = arith.constant 0 : index
    %c0_108 = arith.constant 0 : index
    %138 = vector.load %arg8[%c3_106, %c0_107, %c0_108] : memref<9x32x64xbf16, #tpu.memory_space<vmem>>, vector<1x32x64xbf16>
    %139 = vector.shape_cast %138 : vector<1x32x64xbf16> to vector<32x64xbf16>
    %cst_109 = arith.constant dense<0.000000e+00> : vector<16x64xf32>
    %140 = tpu.matmul %137, %139, %cst_109 {dimension_numbers = #tpu.dot_dimension_numbers<[1], [0], [0], [1], [0, 0, 1, 1], [], []>} : vector<16x32xbf16>, vector<32x64xbf16>, vector<16x64xf32> -> vector<16x64xf32>
    %141 = arith.addf %133, %140 : vector<16x64xf32>
    %c4_110 = arith.constant 4 : index
    %c0_111 = arith.constant 0 : index
    %c0_112 = arith.constant 0 : index
    %142 = vector.load %arg7[%c4_110, %c0_111, %c0_112] : memref<9x16x64xbf16, #tpu.memory_space<vmem>>, vector<1x16x64xbf16>
    %143 = vector.shape_cast %142 : vector<1x16x64xbf16> to vector<16x64xbf16>
    %cst_113 = arith.constant dense<0.000000e+00> : vector<16x32xf32>
    %144 = tpu.matmul %143, %108, %cst_113 {dimension_numbers = #tpu.dot_dimension_numbers<[1], [0], [0], [1], [0, 0, 1, 1], [], []>} : vector<16x64xbf16>, vector<64x32xbf16>, vector<16x32xf32> -> vector<16x32xf32>
    %145 = arith.truncf %144 : vector<16x32xf32> to vector<16x32xbf16>
    %c4_114 = arith.constant 4 : index
    %c0_115 = arith.constant 0 : index
    %c0_116 = arith.constant 0 : index
    %146 = vector.load %arg8[%c4_114, %c0_115, %c0_116] : memref<9x32x64xbf16, #tpu.memory_space<vmem>>, vector<1x32x64xbf16>
    %147 = vector.shape_cast %146 : vector<1x32x64xbf16> to vector<32x64xbf16>
    %cst_117 = arith.constant dense<0.000000e+00> : vector<16x64xf32>
    %148 = tpu.matmul %145, %147, %cst_117 {dimension_numbers = #tpu.dot_dimension_numbers<[1], [0], [0], [1], [0, 0, 1, 1], [], []>} : vector<16x32xbf16>, vector<32x64xbf16>, vector<16x64xf32> -> vector<16x64xf32>
    %149 = arith.addf %141, %148 : vector<16x64xf32>
    %c5_118 = arith.constant 5 : index
    %c0_119 = arith.constant 0 : index
    %c0_120 = arith.constant 0 : index
    %150 = vector.load %arg7[%c5_118, %c0_119, %c0_120] : memref<9x16x64xbf16, #tpu.memory_space<vmem>>, vector<1x16x64xbf16>
    %151 = vector.shape_cast %150 : vector<1x16x64xbf16> to vector<16x64xbf16>
    %cst_121 = arith.constant dense<0.000000e+00> : vector<16x32xf32>
    %152 = tpu.matmul %151, %108, %cst_121 {dimension_numbers = #tpu.dot_dimension_numbers<[1], [0], [0], [1], [0, 0, 1, 1], [], []>} : vector<16x64xbf16>, vector<64x32xbf16>, vector<16x32xf32> -> vector<16x32xf32>
    %153 = arith.truncf %152 : vector<16x32xf32> to vector<16x32xbf16>
    %c5_122 = arith.constant 5 : index
    %c0_123 = arith.constant 0 : index
    %c0_124 = arith.constant 0 : index
    %154 = vector.load %arg8[%c5_122, %c0_123, %c0_124] : memref<9x32x64xbf16, #tpu.memory_space<vmem>>, vector<1x32x64xbf16>
    %155 = vector.shape_cast %154 : vector<1x32x64xbf16> to vector<32x64xbf16>
    %cst_125 = arith.constant dense<0.000000e+00> : vector<16x64xf32>
    %156 = tpu.matmul %153, %155, %cst_125 {dimension_numbers = #tpu.dot_dimension_numbers<[1], [0], [0], [1], [0, 0, 1, 1], [], []>} : vector<16x32xbf16>, vector<32x64xbf16>, vector<16x64xf32> -> vector<16x64xf32>
    %157 = arith.addf %149, %156 : vector<16x64xf32>
    %c6_126 = arith.constant 6 : index
    %c0_127 = arith.constant 0 : index
    %c0_128 = arith.constant 0 : index
    %158 = vector.load %arg7[%c6_126, %c0_127, %c0_128] : memref<9x16x64xbf16, #tpu.memory_space<vmem>>, vector<1x16x64xbf16>
    %159 = vector.shape_cast %158 : vector<1x16x64xbf16> to vector<16x64xbf16>
    %cst_129 = arith.constant dense<0.000000e+00> : vector<16x32xf32>
    %160 = tpu.matmul %159, %108, %cst_129 {dimension_numbers = #tpu.dot_dimension_numbers<[1], [0], [0], [1], [0, 0, 1, 1], [], []>} : vector<16x64xbf16>, vector<64x32xbf16>, vector<16x32xf32> -> vector<16x32xf32>
    %161 = arith.truncf %160 : vector<16x32xf32> to vector<16x32xbf16>
    %c6_130 = arith.constant 6 : index
    %c0_131 = arith.constant 0 : index
    %c0_132 = arith.constant 0 : index
    %162 = vector.load %arg8[%c6_130, %c0_131, %c0_132] : memref<9x32x64xbf16, #tpu.memory_space<vmem>>, vector<1x32x64xbf16>
    %163 = vector.shape_cast %162 : vector<1x32x64xbf16> to vector<32x64xbf16>
    %cst_133 = arith.constant dense<0.000000e+00> : vector<16x64xf32>
    %164 = tpu.matmul %161, %163, %cst_133 {dimension_numbers = #tpu.dot_dimension_numbers<[1], [0], [0], [1], [0, 0, 1, 1], [], []>} : vector<16x32xbf16>, vector<32x64xbf16>, vector<16x64xf32> -> vector<16x64xf32>
    %165 = arith.addf %157, %164 : vector<16x64xf32>
    %c7_134 = arith.constant 7 : index
    %c0_135 = arith.constant 0 : index
    %c0_136 = arith.constant 0 : index
    %166 = vector.load %arg7[%c7_134, %c0_135, %c0_136] : memref<9x16x64xbf16, #tpu.memory_space<vmem>>, vector<1x16x64xbf16>
    %167 = vector.shape_cast %166 : vector<1x16x64xbf16> to vector<16x64xbf16>
    %cst_137 = arith.constant dense<0.000000e+00> : vector<16x32xf32>
    %168 = tpu.matmul %167, %108, %cst_137 {dimension_numbers = #tpu.dot_dimension_numbers<[1], [0], [0], [1], [0, 0, 1, 1], [], []>} : vector<16x64xbf16>, vector<64x32xbf16>, vector<16x32xf32> -> vector<16x32xf32>
    %169 = arith.truncf %168 : vector<16x32xf32> to vector<16x32xbf16>
    %c7_138 = arith.constant 7 : index
    %c0_139 = arith.constant 0 : index
    %c0_140 = arith.constant 0 : index
    %170 = vector.load %arg8[%c7_138, %c0_139, %c0_140] : memref<9x32x64xbf16, #tpu.memory_space<vmem>>, vector<1x32x64xbf16>
    %171 = vector.shape_cast %170 : vector<1x32x64xbf16> to vector<32x64xbf16>
    %cst_141 = arith.constant dense<0.000000e+00> : vector<16x64xf32>
    %172 = tpu.matmul %169, %171, %cst_141 {dimension_numbers = #tpu.dot_dimension_numbers<[1], [0], [0], [1], [0, 0, 1, 1], [], []>} : vector<16x32xbf16>, vector<32x64xbf16>, vector<16x64xf32> -> vector<16x64xf32>
    %173 = arith.addf %165, %172 : vector<16x64xf32>
    %c8_142 = arith.constant 8 : index
    %c0_143 = arith.constant 0 : index
    %c0_144 = arith.constant 0 : index
    %174 = vector.load %arg7[%c8_142, %c0_143, %c0_144] : memref<9x16x64xbf16, #tpu.memory_space<vmem>>, vector<1x16x64xbf16>
    %175 = vector.shape_cast %174 : vector<1x16x64xbf16> to vector<16x64xbf16>
    %cst_145 = arith.constant dense<0.000000e+00> : vector<16x32xf32>
    %176 = tpu.matmul %175, %108, %cst_145 {dimension_numbers = #tpu.dot_dimension_numbers<[1], [0], [0], [1], [0, 0, 1, 1], [], []>} : vector<16x64xbf16>, vector<64x32xbf16>, vector<16x32xf32> -> vector<16x32xf32>
    %177 = arith.truncf %176 : vector<16x32xf32> to vector<16x32xbf16>
    %c8_146 = arith.constant 8 : index
    %c0_147 = arith.constant 0 : index
    %c0_148 = arith.constant 0 : index
    %178 = vector.load %arg8[%c8_146, %c0_147, %c0_148] : memref<9x32x64xbf16, #tpu.memory_space<vmem>>, vector<1x32x64xbf16>
    %179 = vector.shape_cast %178 : vector<1x32x64xbf16> to vector<32x64xbf16>
    %cst_149 = arith.constant dense<0.000000e+00> : vector<16x64xf32>
    %180 = tpu.matmul %177, %179, %cst_149 {dimension_numbers = #tpu.dot_dimension_numbers<[1], [0], [0], [1], [0, 0, 1, 1], [], []>} : vector<16x32xbf16>, vector<32x64xbf16>, vector<16x64xf32> -> vector<16x64xf32>
    %181 = arith.addf %173, %180 : vector<16x64xf32>
    %c0_150 = arith.constant 0 : index
    %c0_151 = arith.constant 0 : index
    %182 = vector.load %arg9[%c0_150, %c0_151] : memref<3x64xf32, #tpu.memory_space<vmem>>, vector<3x64xf32>
    %183 = vector.extract_strided_slice %182 {offsets = [0, 0], sizes = [1, 64], strides = [1, 1]} : vector<3x64xf32> to vector<1x64xf32>
    %184 = vector.broadcast %183 : vector<1x64xf32> to vector<16x64xf32>
    %185 = arith.addf %181, %184 : vector<16x64xf32>
    %cst_152 = arith.constant 0.000000e+00 : f32
    %186 = vector.broadcast %cst_152 : f32 to vector<16x64xf32>
    %187 = arith.cmpf oge, %185, %186 : vector<16x64xf32>
    %cst_153 = arith.constant 2.000000e-01 : f32
    %188 = vector.broadcast %cst_153 : f32 to vector<16x64xf32>
    %189 = arith.mulf %188, %185 : vector<16x64xf32>
    %190 = arith.select %187, %185, %189 : vector<16x64xi1>, vector<16x64xf32>
    %191 = vector.extract_strided_slice %182 {offsets = [1, 0], sizes = [1, 64], strides = [1, 1]} : vector<3x64xf32> to vector<1x64xf32>
    %192 = vector.broadcast %191 : vector<1x64xf32> to vector<16x64xf32>
    %193 = arith.mulf %190, %192 : vector<16x64xf32>
    %194 = vector.extract_strided_slice %182 {offsets = [2, 0], sizes = [1, 64], strides = [1, 1]} : vector<3x64xf32> to vector<1x64xf32>
    %195 = vector.broadcast %194 : vector<1x64xf32> to vector<16x64xf32>
    %196 = arith.addf %193, %195 : vector<16x64xf32>
    %197 = arith.truncf %196 : vector<16x64xf32> to vector<16x64xbf16>
    %cst_154 = arith.constant 0.000000e+00 : f32
    %198 = vector.broadcast %cst_154 : f32 to vector<4x128xf32>
    %c0_155 = arith.constant 0 : index
    %c0_156 = arith.constant 0 : index
    %c0_157 = arith.constant 0 : index
    %199 = vector.load %arg10[%c0_155, %c0_156, %c0_157] : memref<9x4x16xbf16, #tpu.memory_space<vmem>>, vector<1x4x16xbf16>
    %200 = vector.shape_cast %199 : vector<1x4x16xbf16> to vector<4x16xbf16>
    %cst_158 = arith.constant dense<0.000000e+00> : vector<4x64xf32>
    %201 = tpu.matmul %200, %197, %cst_158 {dimension_numbers = #tpu.dot_dimension_numbers<[1], [0], [0], [1], [0, 0, 1, 1], [], []>} : vector<4x16xbf16>, vector<16x64xbf16>, vector<4x64xf32> -> vector<4x64xf32>
    %202 = arith.truncf %201 : vector<4x64xf32> to vector<4x64xbf16>
    %c0_159 = arith.constant 0 : index
    %c0_160 = arith.constant 0 : index
    %c0_161 = arith.constant 0 : index
    %203 = vector.load %arg11[%c0_159, %c0_160, %c0_161] : memref<9x64x128xbf16, #tpu.memory_space<vmem>>, vector<1x64x128xbf16>
    %204 = vector.shape_cast %203 : vector<1x64x128xbf16> to vector<64x128xbf16>
    %cst_162 = arith.constant dense<0.000000e+00> : vector<4x128xf32>
    %205 = tpu.matmul %202, %204, %cst_162 {dimension_numbers = #tpu.dot_dimension_numbers<[1], [0], [0], [1], [0, 0, 1, 1], [], []>} : vector<4x64xbf16>, vector<64x128xbf16>, vector<4x128xf32> -> vector<4x128xf32>
    %206 = arith.addf %198, %205 : vector<4x128xf32>
    %c1_163 = arith.constant 1 : index
    %c0_164 = arith.constant 0 : index
    %c0_165 = arith.constant 0 : index
    %207 = vector.load %arg10[%c1_163, %c0_164, %c0_165] : memref<9x4x16xbf16, #tpu.memory_space<vmem>>, vector<1x4x16xbf16>
    %208 = vector.shape_cast %207 : vector<1x4x16xbf16> to vector<4x16xbf16>
    %cst_166 = arith.constant dense<0.000000e+00> : vector<4x64xf32>
    %209 = tpu.matmul %208, %197, %cst_166 {dimension_numbers = #tpu.dot_dimension_numbers<[1], [0], [0], [1], [0, 0, 1, 1], [], []>} : vector<4x16xbf16>, vector<16x64xbf16>, vector<4x64xf32> -> vector<4x64xf32>
    %210 = arith.truncf %209 : vector<4x64xf32> to vector<4x64xbf16>
    %c1_167 = arith.constant 1 : index
    %c0_168 = arith.constant 0 : index
    %c0_169 = arith.constant 0 : index
    %211 = vector.load %arg11[%c1_167, %c0_168, %c0_169] : memref<9x64x128xbf16, #tpu.memory_space<vmem>>, vector<1x64x128xbf16>
    %212 = vector.shape_cast %211 : vector<1x64x128xbf16> to vector<64x128xbf16>
    %cst_170 = arith.constant dense<0.000000e+00> : vector<4x128xf32>
    %213 = tpu.matmul %210, %212, %cst_170 {dimension_numbers = #tpu.dot_dimension_numbers<[1], [0], [0], [1], [0, 0, 1, 1], [], []>} : vector<4x64xbf16>, vector<64x128xbf16>, vector<4x128xf32> -> vector<4x128xf32>
    %214 = arith.addf %206, %213 : vector<4x128xf32>
    %c2_171 = arith.constant 2 : index
    %c0_172 = arith.constant 0 : index
    %c0_173 = arith.constant 0 : index
    %215 = vector.load %arg10[%c2_171, %c0_172, %c0_173] : memref<9x4x16xbf16, #tpu.memory_space<vmem>>, vector<1x4x16xbf16>
    %216 = vector.shape_cast %215 : vector<1x4x16xbf16> to vector<4x16xbf16>
    %cst_174 = arith.constant dense<0.000000e+00> : vector<4x64xf32>
    %217 = tpu.matmul %216, %197, %cst_174 {dimension_numbers = #tpu.dot_dimension_numbers<[1], [0], [0], [1], [0, 0, 1, 1], [], []>} : vector<4x16xbf16>, vector<16x64xbf16>, vector<4x64xf32> -> vector<4x64xf32>
    %218 = arith.truncf %217 : vector<4x64xf32> to vector<4x64xbf16>
    %c2_175 = arith.constant 2 : index
    %c0_176 = arith.constant 0 : index
    %c0_177 = arith.constant 0 : index
    %219 = vector.load %arg11[%c2_175, %c0_176, %c0_177] : memref<9x64x128xbf16, #tpu.memory_space<vmem>>, vector<1x64x128xbf16>
    %220 = vector.shape_cast %219 : vector<1x64x128xbf16> to vector<64x128xbf16>
    %cst_178 = arith.constant dense<0.000000e+00> : vector<4x128xf32>
    %221 = tpu.matmul %218, %220, %cst_178 {dimension_numbers = #tpu.dot_dimension_numbers<[1], [0], [0], [1], [0, 0, 1, 1], [], []>} : vector<4x64xbf16>, vector<64x128xbf16>, vector<4x128xf32> -> vector<4x128xf32>
    %222 = arith.addf %214, %221 : vector<4x128xf32>
    %c3_179 = arith.constant 3 : index
    %c0_180 = arith.constant 0 : index
    %c0_181 = arith.constant 0 : index
    %223 = vector.load %arg10[%c3_179, %c0_180, %c0_181] : memref<9x4x16xbf16, #tpu.memory_space<vmem>>, vector<1x4x16xbf16>
    %224 = vector.shape_cast %223 : vector<1x4x16xbf16> to vector<4x16xbf16>
    %cst_182 = arith.constant dense<0.000000e+00> : vector<4x64xf32>
    %225 = tpu.matmul %224, %197, %cst_182 {dimension_numbers = #tpu.dot_dimension_numbers<[1], [0], [0], [1], [0, 0, 1, 1], [], []>} : vector<4x16xbf16>, vector<16x64xbf16>, vector<4x64xf32> -> vector<4x64xf32>
    %226 = arith.truncf %225 : vector<4x64xf32> to vector<4x64xbf16>
    %c3_183 = arith.constant 3 : index
    %c0_184 = arith.constant 0 : index
    %c0_185 = arith.constant 0 : index
    %227 = vector.load %arg11[%c3_183, %c0_184, %c0_185] : memref<9x64x128xbf16, #tpu.memory_space<vmem>>, vector<1x64x128xbf16>
    %228 = vector.shape_cast %227 : vector<1x64x128xbf16> to vector<64x128xbf16>
    %cst_186 = arith.constant dense<0.000000e+00> : vector<4x128xf32>
    %229 = tpu.matmul %226, %228, %cst_186 {dimension_numbers = #tpu.dot_dimension_numbers<[1], [0], [0], [1], [0, 0, 1, 1], [], []>} : vector<4x64xbf16>, vector<64x128xbf16>, vector<4x128xf32> -> vector<4x128xf32>
    %230 = arith.addf %222, %229 : vector<4x128xf32>
    %c4_187 = arith.constant 4 : index
    %c0_188 = arith.constant 0 : index
    %c0_189 = arith.constant 0 : index
    %231 = vector.load %arg10[%c4_187, %c0_188, %c0_189] : memref<9x4x16xbf16, #tpu.memory_space<vmem>>, vector<1x4x16xbf16>
    %232 = vector.shape_cast %231 : vector<1x4x16xbf16> to vector<4x16xbf16>
    %cst_190 = arith.constant dense<0.000000e+00> : vector<4x64xf32>
    %233 = tpu.matmul %232, %197, %cst_190 {dimension_numbers = #tpu.dot_dimension_numbers<[1], [0], [0], [1], [0, 0, 1, 1], [], []>} : vector<4x16xbf16>, vector<16x64xbf16>, vector<4x64xf32> -> vector<4x64xf32>
    %234 = arith.truncf %233 : vector<4x64xf32> to vector<4x64xbf16>
    %c4_191 = arith.constant 4 : index
    %c0_192 = arith.constant 0 : index
    %c0_193 = arith.constant 0 : index
    %235 = vector.load %arg11[%c4_191, %c0_192, %c0_193] : memref<9x64x128xbf16, #tpu.memory_space<vmem>>, vector<1x64x128xbf16>
    %236 = vector.shape_cast %235 : vector<1x64x128xbf16> to vector<64x128xbf16>
    %cst_194 = arith.constant dense<0.000000e+00> : vector<4x128xf32>
    %237 = tpu.matmul %234, %236, %cst_194 {dimension_numbers = #tpu.dot_dimension_numbers<[1], [0], [0], [1], [0, 0, 1, 1], [], []>} : vector<4x64xbf16>, vector<64x128xbf16>, vector<4x128xf32> -> vector<4x128xf32>
    %238 = arith.addf %230, %237 : vector<4x128xf32>
    %c5_195 = arith.constant 5 : index
    %c0_196 = arith.constant 0 : index
    %c0_197 = arith.constant 0 : index
    %239 = vector.load %arg10[%c5_195, %c0_196, %c0_197] : memref<9x4x16xbf16, #tpu.memory_space<vmem>>, vector<1x4x16xbf16>
    %240 = vector.shape_cast %239 : vector<1x4x16xbf16> to vector<4x16xbf16>
    %cst_198 = arith.constant dense<0.000000e+00> : vector<4x64xf32>
    %241 = tpu.matmul %240, %197, %cst_198 {dimension_numbers = #tpu.dot_dimension_numbers<[1], [0], [0], [1], [0, 0, 1, 1], [], []>} : vector<4x16xbf16>, vector<16x64xbf16>, vector<4x64xf32> -> vector<4x64xf32>
    %242 = arith.truncf %241 : vector<4x64xf32> to vector<4x64xbf16>
    %c5_199 = arith.constant 5 : index
    %c0_200 = arith.constant 0 : index
    %c0_201 = arith.constant 0 : index
    %243 = vector.load %arg11[%c5_199, %c0_200, %c0_201] : memref<9x64x128xbf16, #tpu.memory_space<vmem>>, vector<1x64x128xbf16>
    %244 = vector.shape_cast %243 : vector<1x64x128xbf16> to vector<64x128xbf16>
    %cst_202 = arith.constant dense<0.000000e+00> : vector<4x128xf32>
    %245 = tpu.matmul %242, %244, %cst_202 {dimension_numbers = #tpu.dot_dimension_numbers<[1], [0], [0], [1], [0, 0, 1, 1], [], []>} : vector<4x64xbf16>, vector<64x128xbf16>, vector<4x128xf32> -> vector<4x128xf32>
    %246 = arith.addf %238, %245 : vector<4x128xf32>
    %c6_203 = arith.constant 6 : index
    %c0_204 = arith.constant 0 : index
    %c0_205 = arith.constant 0 : index
    %247 = vector.load %arg10[%c6_203, %c0_204, %c0_205] : memref<9x4x16xbf16, #tpu.memory_space<vmem>>, vector<1x4x16xbf16>
    %248 = vector.shape_cast %247 : vector<1x4x16xbf16> to vector<4x16xbf16>
    %cst_206 = arith.constant dense<0.000000e+00> : vector<4x64xf32>
    %249 = tpu.matmul %248, %197, %cst_206 {dimension_numbers = #tpu.dot_dimension_numbers<[1], [0], [0], [1], [0, 0, 1, 1], [], []>} : vector<4x16xbf16>, vector<16x64xbf16>, vector<4x64xf32> -> vector<4x64xf32>
    %250 = arith.truncf %249 : vector<4x64xf32> to vector<4x64xbf16>
    %c6_207 = arith.constant 6 : index
    %c0_208 = arith.constant 0 : index
    %c0_209 = arith.constant 0 : index
    %251 = vector.load %arg11[%c6_207, %c0_208, %c0_209] : memref<9x64x128xbf16, #tpu.memory_space<vmem>>, vector<1x64x128xbf16>
    %252 = vector.shape_cast %251 : vector<1x64x128xbf16> to vector<64x128xbf16>
    %cst_210 = arith.constant dense<0.000000e+00> : vector<4x128xf32>
    %253 = tpu.matmul %250, %252, %cst_210 {dimension_numbers = #tpu.dot_dimension_numbers<[1], [0], [0], [1], [0, 0, 1, 1], [], []>} : vector<4x64xbf16>, vector<64x128xbf16>, vector<4x128xf32> -> vector<4x128xf32>
    %254 = arith.addf %246, %253 : vector<4x128xf32>
    %c7_211 = arith.constant 7 : index
    %c0_212 = arith.constant 0 : index
    %c0_213 = arith.constant 0 : index
    %255 = vector.load %arg10[%c7_211, %c0_212, %c0_213] : memref<9x4x16xbf16, #tpu.memory_space<vmem>>, vector<1x4x16xbf16>
    %256 = vector.shape_cast %255 : vector<1x4x16xbf16> to vector<4x16xbf16>
    %cst_214 = arith.constant dense<0.000000e+00> : vector<4x64xf32>
    %257 = tpu.matmul %256, %197, %cst_214 {dimension_numbers = #tpu.dot_dimension_numbers<[1], [0], [0], [1], [0, 0, 1, 1], [], []>} : vector<4x16xbf16>, vector<16x64xbf16>, vector<4x64xf32> -> vector<4x64xf32>
    %258 = arith.truncf %257 : vector<4x64xf32> to vector<4x64xbf16>
    %c7_215 = arith.constant 7 : index
    %c0_216 = arith.constant 0 : index
    %c0_217 = arith.constant 0 : index
    %259 = vector.load %arg11[%c7_215, %c0_216, %c0_217] : memref<9x64x128xbf16, #tpu.memory_space<vmem>>, vector<1x64x128xbf16>
    %260 = vector.shape_cast %259 : vector<1x64x128xbf16> to vector<64x128xbf16>
    %cst_218 = arith.constant dense<0.000000e+00> : vector<4x128xf32>
    %261 = tpu.matmul %258, %260, %cst_218 {dimension_numbers = #tpu.dot_dimension_numbers<[1], [0], [0], [1], [0, 0, 1, 1], [], []>} : vector<4x64xbf16>, vector<64x128xbf16>, vector<4x128xf32> -> vector<4x128xf32>
    %262 = arith.addf %254, %261 : vector<4x128xf32>
    %c8_219 = arith.constant 8 : index
    %c0_220 = arith.constant 0 : index
    %c0_221 = arith.constant 0 : index
    %263 = vector.load %arg10[%c8_219, %c0_220, %c0_221] : memref<9x4x16xbf16, #tpu.memory_space<vmem>>, vector<1x4x16xbf16>
    %264 = vector.shape_cast %263 : vector<1x4x16xbf16> to vector<4x16xbf16>
    %cst_222 = arith.constant dense<0.000000e+00> : vector<4x64xf32>
    %265 = tpu.matmul %264, %197, %cst_222 {dimension_numbers = #tpu.dot_dimension_numbers<[1], [0], [0], [1], [0, 0, 1, 1], [], []>} : vector<4x16xbf16>, vector<16x64xbf16>, vector<4x64xf32> -> vector<4x64xf32>
    %266 = arith.truncf %265 : vector<4x64xf32> to vector<4x64xbf16>
    %c8_223 = arith.constant 8 : index
    %c0_224 = arith.constant 0 : index
    %c0_225 = arith.constant 0 : index
    %267 = vector.load %arg11[%c8_223, %c0_224, %c0_225] : memref<9x64x128xbf16, #tpu.memory_space<vmem>>, vector<1x64x128xbf16>
    %268 = vector.shape_cast %267 : vector<1x64x128xbf16> to vector<64x128xbf16>
    %cst_226 = arith.constant dense<0.000000e+00> : vector<4x128xf32>
    %269 = tpu.matmul %266, %268, %cst_226 {dimension_numbers = #tpu.dot_dimension_numbers<[1], [0], [0], [1], [0, 0, 1, 1], [], []>} : vector<4x64xbf16>, vector<64x128xbf16>, vector<4x128xf32> -> vector<4x128xf32>
    %270 = arith.addf %262, %269 : vector<4x128xf32>
    %c0_227 = arith.constant 0 : index
    %c0_228 = arith.constant 0 : index
    %271 = vector.load %arg12[%c0_227, %c0_228] : memref<3x128xf32, #tpu.memory_space<vmem>>, vector<3x128xf32>
    %272 = vector.extract_strided_slice %271 {offsets = [0, 0], sizes = [1, 128], strides = [1, 1]} : vector<3x128xf32> to vector<1x128xf32>
    %273 = vector.broadcast %272 : vector<1x128xf32> to vector<4x128xf32>
    %274 = arith.addf %270, %273 : vector<4x128xf32>
    %cst_229 = arith.constant 0.000000e+00 : f32
    %275 = vector.broadcast %cst_229 : f32 to vector<4x128xf32>
    %276 = arith.cmpf oge, %274, %275 : vector<4x128xf32>
    %cst_230 = arith.constant 2.000000e-01 : f32
    %277 = vector.broadcast %cst_230 : f32 to vector<4x128xf32>
    %278 = arith.mulf %277, %274 : vector<4x128xf32>
    %279 = arith.select %276, %274, %278 : vector<4x128xi1>, vector<4x128xf32>
    %280 = vector.extract_strided_slice %271 {offsets = [1, 0], sizes = [1, 128], strides = [1, 1]} : vector<3x128xf32> to vector<1x128xf32>
    %281 = vector.broadcast %280 : vector<1x128xf32> to vector<4x128xf32>
    %282 = arith.mulf %279, %281 : vector<4x128xf32>
    %283 = vector.extract_strided_slice %271 {offsets = [2, 0], sizes = [1, 128], strides = [1, 1]} : vector<3x128xf32> to vector<1x128xf32>
    %284 = vector.broadcast %283 : vector<1x128xf32> to vector<4x128xf32>
    %285 = arith.addf %282, %284 : vector<4x128xf32>
    %286 = arith.truncf %285 : vector<4x128xf32> to vector<4x128xbf16>
    %cst_231 = arith.constant 0.000000e+00 : f32
    %287 = vector.broadcast %cst_231 : f32 to vector<1x128xf32>
    %288 = vector.extract_strided_slice %286 {offsets = [0, 0], sizes = [1, 128], strides = [1, 1]} : vector<4x128xbf16> to vector<1x128xbf16>
    %c0_232 = arith.constant 0 : index
    %c0_233 = arith.constant 0 : index
    %c0_234 = arith.constant 0 : index
    %289 = vector.load %arg13[%c0_232, %c0_233, %c0_234] : memref<4x128x128xbf16, #tpu.memory_space<vmem>>, vector<1x128x128xbf16>
    %290 = vector.shape_cast %289 : vector<1x128x128xbf16> to vector<128x128xbf16>
    %cst_235 = arith.constant dense<0.000000e+00> : vector<1x128xf32>
    %291 = tpu.matmul %288, %290, %cst_235 {dimension_numbers = #tpu.dot_dimension_numbers<[1], [0], [0], [1], [0, 0, 1, 1], [], []>} : vector<1x128xbf16>, vector<128x128xbf16>, vector<1x128xf32> -> vector<1x128xf32>
    %292 = arith.addf %287, %291 : vector<1x128xf32>
    %293 = vector.extract_strided_slice %286 {offsets = [1, 0], sizes = [1, 128], strides = [1, 1]} : vector<4x128xbf16> to vector<1x128xbf16>
    %c1_236 = arith.constant 1 : index
    %c0_237 = arith.constant 0 : index
    %c0_238 = arith.constant 0 : index
    %294 = vector.load %arg13[%c1_236, %c0_237, %c0_238] : memref<4x128x128xbf16, #tpu.memory_space<vmem>>, vector<1x128x128xbf16>
    %295 = vector.shape_cast %294 : vector<1x128x128xbf16> to vector<128x128xbf16>
    %cst_239 = arith.constant dense<0.000000e+00> : vector<1x128xf32>
    %296 = tpu.matmul %293, %295, %cst_239 {dimension_numbers = #tpu.dot_dimension_numbers<[1], [0], [0], [1], [0, 0, 1, 1], [], []>} : vector<1x128xbf16>, vector<128x128xbf16>, vector<1x128xf32> -> vector<1x128xf32>
    %297 = arith.addf %292, %296 : vector<1x128xf32>
    %298 = vector.extract_strided_slice %286 {offsets = [2, 0], sizes = [1, 128], strides = [1, 1]} : vector<4x128xbf16> to vector<1x128xbf16>
    %c2_240 = arith.constant 2 : index
    %c0_241 = arith.constant 0 : index
    %c0_242 = arith.constant 0 : index
    %299 = vector.load %arg13[%c2_240, %c0_241, %c0_242] : memref<4x128x128xbf16, #tpu.memory_space<vmem>>, vector<1x128x128xbf16>
    %300 = vector.shape_cast %299 : vector<1x128x128xbf16> to vector<128x128xbf16>
    %cst_243 = arith.constant dense<0.000000e+00> : vector<1x128xf32>
    %301 = tpu.matmul %298, %300, %cst_243 {dimension_numbers = #tpu.dot_dimension_numbers<[1], [0], [0], [1], [0, 0, 1, 1], [], []>} : vector<1x128xbf16>, vector<128x128xbf16>, vector<1x128xf32> -> vector<1x128xf32>
    %302 = arith.addf %297, %301 : vector<1x128xf32>
    %303 = vector.extract_strided_slice %286 {offsets = [3, 0], sizes = [1, 128], strides = [1, 1]} : vector<4x128xbf16> to vector<1x128xbf16>
    %c3_244 = arith.constant 3 : index
    %c0_245 = arith.constant 0 : index
    %c0_246 = arith.constant 0 : index
    %304 = vector.load %arg13[%c3_244, %c0_245, %c0_246] : memref<4x128x128xbf16, #tpu.memory_space<vmem>>, vector<1x128x128xbf16>
    %305 = vector.shape_cast %304 : vector<1x128x128xbf16> to vector<128x128xbf16>
    %cst_247 = arith.constant dense<0.000000e+00> : vector<1x128xf32>
    %306 = tpu.matmul %303, %305, %cst_247 {dimension_numbers = #tpu.dot_dimension_numbers<[1], [0], [0], [1], [0, 0, 1, 1], [], []>} : vector<1x128xbf16>, vector<128x128xbf16>, vector<1x128xf32> -> vector<1x128xf32>
    %307 = arith.addf %302, %306 : vector<1x128xf32>
    %c0_248 = arith.constant 0 : index
    %c0_249 = arith.constant 0 : index
    %308 = vector.load %arg14[%c0_248, %c0_249] : memref<1x128xf32, #tpu.memory_space<vmem>>, vector<1x128xf32>
    %309 = arith.addf %307, %308 : vector<1x128xf32>
    %310 = arith.negf %309 : vector<1x128xf32>
    %311 = math.exp %310 : vector<1x128xf32>
    %cst_250 = arith.constant 1.000000e+00 : f32
    %312 = vector.broadcast %cst_250 : f32 to vector<1x128xf32>
    %313 = arith.addf %312, %311 : vector<1x128xf32>
    %314 = arith.divf %312, %313 : vector<1x128xf32>
    %c0_251 = arith.constant 0 : index
    %c0_252 = arith.constant 0 : index
    %c0_253 = arith.constant 0 : index
    %315 = vector.load %arg15[%c0_251, %c0_252, %c0_253] : memref<1x1x128xf32, #tpu.memory_space<vmem>>, vector<1x1x128xf32>
    %316 = vector.shape_cast %315 : vector<1x1x128xf32> to vector<1x128xf32>
    %317 = vector.shape_cast %314 : vector<1x128xf32> to vector<1x1x128xf32>
    tpu.vector_store %arg15[%c0_251, %c0_252, %c0_253], %317 {strides = array<i32>} : memref<1x1x128xf32, #tpu.memory_space<vmem>>, vector<1x1x128xf32>,
    return
  }
  func.func @transform_0(%arg0: i32) -> (i32, i32, i32) {
    %c0_i32 = arith.constant 0 : i32
    %c0_i32_0 = arith.constant 0 : i32
    %c0_i32_1 = arith.constant 0 : i32
    return %arg0, %c0_i32, %c0_i32_0 : i32, i32, i32
  }
  func.func @transform_1(%arg0: i32) -> (i32, i32) {
    %c0_i32 = arith.constant 0 : i32
    %c0_i32_0 = arith.constant 0 : i32
    %c0_i32_1 = arith.constant 0 : i32
    return %c0_i32, %c0_i32_0 : i32, i32
  }
  func.func @transform_2(%arg0: i32) -> (i32, i32) {
    %c0_i32 = arith.constant 0 : i32
    %c0_i32_0 = arith.constant 0 : i32
    %c0_i32_1 = arith.constant 0 : i32
    return %c0_i32, %c0_i32_0 : i32, i32
  }
  func.func @transform_3(%arg0: i32) -> (i32, i32, i32) {
    %c0_i32 = arith.constant 0 : i32
    %c0_i32_0 = arith.constant 0 : i32
    %c0_i32_1 = arith.constant 0 : i32
    %c0_i32_2 = arith.constant 0 : i32
    return %c0_i32, %c0_i32_0, %c0_i32_1 : i32, i32, i32
  }
  func.func @transform_4(%arg0: i32) -> (i32, i32, i32) {
    %c0_i32 = arith.constant 0 : i32
    %c0_i32_0 = arith.constant 0 : i32
    %c0_i32_1 = arith.constant 0 : i32
    %c0_i32_2 = arith.constant 0 : i32
    return %c0_i32, %c0_i32_0, %c0_i32_1 : i32, i32, i32
  }
  func.func @transform_5(%arg0: i32) -> (i32, i32) {
    %c0_i32 = arith.constant 0 : i32
    %c0_i32_0 = arith.constant 0 : i32
    %c0_i32_1 = arith.constant 0 : i32
    return %c0_i32, %c0_i32_0 : i32, i32
  }
  func.func @transform_6(%arg0: i32) -> (i32, i32, i32) {
    %c0_i32 = arith.constant 0 : i32
    %c0_i32_0 = arith.constant 0 : i32
    %c0_i32_1 = arith.constant 0 : i32
    %c0_i32_2 = arith.constant 0 : i32
    return %c0_i32, %c0_i32_0, %c0_i32_1 : i32, i32, i32
  }
  func.func @transform_7(%arg0: i32) -> (i32, i32, i32) {
    %c0_i32 = arith.constant 0 : i32
    %c0_i32_0 = arith.constant 0 : i32
    %c0_i32_1 = arith.constant 0 : i32
    %c0_i32_2 = arith.constant 0 : i32
    return %c0_i32, %c0_i32_0, %c0_i32_1 : i32, i32, i32
  }
  func.func @transform_8(%arg0: i32) -> (i32, i32) {
    %c0_i32 = arith.constant 0 : i32
    %c0_i32_0 = arith.constant 0 : i32
    %c0_i32_1 = arith.constant 0 : i32
    return %c0_i32, %c0_i32_0 : i32, i32
  }
  func.func @transform_9(%arg0: i32) -> (i32, i32, i32) {
    %c0_i32 = arith.constant 0 : i32
    %c0_i32_0 = arith.constant 0 : i32
    %c0_i32_1 = arith.constant 0 : i32
    %c0_i32_2 = arith.constant 0 : i32
    return %c0_i32, %c0_i32_0, %c0_i32_1 : i32, i32, i32
  }
  func.func @transform_10(%arg0: i32) -> (i32, i32, i32) {
    %c0_i32 = arith.constant 0 : i32
    %c0_i32_0 = arith.constant 0 : i32
    %c0_i32_1 = arith.constant 0 : i32
    %c0_i32_2 = arith.constant 0 : i32
    return %c0_i32, %c0_i32_0, %c0_i32_1 : i32, i32, i32
  }
  func.func @transform_11(%arg0: i32) -> (i32, i32) {
    %c0_i32 = arith.constant 0 : i32
    %c0_i32_0 = arith.constant 0 : i32
    %c0_i32_1 = arith.constant 0 : i32
    return %c0_i32, %c0_i32_0 : i32, i32
  }
  func.func @transform_12(%arg0: i32) -> (i32, i32, i32) {
    %c0_i32 = arith.constant 0 : i32
    %c0_i32_0 = arith.constant 0 : i32
    %c0_i32_1 = arith.constant 0 : i32
    %c0_i32_2 = arith.constant 0 : i32
    return %c0_i32, %c0_i32_0, %c0_i32_1 : i32, i32, i32
  }
  func.func @transform_13(%arg0: i32) -> (i32, i32) {
    %c0_i32 = arith.constant 0 : i32
    %c0_i32_0 = arith.constant 0 : i32
    %c0_i32_1 = arith.constant 0 : i32
    return %c0_i32, %c0_i32_0 : i32, i32
  }
  func.func @transform_14(%arg0: i32) -> (i32, i32, i32) {
    %c0_i32 = arith.constant 0 : i32
    %c0_i32_0 = arith.constant 0 : i32
    %c0_i32_1 = arith.constant 0 : i32
    return %arg0, %c0_i32, %c0_i32_0 : i32, i32, i32
  }
}

</mosaic_0001>

<bundles_post_ra>
// kernel: discriminator_forward.1
= control target key start
LH: loop header
LB: loop body
LE: loop exit
PB: predicated region body
PF: predicated region fallthrough
CT: control target
= control target key end

     0   :  { %s7298_s0 = inlined_call_operand.vmem [shape: bf16[2,256,9], index: 0, kind: input, shape index: {}]   ;;  %s7299_s1 = inlined_call_operand.vmem [shape: bf16[9,16], index: 1, kind: input, shape index: {}]   ;;  %s7300_s2 = inlined_call_operand.hbm [shape: f32[3,16], index: 2, kind: input, shape index: {}]   ;;  %s7301_s3 = inlined_call_operand.vmem [shape: bf16[9,64,256], index: 3, kind: input, shape index: {}]   ;;  %s7302_s4 = inlined_call_operand.vmem [shape: bf16[9,16,32], index: 4, kind: input, shape index: {}]   ;;  %s7303_s5 = inlined_call_operand.hbm [shape: f32[3,32], index: 5, kind: input, shape index: {}]   ;;  %s7304_s6 = inlined_call_operand.hbm [shape: bf16[9,16,64], index: 6, kind: input, shape index: {}]   ;;  %s7305_s7 = inlined_call_operand.vmem [shape: bf16[9,32,64], index: 7, kind: input, shape index: {}]   ;;  %s7306_s8 = inlined_call_operand.hbm [shape: f32[3,64], index: 8, kind: input, shape index: {}]   ;;  %s7307_s9 = inlined_call_operand.hbm [shape: bf16[9,4,16], index: 9, kind: input, shape index: {}]   ;;  %s7308_s10 = inlined_call_operand.vmem [shape: bf16[9,64,128], index: 10, kind: input, shape index: {}]   ;;  %s7309_s11 = inlined_call_operand.vmem [shape: f32[3,128], index: 11, kind: input, shape index: {}]   ;;  %s7310_s12 = inlined_call_operand.hbm [shape: bf16[4,128,128], index: 12, kind: input, shape index: {}]   ;;  %s7311_s13 = inlined_call_operand.hbm [shape: f32[1,128], index: 13, kind: input, shape index: {}]   ;;  %s7312_s14 = inlined_call_operand.vmem [shape: f32[2,1,128], index: 14, kind: output, shape index: {}]  }
   0x1   :  { %7313 = sst [smem:[#allocation17_spill]] %s7300_s2 }
   0x2   :  { %7314 = sst [smem:[#allocation18_spill]] %s7303_s5 }
   0x3   :  { %7315 = sst [smem:[#allocation19_spill]] %s7304_s6 }
   0x4   :  { %7316 = sst [smem:[#allocation20_spill]] %s7306_s8 }
   0x5   :  { %19 = vsyncpa [#allocation3], 0 }
   0x6   :  { %20 = vsyncpa [#allocation5], 0 }
   0x7   :  { %21 = vsyncpa [#allocation8], 0 }
   0x8   :  { %22 = vsyncpa [#allocation11], 0  ;;  %s5901_s29 = smov 0  }
   0x9 LB: > { %s7317_s5 = sld [smem:[#allocation18_spill]]  ;;  %s5910_s17 = sadd.s32 4294967295, %s5812_s29   ;;  %s5812_s29 = sphi %s5901_s29, %s28_s29  }
   0xa   : > { %p4240_p0 = scmp.ge.s32.totalorder %s5812_s29, 1  ;;  %p358_p1 = scmp.lt.s32.totalorder %s5812_s29, 3 }
   0xb   : > { %p5542_p2 = scmp.eq.s32.totalorder %s5910_s17, 0  ;;  %s5814_s19 = smov [#allocation4]  }
   0xc   : > { %p5915_p3 = pnand %p4240_p0, %p358_p1  ;;  %s393_s20 = sshll.u32 %s5814_s19, 4  ;;  %s394_s20 = int_to_ptr.vmem [resolvable:$true] %s393_s20 }
   0xd   : > { %s7319_s8 = sld [smem:[#allocation20_spill]]  ;;  %s5815_s25 = smov [#allocation7]  }
   0xe   : > { %p5520_p4 = pneg %p5915_p3  ;;  %s422_s26 = sshll.u32 %s5815_s25, 4  ;;  %s423_s26 = int_to_ptr.vmem [resolvable:$true] %s422_s26 }
   0xf   : > { %s391_s16 = sshll.u32 %s7317_s5, 4  ;;  %s451_s30 = sshll.u32 %s7310_s12, 4  ;;  %s392_s16 = int_to_ptr.hbm [resolvable:$true] %s391_s16  ;;  %s452_s30 = int_to_ptr.hbm [resolvable:$true] %s451_s30 }
  0x10   : > { %p5926_p5 = pnand %p5542_p2, %p5520_p4  ;;  %s5816_s15 = smov [#allocation10]  }
  0x11   : > { %s453_s19 = sshll.u32 %s5816_s15, 4  ;;  %s7321_s2 = sld [smem:[#allocation17_spill]]  ;;  %s454_s19 = int_to_ptr.vmem [resolvable:$true] %s453_s19 }
  0x12   : > { %5526 = dma.hbm_to_vmem [thread:$0]  (!%p5926_p5), %s392_s16, 64, %s394_s20, [#allocation5]  }
  0x13   : > { %s420_s23 = sshll.u32 %s7319_s8, 4  ;;  %s5817_s25 = smov 64   ;;  %s421_s23 = int_to_ptr.hbm [resolvable:$true] %s420_s23 }
  0x14   : > { %5532 = dma.hbm_to_vmem [thread:$0]  (!%p5926_p5), %s421_s23, 64, %s423_s26, [#allocation8]  }
  0x15   : > { %s5818_s8 = smov 4   ;;  %s7322_s6 = sld [smem:[#allocation19_spill]] }
  0x16   : > { %5538 = dma.hbm_to_vmem [thread:$0]  (!%p5926_p5), %s452_s30, 4096, %s454_s19, [#allocation11], %s5817_s25, %s5817_s25, %s5818_s8  }
  0x17   : > { %s373_s5 = sshll.u32 %s7321_s2, 4  ;;  %s5819_s20 = smov [#allocation2]   ;;  %s374_s5 = int_to_ptr.hbm [resolvable:$true] %s373_s5 }
  0x18   : > { %s375_s23 = sshll.u32 %s5819_s20, 4  ;;  %s5820_s26 = smov [#allocation6]   ;;  %s376_s23 = int_to_ptr.vmem [resolvable:$true] %s375_s23 }
  0x19   : > { %5523 = dma.hbm_to_vmem [thread:$0]  (!%p5926_p5), %s374_s5, 64, %s376_s23, [#allocation3]  }
  0x1a   : > { %s404_s15 = sshll.u32 %s5820_s26, 4  ;;  %s431_s2 = sshll.u32 %s7307_s9, 4  ;;  %s405_s15 = int_to_ptr.vmem [resolvable:$true] %s404_s15  ;;  %s432_s2 = int_to_ptr.hbm [resolvable:$true] %s431_s2 }
  0x1b   : > { %s402_s16 = sshll.u32 %s7322_s6, 4  ;;  %s5821_s30 = smov [#allocation9]   ;;  %s403_s16 = int_to_ptr.hbm [resolvable:$true] %s402_s16 }
  0x1c   : > { %5529 = dma.hbm_to_vmem [thread:$0]  (!%p5926_p5), %s403_s16, 1152, %s405_s15, [#allocation5], %s5817_s25, %s5817_s25, %s5818_s8  }
  0x1d   : > { %s433_s19 = sshll.u32 %s5821_s30, 4  ;;  %s466_s20 = sshll.u32 %s7311_s13, 4  ;;  %s434_s19 = int_to_ptr.vmem [resolvable:$true] %s433_s19  ;;  %s467_s20 = int_to_ptr.hbm [resolvable:$true] %s466_s20 }
  0x1e   : > { %s5822_s6 = smov 32   ;;  %s5823_s5 = smov 2  }
  0x1f   : > { %5535 = dma.hbm_to_vmem [thread:$0]  (!%p5926_p5), %s432_s2, 288, %s434_s19, [#allocation8], %s5822_s6, %s5822_s6, %s5823_s5  }
  0x20   : > { %s5824_s23 = smov [#allocation12]   ;;  %489 = sbr.rel (%p5915_p3) target bundleno = 2715 (0xa9b), region = 76 }
  0x21   : > { %s468_s26 = sshll.u32 %s5824_s23, 4  ;;  %s469_s26 = int_to_ptr.vmem [resolvable:$true] %s468_s26 }
  0x22   : > { %5541 = dma.hbm_to_vmem [thread:$0]  (!%p5926_p5), %s467_s20, 16, %s469_s26, [#allocation11]  }
  0x25   : > { %5795 = dma.done.wait (%p5542_p2), [#allocation3], 64  }
  0x26   : > { %5797 = vsyncadd (%p5542_p2), [#allocation3], 4294967232 }
  0x27   : > { %5799 = dma.done.wait (%p5542_p2), [#allocation5], 1216  }
  0x28   : > { %5801 = vsyncadd (%p5542_p2), [#allocation5], 4294966080 }
  0x29   : > { %5803 = dma.done.wait (%p5542_p2), [#allocation8], 352  }
  0x2a   : > { %5805 = vsyncadd (%p5542_p2), [#allocation8], 4294966944 }
  0x2b   : > { %5807 = dma.done.wait (%p5542_p2), [#allocation11], 4112  }
  0x2c   : > { %5809 = vsyncadd (%p5542_p2), [#allocation11], 4294963184  ;;  %p564_p6 = scmp.lt.s32.totalorder %s5910_s17, 1  ;;  %vm743_vm0 = vcmask 1043456   ;;  %vm744_vm1 = vcmask 1044480   ;;  %v5825_v0 = vmov 65535  }
  0x2d   : > { %v745_v1 = vsel %vm743_vm0, 4294967295, %v5825_v0  ;;  %v4325_v2 = vld [vmem:[%s7299_s1] sm:$0xf]  ;;  %v5315_v3 = vld [vmem:[%s7299_s1] sm:$0x10]  ;;  %vm694_vm2 = vcmask 72704  }
  0x2e   : > { %s7324_s17 = smov (!%p564_p6, %s5910_s17), 1  ;;  %v746_v4 = vsel %vm744_vm1, %v745_v1, 0  ;;  %v4326_v5 = vor.u32 %v5315_v3, %v4325_v2  ;;  %v607_v15 = vld [vmem:[#allocation2] sm:$0x7] }
  0x2f   : > { %s5298_s2 = sshll.u32 %s7324_s17, 7  ;;  %v6009_v16 = vperm.slane %v607_v15, 0  ;;  %v6014_v21 = vperm.slane %v607_v15, 1  ;;  %v6018_v27 = vperm.slane %v607_v15, 2  ;;  %s571_s27 = scalar_lea.vmem %s7312_s14, %s7324_s17 }
  0x30   : > { %s5991_s15 = scalar_lea.vmem %s7298_s0, %s5298_s2  ;;  %v748_v6 = vand.u32 %v4326_v5, %v746_v4 }
  0x31   : > { %v5299_v7 = vld [vmem:[%s5991_s15] sm:$0xff]  ;;  %v5300_v8 = vld [vmem:[%s5991_s15 + $0x8] sm:$0xff]  ;;  %v5301_v9 = vld [vmem:[%s5991_s15 + $0x10] sm:$0xff] }
  0x32   : > { %757 = vmatpush.bf16.msra.mxu0 %v748_v6  ;;  %v5302_v10 = vld [vmem:[%s5991_s15 + $0x18] sm:$0xff]  ;;  %v5303_v11 = vld [vmem:[%s5991_s15 + $0x20] sm:$0xff]  ;;  %v5304_v12 = vld [vmem:[%s5991_s15 + $0x28] sm:$0xff] }
  0x33   : > { %v5305_v13 = vld [vmem:[%s5991_s15 + $0x30] sm:$0xff]  ;;  %v5306_v14 = vld [vmem:[%s5991_s15 + $0x38] sm:$0xff]  ;;  %v5307_v17 = vld [vmem:[%s5991_s15 + $0x40] sm:$0xff] }
  0x34   : > { %v5308_v30 = vld [vmem:[%s5991_s15 + $0x48] sm:$0xff]  ;;  %v5309_v44 = vld [vmem:[%s5991_s15 + $0x50] sm:$0xff]  ;;  %v5310_v58 = vld [vmem:[%s5991_s15 + $0x58] sm:$0xff] }
  0x35   : > { %4327 = vmatmul.msk.bf16.vlgmr.msra.gmra.mxu0 %vm694_vm2, %v5299_v7 }
  0x45   : > { %4328 = vmatmul.msk.bf16.gmra.mxu0 %vm694_vm2, %v5300_v8  ;;  %v5311_v8 = vld [vmem:[%s5991_s15 + $0x60] sm:$0xff] }
  0x55   : > { %4329 = vmatmul.msk.bf16.gmra.mxu0 %vm694_vm2, %v5301_v9 }
  0x65   : > { %4330 = vmatmul.msk.bf16.gmra.mxu0 %vm694_vm2, %v5302_v10 }
  0x75   : > { %4331 = vmatmul.msk.bf16.gmra.mxu0 %vm694_vm2, %v5303_v11 }
  0x85   : > { %4332 = vmatmul.msk.bf16.gmra.mxu0 %vm694_vm2, %v5304_v12 }
  0x95   : > { %4333 = vmatmul.msk.bf16.gmra.mxu0 %vm694_vm2, %v5305_v13 }
  0xa5   : > { %4334 = vmatmul.msk.bf16.gmra.mxu0 %vm694_vm2, %v5306_v14  ;;  %v5312_v14 = vld [vmem:[%s5991_s15 + $0x68] sm:$0xff] }
  0xb2   : > { %v759_v18 = vpop.f32.mrf.mxu0 }
  0xb3   : > { %v760_v19 = vadd.f32 %v759_v18, %v6009_v16  ;;  %v5313_v18 = vld [vmem:[%s5991_s15 + $0x70] sm:$0xff] }
  0xb5   : > { %4335 = vmatmul.msk.bf16.gmra.mxu0 %vm694_vm2, %v5307_v17  ;;  %v871_v20 = vmul.f32 0.2, %v760_v19  ;;  %vm839_vm3 = vcmp.ge.f32.partialorder %v760_v19, 0.0 }
  0xb7   : > { %v903_v23 = vsel %vm839_vm3, %v760_v19, %v871_v20 }
  0xb8   : > { %v936_v26 = vmul.f32 %v6014_v21, %v903_v23 }
  0xba   : > { %v761_v22 = vpop.f32.mrf.mxu0  ;;  %v969_v31 = vadd.f32 %v6018_v27, %v936_v26 }
  0xbb   : > { %v762_v24 = vadd.f32 %v761_v22, %v6009_v16  ;;  %v5314_v22 = vld [vmem:[%s5991_s15 + $0x78] sm:$0xff] }
  0xbd   : > { %vm840_vm4 = vcmp.ge.f32.partialorder %v762_v24, 0.0  ;;  %v872_v25 = vmul.f32 0.2, %v762_v24 }
  0xbf   : > { %v904_v28 = vsel %vm840_vm4, %v762_v24, %v872_v25 }
  0xc0   : > { %v937_v29 = vmul.f32 %v6014_v21, %v904_v28 }
  0xc2   : > { %v970_v32 = vadd.f32 %v6018_v27, %v937_v29  ;;  %v764_v33 = vpop.f32.mrf.mxu0 }
  0xc3   : > { %v765_v34 = vadd.f32 %v764_v33, %v6009_v16 }
  0xc4   : > { %v6025_v35 = vpack.c.bf16 %v970_v32, %v969_v31 }
  0xc5   : > { %4336 = vmatmul.msk.bf16.gmra.mxu0 %vm694_vm2, %v5308_v30  ;;  %v873_v36 = vmul.f32 0.2, %v765_v34  ;;  %vm841_vm5 = vcmp.ge.f32.partialorder %v765_v34, 0.0 }
  0xc7   : > { %v905_v38 = vsel %vm841_vm5, %v765_v34, %v873_v36 }
  0xc8   : > { %v938_v41 = vmul.f32 %v6014_v21, %v905_v38 }
  0xca   : > { %v766_v37 = vpop.f32.mrf.mxu0  ;;  %v971_v45 = vadd.f32 %v6018_v27, %v938_v41 }
  0xcb   : > { %v767_v39 = vadd.f32 %v766_v37, %v6009_v16 }
  0xcd   : > { %vm842_vm6 = vcmp.ge.f32.partialorder %v767_v39, 0.0  ;;  %v874_v40 = vmul.f32 0.2, %v767_v39 }
  0xcf   : > { %v906_v42 = vsel %vm842_vm6, %v767_v39, %v874_v40 }
  0xd0   : > { %v939_v43 = vmul.f32 %v6014_v21, %v906_v42 }
  0xd2   : > { %v972_v46 = vadd.f32 %v6018_v27, %v939_v43  ;;  %v769_v47 = vpop.f32.mrf.mxu0 }
  0xd3   : > { %v770_v48 = vadd.f32 %v769_v47, %v6009_v16 }
  0xd4   : > { %v6035_v49 = vpack.c.bf16 %v972_v46, %v971_v45 }
  0xd5   : > { %4337 = vmatmul.msk.bf16.gmra.mxu0 %vm694_vm2, %v5309_v44  ;;  %v875_v50 = vmul.f32 0.2, %v770_v48  ;;  %vm843_vm7 = vcmp.ge.f32.partialorder %v770_v48, 0.0 }
  0xd7   : > { %v907_v52 = vsel %vm843_vm7, %v770_v48, %v875_v50 }
  0xd8   : > { %v940_v55 = vmul.f32 %v6014_v21, %v907_v52 }
  0xda   : > { %v771_v51 = vpop.f32.mrf.mxu0  ;;  %v973_v59 = vadd.f32 %v6018_v27, %v940_v55 }
  0xdb   : > { %v772_v53 = vadd.f32 %v771_v51, %v6009_v16 }
  0xdd   : > { %vm844_vm8 = vcmp.ge.f32.partialorder %v772_v53, 0.0  ;;  %v876_v54 = vmul.f32 0.2, %v772_v53 }
  0xdf   : > { %v908_v56 = vsel %vm844_vm8, %v772_v53, %v876_v54 }
  0xe0   : > { %v941_v57 = vmul.f32 %v6014_v21, %v908_v56 }
  0xe2   : > { %v974_v60 = vadd.f32 %v6018_v27, %v941_v57  ;;  %v774_v61 = vpop.f32.mrf.mxu0 }
  0xe3   : > { %v775_v62 = vadd.f32 %v774_v61, %v6009_v16 }
  0xe4   : > { %v6045_v63 = vpack.c.bf16 %v974_v60, %v973_v59 }
  0xe5   : > { %4338 = vmatmul.msk.bf16.gmra.mxu0 %vm694_vm2, %v5310_v58  ;;  %v877_v0 = vmul.f32 0.2, %v775_v62  ;;  %vm845_vm9 = vcmp.ge.f32.partialorder %v775_v62, 0.0 }
  0xe7   : > { %v909_v2 = vsel %vm845_vm9, %v775_v62, %v877_v0 }
  0xe8   : > { %v942_v5 = vmul.f32 %v6014_v21, %v909_v2 }
  0xea   : > { %v776_v1 = vpop.f32.mrf.mxu0  ;;  %v975_v9 = vadd.f32 %v6018_v27, %v942_v5 }
  0xeb   : > { %v777_v3 = vadd.f32 %v776_v1, %v6009_v16 }
  0xed   : > { %vm846_vm10 = vcmp.ge.f32.partialorder %v777_v3, 0.0  ;;  %v878_v4 = vmul.f32 0.2, %v777_v3 }
  0xef   : > { %v910_v6 = vsel %vm846_vm10, %v777_v3, %v878_v4 }
  0xf0   : > { %v943_v7 = vmul.f32 %v6014_v21, %v910_v6 }
  0xf2   : > { %v976_v10 = vadd.f32 %v6018_v27, %v943_v7  ;;  %v779_v11 = vpop.f32.mrf.mxu0 }
  0xf3   : > { %v780_v42 = vadd.f32 %v779_v11, %v6009_v16 }
  0xf4   : > { %v6054_v12 = vpack.c.bf16 %v976_v10, %v975_v9 }
  0xf5   : > { %4339 = vmatmul.msk.bf16.gmra.mxu0 %vm694_vm2, %v5311_v8  ;;  %v879_v55 = vmul.f32 0.2, %v780_v42 }
  0xfa   : > { %v781_v13 = vpop.f32.mrf.mxu0 }
  0xfb   : > { %v782_v37 = vadd.f32 %v781_v13, %v6009_v16 }
  0xfd   : > { %v880_v48 = vmul.f32 0.2, %v782_v37  ;;  %vm848_vm1 = vcmp.ge.f32.partialorder %v782_v37, 0.0 }
  0xff   : > { %v912_v60 = vsel %vm848_vm1, %v782_v37, %v880_v48 }
 0x100   : > { %v945_v1 = vmul.f32 %v6014_v21, %v912_v60 }
 0x102   : > { %v784_v15 = vpop.f32.mrf.mxu0  ;;  %v978_v7 = vadd.f32 %v6018_v27, %v945_v1 }
 0x103   : > { %v785_v32 = vadd.f32 %v784_v15, %v6009_v16 }
 0x105   : > { %4340 = vmatmul.msk.bf16.gmra.mxu0 %vm694_vm2, %v5312_v14  ;;  %v881_v43 = vmul.f32 0.2, %v785_v32  ;;  %vm849_vm0 = vcmp.ge.f32.partialorder %v785_v32, 0.0 }
 0x107   : > { %v913_v56 = vsel %vm849_vm0, %v785_v32, %v881_v43  ;;  %v5357_v43 = vld [vmem:[%s7301_s3 + $0x124] sm:$0xf0] }
 0x108   : > { %v946_v61 = vmul.f32 %v6014_v21, %v913_v56 }
 0x10a   : > { %v786_v17 = vpop.f32.mrf.mxu0  ;;  %v979_v5 = vadd.f32 %v6018_v27, %v946_v61 }
 0x10b   : > { %v787_v29 = vadd.f32 %v786_v17, %v6009_v16 }
 0x10d   : > { %v882_v38 = vmul.f32 0.2, %v787_v29  ;;  %vm850_vm15 = vcmp.ge.f32.partialorder %v787_v29, 0.0 }
 0x10f   : > { %v914_v50 = vsel %vm850_vm15, %v787_v29, %v882_v38  ;;  %v4353_v29 = vld [vmem:[%s7301_s3 + $0x10] sm:$0xf]  ;;  %v4361_v38 = vld [vmem:[%s7301_s3 + $0x20] sm:$0xf] }
 0x110   : > { %v947_v57 = vmul.f32 %v6014_v21, %v914_v50 }
 0x112   : > { %v789_v19 = vpop.f32.mrf.mxu0  ;;  %v980_v2 = vadd.f32 %v6018_v27, %v947_v57  ;;  %v4385_v57 = vld [vmem:[%s7301_s3 + $0x40] sm:$0xf] }
 0x113   : > { %v790_v26 = vadd.f32 %v789_v19, %v6009_v16  ;;  %v4345_v19 = vld [vmem:[%s7301_s3] sm:$0xf] }
 0x114   : > { %v6100_v8 = vpack.c.bf16 %v980_v2, %v979_v5 }
 0x115   : > { %4341 = vmatmul.msk.bf16.gmra.mxu0 %vm694_vm2, %v5313_v18  ;;  %v883_v33 = vmul.f32 0.2, %v790_v26  ;;  %vm851_vm13 = vcmp.ge.f32.partialorder %v790_v26, 0.0 }
 0x117   : > { %v915_v44 = vsel %vm851_vm13, %v790_v26, %v883_v33  ;;  %v4551_v33 = vld [vmem:[%s7301_s3 + $0x110] sm:$0xf] }
 0x118   : > { %v948_v51 = vmul.f32 %v6014_v21, %v915_v44 }
 0x11a   : > { %v791_v20 = vpop.f32.mrf.mxu0  ;;  %v981_v62 = vadd.f32 %v6018_v27, %v948_v51 }
 0x11b   : > { %v792_v25 = vadd.f32 %v791_v20, %v6009_v16  ;;  %v5317_v20 = vld [vmem:[%s7301_s3 + $0x4] sm:$0xf0] }
 0x11d   : > { %v884_v30 = vmul.f32 0.2, %v792_v25  ;;  %vm852_vm12 = vcmp.ge.f32.partialorder %v792_v25, 0.0 }
 0x11f   : > { %v916_v39 = vsel %vm852_vm12, %v792_v25, %v884_v30  ;;  %v5353_v25 = vld [vmem:[%s7301_s3 + $0x104] sm:$0xf0]  ;;  %v5319_v30 = vld [vmem:[%s7301_s3 + $0x14] sm:$0xf0] }
 0x120   : > { %v949_v46 = vmul.f32 %v6014_v21, %v916_v39  ;;  %v5321_v39 = vld [vmem:[%s7301_s3 + $0x24] sm:$0xf0] }
 0x122   : > { %v794_v23 = vpop.f32.mrf.mxu0  ;;  %v982_v58 = vadd.f32 %v6018_v27, %v949_v46  ;;  %v4369_v46 = vld [vmem:[%s7301_s3 + $0x30] sm:$0xf] }
 0x123   : > { %v795_v24 = vadd.f32 %v794_v23, %v6009_v16 }
 0x124   : > { %v6090_v3 = vpack.c.bf16 %v982_v58, %v981_v62  ;;  %v5326_v58 = vld [vmem:[%s7301_s3 + $0x44] sm:$0xf0] }
 0x125   : > { %4342 = vmatmul.msk.bf16.gmra.mxu0 %vm694_vm2, %v5314_v22  ;;  %v885_v28 = vmul.f32 0.2, %v795_v24  ;;  %vm853_vm11 = vcmp.ge.f32.partialorder %v795_v24, 0.0  ;;  %vm847_vm2 = vcmp.ge.f32.partialorder %v780_v42, 0.0  ;;  %v4346_v22 = vor.u32 %v5317_v20, %v4345_v19 }
 0x126   : > { %v911_v0 = vsel %vm847_vm2, %v780_v42, %v879_v55  ;;  %v4559_v42 = vld [vmem:[%s7301_s3 + $0x120] sm:$0xf]  ;;  %v4386_v62 = vor.u32 %v5326_v58, %v4385_v57 }
 0x127   : > { %v917_v34 = vsel %vm853_vm11, %v795_v24, %v885_v28  ;;  %v944_v4 = vmul.f32 %v6014_v21, %v911_v0  ;;  %v4543_v24 = vld [vmem:[%s7301_s3 + $0x100] sm:$0xf]  ;;  %v4560_v44 = vor.u32 %v5357_v43, %v4559_v42 }
 0x128   : > { %v950_v41 = vmul.f32 %v6014_v21, %v917_v34  ;;  %v4544_v26 = vor.u32 %v5353_v25, %v4543_v24  ;;  %v5355_v34 = vld [vmem:[%s7301_s3 + $0x114] sm:$0xf0] }
 0x129   : > { %v977_v9 = vadd.f32 %v6018_v27, %v944_v4 }
 0x12a   : > { %v796_v31 = vpop.f32.mrf.mxu0  ;;  %v983_v52 = vadd.f32 %v6018_v27, %v950_v41 }
 0x12b   : > { %v797_v36 = vadd.f32 %v796_v31, %v6009_v16  ;;  %v6106_v10 = vpack.c.bf16 %v978_v7, %v977_v9  ;;  %v4354_v31 = vor.u32 %v5319_v30, %v4353_v29 }
 0x12d   : > { %vm854_vm14 = vcmp.ge.f32.partialorder %v797_v36, 0.0  ;;  %v886_v40 = vmul.f32 0.2, %v797_v36 }
 0x12f   : > { %v918_v45 = vsel %vm854_vm14, %v797_v36, %v886_v40  ;;  %v4552_v36 = vor.u32 %v5355_v34, %v4551_v33  ;;  %v4362_v40 = vor.u32 %v5321_v39, %v4361_v38 }
 0x130   : > { %v951_v47 = vmul.f32 %v6014_v21, %v918_v45 }
 0x132   : > { %v984_v53 = vadd.f32 %v6018_v27, %v951_v47  ;;  %v6077_v54 = vpop.f32.mrf.mxu0  ;;  %v5323_v47 = vld [vmem:[%s7301_s3 + $0x34] sm:$0xf0] }
 0x133   : > { %v4370_v48 = vor.u32 %v5323_v47, %v4369_v46  ;;  %v4393_v47 = vld [vmem:[%s7301_s3 + $0x50] sm:$0xf] }
 0x134   : > { %v6081_v59 = vpack.c.bf16 %v984_v53, %v983_v52  ;;  %v4567_v52 = vld [vmem:[%s7301_s3 + $0x130] sm:$0xf]  ;;  %v5359_v53 = vld [vmem:[%s7301_s3 + $0x134] sm:$0xf0] }
 0x135   : > { %v4568_v56 = vor.u32 %v5359_v53, %v4567_v52 }
 0x136   : > { %1065 = vmatpush.bf16.msra.mxu1 %v6081_v59  ;;  %1178 = vmatpush.bf16.msra.mxu3 %v6081_v59 }
 0x137   : > { %1725 = vmatpush.bf16.msrb.mxu0 %v6081_v59 }
 0x13a   : > { %v6094_v6 = vpop.f32.mrf.mxu0  ;;  %1066 = vmatpush.bf16.msra.mxu1 %v6090_v3  ;;  %1179 = vmatpush.bf16.msra.mxu3 %v6090_v3 }
 0x13b   : > { %1726 = vmatpush.bf16.msrb.mxu0 %v6090_v3 }
 0x13e   : > { %1067 = vmatpush.bf16.msra.mxu1 %v6100_v8  ;;  %1180 = vmatpush.bf16.msra.mxu3 %v6100_v8 }
 0x13f   : > { %1727 = vmatpush.bf16.msrb.mxu0 %v6100_v8 }
 0x142   : > { %v6108_v11 = vpop.f32.mrf.mxu0  ;;  %1068 = vmatpush.bf16.msra.mxu1 %v6106_v10  ;;  %1181 = vmatpush.bf16.msra.mxu3 %v6106_v10 }
 0x143   : > { %1728 = vmatpush.bf16.msrb.mxu0 %v6106_v10 }
 0x146   : > { %1069 = vmatpush.bf16.msra.mxu1 %v6054_v12  ;;  %1182 = vmatpush.bf16.msra.mxu3 %v6054_v12 }
 0x147   : > { %1729 = vmatpush.bf16.msrb.mxu0 %v6054_v12 }
 0x14a   : > { %v6116_v13 = vpop.f32.mrf.mxu0  ;;  %1070 = vmatpush.bf16.msra.mxu1 %v6045_v63  ;;  %1183 = vmatpush.bf16.msra.mxu3 %v6045_v63 }
 0x14b   : > { %1730 = vmatpush.bf16.msrb.mxu0 %v6045_v63  ;;  %v807_v58 = vadd.f32 %v6116_v13, %v6009_v16 }
 0x14d   : > { %vm858_vm15 = vcmp.ge.f32.partialorder %v807_v58, 0.0 }
 0x14e   : > { %1071 = vmatpush.bf16.msra.mxu1 %v6035_v49  ;;  %1184 = vmatpush.bf16.msra.mxu3 %v6035_v49 }
 0x14f   : > { %1731 = vmatpush.bf16.msrb.mxu0 %v6035_v49 }
 0x152   : > { %v6124_v14 = vpop.f32.mrf.mxu0  ;;  %1072 = vmatpush.bf16.msra.mxu1 %v6025_v35  ;;  %1185 = vmatpush.bf16.msra.mxu3 %v6025_v35 }
 0x153   : > { %1732 = vmatpush.bf16.msrb.mxu0 %v6025_v35 }
 0x155   : > { %1073 = vmatmul.bf16.vlgmr.msra.gmra.mxu1 %v4346_v22  ;;  %1186 = vmatmul.bf16.vlgmr.msra.gmra.mxu3 %v4386_v62 }
 0x156   : > { %1733 = vmatmul.bf16.vlgmr.msrb.gmra.mxu0 %v4544_v26 }
 0x15a   : > { %v6129_v15 = vpop.f32.mrf.mxu0 }
 0x162   : > { %v6131_v17 = vpop.f32.mrf.mxu0 }
 0x163   : > { %v815_v39 = vadd.f32 %v6131_v17, %v6009_v16 }
 0x165   : > { %1078 = vmatmul.bf16.gmra.mxu1 %v4354_v31  ;;  %vm861_vm12 = vcmp.ge.f32.partialorder %v815_v39, 0.0 }
 0x166   : > { %1738 = vmatmul.bf16.gmra.mxu0 %v4552_v36 }
 0x16a   : > { %v6133_v18 = vpop.f32.mrf.mxu0 }
 0x172   : > { %v819_v23 = vpop.f32.mrf.mxu0 }
 0x173   : > { %v820_v26 = vadd.f32 %v819_v23, %v6009_v16 }
 0x175   : > { %1083 = vmatmul.bf16.gmra.mxu1 %v4362_v40  ;;  %v895_v40 = vmul.f32 0.2, %v820_v26  ;;  %vm863_vm10 = vcmp.ge.f32.partialorder %v820_v26, 0.0 }
 0x176   : > { %1743 = vmatmul.bf16.gmra.mxu0 %v4560_v44  ;;  %v812_v44 = vadd.f32 %v6129_v15, %v6009_v16  ;;  %v810_v15 = vadd.f32 %v6124_v14, %v6009_v16 }
 0x177   : > { %v927_v52 = vsel %vm863_vm10, %v820_v26, %v895_v40 }
 0x178   : > { %vm860_vm13 = vcmp.ge.f32.partialorder %v812_v44, 0.0  ;;  %v960_v14 = vmul.f32 %v6014_v21, %v927_v52  ;;  %vm859_vm14 = vcmp.ge.f32.partialorder %v810_v15, 0.0  ;;  %v4387_v52 = vld [vmem:[%s7301_s3 + $0x48] sm:$0xf0] }
 0x17a   : > { %v821_v28 = vpop.f32.mrf.mxu0 }
 0x17b   : > { %v822_v19 = vadd.f32 %v821_v28, %v6009_v16  ;;  %v817_v28 = vadd.f32 %v6133_v18, %v6009_v16 }
 0x17d   : > { %v896_v34 = vmul.f32 0.2, %v822_v19  ;;  %vm864_vm9 = vcmp.ge.f32.partialorder %v822_v19, 0.0  ;;  %vm862_vm11 = vcmp.ge.f32.partialorder %v817_v28, 0.0 }
 0x17f   : > { %v928_v46 = vsel %vm864_vm9, %v822_v19, %v896_v34 }
 0x182   : > { %v824_v32 = vpop.f32.mrf.mxu0 }
 0x183   : > { %v825_v4 = vadd.f32 %v824_v32, %v6009_v16 }
 0x185   : > { %1088 = vmatmul.bf16.gmra.mxu1 %v4370_v48  ;;  %v897_v29 = vmul.f32 0.2, %v825_v4  ;;  %vm865_vm8 = vcmp.ge.f32.partialorder %v825_v4, 0.0 }
 0x186   : > { %1748 = vmatmul.bf16.gmra.mxu0 %v4568_v56 }
 0x18a   : > { %v826_v37 = vpop.f32.mrf.mxu0 }
 0x18b   : > { %v827_v0 = vadd.f32 %v826_v37, %v6009_v16 }
 0x18d   : > { %v898_v20 = vmul.f32 0.2, %v827_v0  ;;  %vm866_vm7 = vcmp.ge.f32.partialorder %v827_v0, 0.0 }
 0x18f   : > { %v930_v36 = vsel %vm866_vm7, %v827_v0, %v898_v20  ;;  %v805_v0 = vadd.f32 %v6108_v11, %v6009_v16  ;;  %v993_v11 = vadd.f32 %v6018_v27, %v960_v14 }
 0x190   : > { %v963_v42 = vmul.f32 %v6014_v21, %v930_v36 }
 0x191   : > { %vm857_vm0 = vcmp.ge.f32.partialorder %v805_v0, 0.0 }
 0x192   : > { %v829_v41 = vpop.f32.mrf.mxu0  ;;  %v996_v56 = vadd.f32 %v6018_v27, %v963_v42 }
 0x193   : > { %v830_v60 = vadd.f32 %v829_v41, %v6009_v16  ;;  %v929_v41 = vsel %vm865_vm8, %v825_v4, %v897_v29 }
 0x194   : > { %v962_v17 = vmul.f32 %v6014_v21, %v929_v41 }
 0x195   : > { %v899_v5 = vmul.f32 0.2, %v830_v60  ;;  %vm867_vm5 = vcmp.ge.f32.partialorder %v830_v60, 0.0 }
 0x196   : > { %v995_v62 = vadd.f32 %v6018_v27, %v962_v17 }
 0x197   : > { %v931_v30 = vsel %vm867_vm5, %v830_v60, %v899_v5  ;;  %v892_v60 = vmul.f32 0.2, %v812_v44 }
 0x198   : > { %v964_v37 = vmul.f32 %v6014_v21, %v931_v30  ;;  %v6243_v5 = vpack.c.bf16 %v996_v56, %v995_v62  ;;  %v5333_v56 = vld [vmem:[%s7302_s4 + $0x8] sm:$0xff]  ;;  %v4409_v62 = vld [vmem:[%s7301_s3 + $0x70] sm:$0xf] }
 0x199   : > { %v924_v19 = vsel %vm860_vm13, %v812_v44, %v892_v60  ;;  %vm2650_vm13 = vcmask 261120  }
 0x19a   : > { %v831_v45 = vpop.f32.mrf.mxu0  ;;  %v997_v48 = vadd.f32 %v6018_v27, %v964_v37 }
 0x19b   : > { %v832_v55 = vadd.f32 %v831_v45, %v6009_v16  ;;  %v894_v45 = vmul.f32 0.2, %v817_v28 }
 0x19d   : > { %v900_v1 = vmul.f32 0.2, %v832_v55  ;;  %vm868_vm4 = vcmp.ge.f32.partialorder %v832_v55, 0.0 }
 0x19f   : > { %v932_v22 = vsel %vm868_vm4, %v832_v55, %v900_v1  ;;  %v961_v55 = vmul.f32 %v6014_v21, %v928_v46  ;;  %v891_v1 = vmul.f32 0.2, %v810_v15 }
 0x1a0   : > { %v965_v32 = vmul.f32 %v6014_v21, %v932_v22  ;;  %v800_v22 = vadd.f32 %v6077_v54, %v6009_v16 }
 0x1a1   : > { %v994_v4 = vadd.f32 %v6018_v27, %v961_v55 }
 0x1a2   : > { %v834_v50 = vpop.f32.mrf.mxu0  ;;  %v998_v43 = vadd.f32 %v6018_v27, %v965_v32  ;;  %vm855_vm2 = vcmp.ge.f32.partialorder %v800_v22, 0.0 }
 0x1a3   : > { %v835_v51 = vadd.f32 %v834_v50, %v6009_v16  ;;  %v5328_v50 = vld [vmem:[%s7301_s3 + $0x54] sm:$0xf0]  ;;  %v6256_v29 = vpack.c.bf16 %v994_v4, %v993_v11  ;;  %v5327_v4 = vld [vmem:[%s7301_s3 + $0x54] sm:$0xf]  ;;  %v4363_v11 = vld [vmem:[%s7301_s3 + $0x28] sm:$0xf0] }
 0x1a4   : > { %v4394_v53 = vor.u32 %v5328_v50, %v4393_v47  ;;  %v6229_v57 = vpack.c.bf16 %v998_v43, %v997_v48  ;;  %v5316_v50 = vld [vmem:[%s7301_s3 + $0x4] sm:$0xf] }
 0x1a5   : > { %v901_v61 = vmul.f32 0.2, %v835_v51  ;;  %vm869_vm3 = vcmp.ge.f32.partialorder %v835_v51, 0.0 }
 0x1a6   : > { %1191 = vmatmul.bf16.gmra.mxu3 %v4394_v53  ;;  %v4595_v53 = vld [vmem:[%s7301_s3 + $0x148] sm:$0xf0] }
 0x1a7   : > { %v933_v7 = vsel %vm869_vm3, %v835_v51, %v901_v61  ;;  %v893_v51 = vmul.f32 0.2, %v815_v39  ;;  %v926_v61 = vsel %vm862_vm11, %v817_v28, %v894_v45  ;;  %vm1249_vm3 = vcmask 130048  }
 0x1a8   : > { %v966_v25 = vmul.f32 %v6014_v21, %v933_v7  ;;  %v959_v13 = vmul.f32 %v6014_v21, %v926_v61  ;;  %v802_v7 = vadd.f32 %v6094_v6, %v6009_v16  ;;  %v957_v6 = vmul.f32 %v6014_v21, %v924_v19 }
 0x1aa   : > { %v836_v2 = vpop.f32.mrf.mxu0  ;;  %v999_v38 = vadd.f32 %v6018_v27, %v966_v25  ;;  %v923_v25 = vsel %vm859_vm14, %v810_v15, %v891_v1  ;;  %v992_v26 = vadd.f32 %v6018_v27, %v959_v13  ;;  %v888_v30 = vmul.f32 0.2, %v802_v7  ;;  %v4355_v13 = vld [vmem:[%s7301_s3 + $0x18] sm:$0xf0] }
 0x1ab   : > { %v837_v9 = vadd.f32 %v836_v2, %v6009_v16  ;;  %v925_v2 = vsel %vm861_vm12, %v815_v39, %v893_v51  ;;  %vm856_vm1 = vcmp.ge.f32.partialorder %v802_v7, 0.0  ;;  %v956_v32 = vmul.f32 %v6014_v21, %v923_v25  ;;  %v5325_v51 = vld [vmem:[%s7301_s3 + $0x44] sm:$0xf] }
 0x1ac   : > { %v958_v20 = vmul.f32 %v6014_v21, %v925_v2  ;;  %v887_v16 = vmul.f32 0.2, %v800_v22  ;;  %v990_v34 = vadd.f32 %v6018_v27, %v957_v6  ;;  %v920_v37 = vsel %vm856_vm1, %v802_v7, %v888_v30  ;;  %v5318_v2 = vld [vmem:[%s7301_s3 + $0x14] sm:$0xf]  ;;  %v4395_v7 = vld [vmem:[%s7301_s3 + $0x58] sm:$0xf0] }
 0x1ad   : > { %vm870_vm6 = vcmp.ge.f32.partialorder %v837_v9, 0.0  ;;  %v902_v24 = vmul.f32 0.2, %v837_v9  ;;  %v989_v40 = vadd.f32 %v6018_v27, %v956_v32  ;;  %v953_v43 = vmul.f32 %v6014_v21, %v920_v37  ;;  %v4371_v30 = vld [vmem:[%s7301_s3 + $0x38] sm:$0xf0] }
 0x1ae   : > { %v919_v42 = vsel %vm855_vm2, %v800_v22, %v887_v16  ;;  %v4390_v61 = vor.u32 %v5325_v51, %v4387_v52  ;;  %v4398_v19 = vor.u32 %v5327_v4, %v4395_v7  ;;  %v5329_v22 = vld [vmem:[%s7301_s3 + $0x64] sm:$0xf]  ;;  %v4411_v32 = vld [vmem:[%s7301_s3 + $0x78] sm:$0xf0]  ;;  %v5335_v37 = vld [vmem:[%s7301_s3 + $0x84] sm:$0xf0] }
 0x1af   : > { %v934_v31 = vsel %vm870_vm6, %v837_v9, %v902_v24  ;;  %v890_v9 = vmul.f32 0.2, %v807_v58  ;;  %v889_v24 = vmul.f32 0.2, %v805_v0  ;;  %v6280_v45 = vpack.c.bf16 %v990_v34, %v989_v40  ;;  %v4443_v34 = vld [vmem:[%s7301_s3 + $0x80] sm:$0xf] }
 0x1b0   : > { %v967_v33 = vmul.f32 %v6014_v21, %v934_v31  ;;  %v952_v46 = vmul.f32 %v6014_v21, %v919_v42  ;;  %v986_v17 = vadd.f32 %v6018_v27, %v953_v43  ;;  %v5337_v40 = vld [vmem:[%s7301_s3 + $0x94] sm:$0xf0]  ;;  %v5324_v52 = vld [vmem:[%s7302_s4] sm:$0xff]  ;;  %v4501_v7 = vld [vmem:[%s7301_s3 + $0xd0] sm:$0xf]  ;;  %vm2584_vm12 = vcmask 523264  }
 0x1b1   : > { %v922_v31 = vsel %vm858_vm15, %v807_v58, %v890_v9  ;;  %v921_v54 = vsel %vm857_vm0, %v805_v0, %v889_v24  ;;  %v5378_v58 = vld [vmem:[%s7302_s4 + $0x30] sm:$0xff]  ;;  %v5332_v0 = vld [vmem:[%s7301_s3 + $0x74] sm:$0xf0]  ;;  %v4358_v9 = vor.u32 %v5318_v2, %v4355_v13  ;;  %v4403_v24 = vld [vmem:[%s7301_s3 + $0x68] sm:$0xf0]  ;;  %1316 = vmatpush.bf16.msrb.mxu3 %v5324_v52 }
 0x1b2   : > { %v1000_v23 = vadd.f32 %v6018_v27, %v967_v33  ;;  %v991_v33 = vadd.f32 %v6018_v27, %v958_v20  ;;  %v955_v28 = vmul.f32 %v6014_v21, %v922_v31  ;;  %v954_v39 = vmul.f32 %v6014_v21, %v921_v54  ;;  %v4347_v21 = vld [vmem:[%s7301_s3 + $0x8] sm:$0xf0]  ;;  %v5320_v20 = vld [vmem:[%s7301_s3 + $0x24] sm:$0xf]  ;;  %v5331_v31 = vld [vmem:[%s7301_s3 + $0x74] sm:$0xf] }
 0x1b3   : > { %v985_v15 = vadd.f32 %v6018_v27, %v952_v46  ;;  %v4350_v60 = vor.u32 %v5316_v50, %v4347_v21  ;;  %v4410_v1 = vor.u32 %v5332_v0, %v4409_v62  ;;  %v4366_v25 = vor.u32 %v5320_v20, %v4363_v11  ;;  %v5339_v46 = vld [vmem:[%s7301_s3 + $0xa4] sm:$0xf0]  ;;  %v4467_v50 = vld [vmem:[%s7301_s3 + $0xb0] sm:$0xf]  ;;  %v5350_v52 = vld [vmem:[%s7301_s3 + $0xf4] sm:$0xf0] }
 0x1b4   : > { %v6209_v18 = vpack.c.bf16 %v1000_v23, %v999_v38  ;;  %v6265_v36 = vpack.c.bf16 %v992_v26, %v991_v33  ;;  %v4401_v38 = vld [vmem:[%s7301_s3 + $0x60] sm:$0xf]  ;;  %v5330_v23 = vld [vmem:[%s7301_s3 + $0x64] sm:$0xf0]  ;;  %v988_v44 = vadd.f32 %v6018_v27, %v955_v28  ;;  %v987_v47 = vadd.f32 %v6018_v27, %v954_v39  ;;  %v5361_v27 = vld [vmem:[%s7301_s3 + $0x144] sm:$0xf] }
 0x1b5   : > { %v4402_v41 = vor.u32 %v5330_v23, %v4401_v38  ;;  %v6312_v55 = vpack.c.bf16 %v986_v17, %v985_v15  ;;  %v4598_v14 = vor.u32 %v5361_v27, %v4595_v53  ;;  %v4406_v6 = vor.u32 %v5329_v22, %v4403_v24  ;;  %v5322_v26 = vld [vmem:[%s7301_s3 + $0x34] sm:$0xf]  ;;  %v4451_v39 = vld [vmem:[%s7301_s3 + $0x90] sm:$0xf]  ;;  %v5341_v15 = vld [vmem:[%s7301_s3 + $0xb4] sm:$0xf0] }
 0x1b6   : > { %1094 = vmatpush.bf16.msra.mxu2 %v6209_v18  ;;  %1207 = vmatpush.bf16.msrb.mxu1 %v6209_v18  ;;  %v6288_v48 = vpack.c.bf16 %v988_v44, %v987_v47  ;;  %v4374_v33 = vor.u32 %v5322_v26, %v4371_v30  ;;  %v4414_v16 = vor.u32 %v5331_v31, %v4411_v32  ;;  %v4459_v44 = vld [vmem:[%s7301_s3 + $0xa0] sm:$0xf] }
 0x1b7   : > { %1923 = vmatpush.bf16.msra.mxu0 %v6209_v18  ;;  %1196 = vmatmul.bf16.gmra.mxu3 %v4402_v41  ;;  %v4444_v38 = vor.u32 %v5335_v37, %v4443_v34  ;;  %v4452_v41 = vor.u32 %v5337_v40, %v4451_v39  ;;  %v4460_v47 = vor.u32 %v5339_v46, %v4459_v44  ;;  %v5369_v44 = vld [vmem:[%s7302_s4 + $0x28] sm:$0xff] }
 0x1b8   : > { %v4468_v51 = vor.u32 %v5341_v15, %v4467_v50 }
 0x1ba   : > { %1095 = vmatpush.bf16.msra.mxu2 %v6229_v57  ;;  %1208 = vmatpush.bf16.msrb.mxu1 %v6229_v57 }
 0x1bb   : > { %1924 = vmatpush.bf16.msra.mxu0 %v6229_v57 }
 0x1be   : > { %1096 = vmatpush.bf16.msra.mxu2 %v6243_v5  ;;  %1209 = vmatpush.bf16.msrb.mxu1 %v6243_v5 }
 0x1bf   : > { %1925 = vmatpush.bf16.msra.mxu0 %v6243_v5 }
 0x1c2   : > { %1097 = vmatpush.bf16.msra.mxu2 %v6256_v29  ;;  %1210 = vmatpush.bf16.msrb.mxu1 %v6256_v29 }
 0x1c3   : > { %1926 = vmatpush.bf16.msra.mxu0 %v6256_v29 }
 0x1c6   : > { %1098 = vmatpush.bf16.msra.mxu2 %v6265_v36  ;;  %1211 = vmatpush.bf16.msrb.mxu1 %v6265_v36 }
 0x1c7   : > { %1927 = vmatpush.bf16.msra.mxu0 %v6265_v36  ;;  %1201 = vmatmul.bf16.gmra.mxu3 %v4410_v1 }
 0x1ca   : > { %1099 = vmatpush.bf16.msra.mxu2 %v6280_v45  ;;  %1212 = vmatpush.bf16.msrb.mxu1 %v6280_v45 }
 0x1cb   : > { %1928 = vmatpush.bf16.msra.mxu0 %v6280_v45 }
 0x1ce   : > { %1100 = vmatpush.bf16.msra.mxu2 %v6288_v48  ;;  %1213 = vmatpush.bf16.msrb.mxu1 %v6288_v48 }
 0x1cf   : > { %1929 = vmatpush.bf16.msra.mxu0 %v6288_v48 }
 0x1d2   : > { %1101 = vmatpush.bf16.msra.mxu2 %v6312_v55  ;;  %1214 = vmatpush.bf16.msrb.mxu1 %v6312_v55  ;;  %v1074_v54 = vpop.f32.mrf.mxu1 }
 0x1d3   : > { %1930 = vmatpush.bf16.msra.mxu0 %v6312_v55 }
 0x1d5   : > { %1102 = vmatmul.bf16.vlgmr.msra.gmra.mxu2 %v4350_v60  ;;  %1215 = vmatmul.bf16.vlgmr.msrb.gmra.mxu1 %v4390_v61  ;;  %v5344_v60 = vld [vmem:[%s7301_s3 + $0xc4] sm:$0xf0] }
 0x1d6   : > { %1387 = vmatpush.bf16.msra.mxu1 %v6081_v59  ;;  %1269 = vmatpush.bf16.msrb.mxu2 %v5333_v56 }
 0x1d7   : > { %2153 = vmatpush.bf16.msrb.mxu0 %v5378_v58  ;;  %v4493_v58 = vld [vmem:[%s7301_s3 + $0xc0] sm:$0xf] }
 0x1d8   : > { %1931 = vmatmul.bf16.vlgmr.msra.gmra.mxu0 %v4598_v14  ;;  %v1187_v27 = vpop.f32.mrf.mxu3  ;;  %v4494_v61 = vor.u32 %v5344_v60, %v4493_v58 }
 0x1da   : > { %1416 = vmatpush.bf16.msra.mxu2 %v6209_v18  ;;  %1388 = vmatpush.bf16.msra.mxu1 %v6090_v3  ;;  %v1076_v28 = vpop.f32.mrf.mxu1 }
 0x1db   : > { %2401 = vmatpush.bf16.msra.mxu0 %v6081_v59 }
 0x1de   : > { %1417 = vmatpush.bf16.msra.mxu2 %v6229_v57  ;;  %1389 = vmatpush.bf16.msra.mxu1 %v6100_v8 }
 0x1df   : > { %2402 = vmatpush.bf16.msra.mxu0 %v6090_v3 }
 0x1e0   : > { %v1189_v56 = vpop.f32.mrf.mxu3 }
 0x1e2   : > { %1418 = vmatpush.bf16.msra.mxu2 %v6243_v5  ;;  %1390 = vmatpush.bf16.msra.mxu1 %v6106_v10  ;;  %v6404_v23 = vpop.f32.mrf.mxu1 }
 0x1e3   : > { %2403 = vmatpush.bf16.msra.mxu0 %v6100_v8 }
 0x1e5   : > { %1107 = vmatmul.bf16.gmra.mxu2 %v4358_v9  ;;  %1220 = vmatmul.bf16.gmra.mxu1 %v4398_v19  ;;  %v5346_v9 = vld [vmem:[%s7301_s3 + $0xd4] sm:$0xf0] }
 0x1e6   : > { %1419 = vmatpush.bf16.msra.mxu2 %v6256_v29  ;;  %1391 = vmatpush.bf16.msra.mxu1 %v6054_v12  ;;  %v4502_v22 = vor.u32 %v5346_v9, %v4501_v7  ;;  %v5352_v9 = vld [vmem:[%s7301_s3 + $0x104] sm:$0xf] }
 0x1e7   : > { %2404 = vmatpush.bf16.msra.mxu0 %v6106_v10 }
 0x1ea   : > { %1420 = vmatpush.bf16.msra.mxu2 %v6265_v36  ;;  %1392 = vmatpush.bf16.msra.mxu1 %v6045_v63  ;;  %v1081_v42 = vpop.f32.mrf.mxu1 }
 0x1eb   : > { %2405 = vmatpush.bf16.msra.mxu0 %v6054_v12 }
 0x1ee   : > { %1421 = vmatpush.bf16.msra.mxu2 %v6280_v45  ;;  %1393 = vmatpush.bf16.msra.mxu1 %v6035_v49 }
 0x1ef   : > { %2406 = vmatpush.bf16.msra.mxu0 %v6045_v63 }
 0x1f2   : > { %1422 = vmatpush.bf16.msra.mxu2 %v6288_v48  ;;  %1394 = vmatpush.bf16.msra.mxu1 %v6025_v35  ;;  %v6417_v43 = vpop.f32.mrf.mxu1 }
 0x1f3   : > { %2407 = vmatpush.bf16.msra.mxu0 %v6035_v49 }
 0x1f5   : > { %1112 = vmatmul.bf16.gmra.mxu2 %v4366_v25  ;;  %1225 = vmatmul.bf16.gmra.mxu1 %v4406_v6 }
 0x1f6   : > { %1556 = vmatpush.bf16.msrb.mxu1 %v6081_v59  ;;  %1423 = vmatpush.bf16.msra.mxu2 %v6312_v55 }
 0x1f7   : > { %2408 = vmatpush.bf16.msra.mxu0 %v6025_v35 }
 0x1fa   : > { %1557 = vmatpush.bf16.msrb.mxu1 %v6090_v3  ;;  %v6427_v17 = vpop.f32.mrf.mxu1 }
 0x1fe   : > { %1558 = vmatpush.bf16.msrb.mxu1 %v6100_v8 }
 0x202   : > { %1559 = vmatpush.bf16.msrb.mxu1 %v6106_v10  ;;  %v6435_v21 = vpop.f32.mrf.mxu1 }
 0x205   : > { %1117 = vmatmul.bf16.gmra.mxu2 %v4374_v33  ;;  %1230 = vmatmul.bf16.gmra.mxu1 %v4414_v16 }
 0x206   : > { %1560 = vmatpush.bf16.msrb.mxu1 %v6054_v12 }
 0x20a   : > { %1561 = vmatpush.bf16.msrb.mxu1 %v6045_v63  ;;  %v6440_v53 = vpop.f32.mrf.mxu1 }
 0x20e   : > { %1562 = vmatpush.bf16.msrb.mxu1 %v6035_v49 }
 0x212   : > { %1563 = vmatpush.bf16.msrb.mxu1 %v6025_v35 }
 0x215   : > { %1395 = vmatmul.bf16.vlgmr.msra.gmra.mxu1 %v4444_v38 }
 0x216   : > { %1754 = vmatpush.bf16.msra.mxu1 %v6209_v18 }
 0x21a   : > { %1755 = vmatpush.bf16.msra.mxu1 %v6229_v57 }
 0x21e   : > { %1756 = vmatpush.bf16.msra.mxu1 %v6243_v5 }
 0x222   : > { %1757 = vmatpush.bf16.msra.mxu1 %v6256_v29 }
 0x225   : > { %1400 = vmatmul.bf16.gmra.mxu1 %v4452_v41 }
 0x226   : > { %1758 = vmatpush.bf16.msra.mxu1 %v6265_v36 }
 0x229   : > { %v1192_v0 = vpop.f32.mrf.mxu3 }
 0x22a   : > { %1759 = vmatpush.bf16.msra.mxu1 %v6280_v45 }
 0x22e   : > { %1760 = vmatpush.bf16.msra.mxu1 %v6288_v48 }
 0x231   : > { %v1194_v24 = vpop.f32.mrf.mxu3 }
 0x232   : > { %1761 = vmatpush.bf16.msra.mxu1 %v6312_v55 }
 0x235   : > { %1405 = vmatmul.bf16.gmra.mxu1 %v4460_v47 }
 0x23a   : > { %v1197_v33 = vpop.f32.mrf.mxu3 }
 0x242   : > { %v1199_v46 = vpop.f32.mrf.mxu3 }
 0x245   : > { %1410 = vmatmul.bf16.gmra.mxu1 %v4468_v51  ;;  %v4517_v51 = vld [vmem:[%s7301_s3 + $0xf0] sm:$0xf] }
 0x252   : > { %v1216_v14 = vpop.f32.mrf.mxu1 }
 0x253   : > { %v1217_v2 = vadd.f32 %v1216_v14, %v1187_v27  ;;  %v1202_v27 = vpop.f32.mrf.mxu3 }
 0x255   : > { %1564 = vmatmul.bf16.vlgmr.msrb.gmra.mxu1 %v4494_v61  ;;  %v4518_v61 = vor.u32 %v5350_v52, %v4517_v51  ;;  %v4495_v51 = vld [vmem:[%s7301_s3 + $0xc8] sm:$0xf0] }
 0x256   : > { %1984 = vmatpush.bf16.msrb.mxu1 %v5369_v44 }
 0x258   : > { %v1103_v62 = vpop.f32.mrf.mxu2 }
 0x259   : > { %v1104_v20 = vadd.f32 %v1103_v62, %v1074_v54  ;;  %v4509_v54 = vld [vmem:[%s7301_s3 + $0xe0] sm:$0xf] }
 0x25a   : > { %v1218_v1 = vpop.f32.mrf.mxu1 }
 0x25b   : > { %v1219_v13 = vadd.f32 %v1218_v1, %v1189_v56  ;;  %v1204_v1 = vpop.f32.mrf.mxu3 }
 0x25d   : > { %v1236_v4 = vpack.c.bf16 %v1219_v13, %v1217_v2 }
 0x25f   : > { %4421 = vmatmul.msk.bf16.vlgmr.msrb.gmra.mxu2 %vm1249_vm3, %v1236_v4 }
 0x260   : > { %1585 = vmatpush.bf16.msrb.mxu2 %v6209_v18  ;;  %v1105_v19 = vpop.f32.mrf.mxu2 }
 0x261   : > { %v1106_v11 = vadd.f32 %v1105_v19, %v1076_v28  ;;  %v5348_v28 = vld [vmem:[%s7301_s3 + $0xe4] sm:$0xf0] }
 0x262   : > { %v1221_v25 = vpop.f32.mrf.mxu1  ;;  %v4510_v39 = vor.u32 %v5348_v28, %v4509_v54  ;;  %v5338_v54 = vld [vmem:[%s7301_s3 + $0xa4] sm:$0xf]  ;;  %v4461_v28 = vld [vmem:[%s7301_s3 + $0xa8] sm:$0xf0] }
 0x263   : > { %v1123_v6 = vpack.c.bf16 %v1106_v11, %v1104_v20  ;;  %v1222_v31 = vadd.f32 %v1221_v25, %v1192_v0  ;;  %v5334_v25 = vld [vmem:[%s7301_s3 + $0x84] sm:$0xf] }
 0x264   : > { %1586 = vmatpush.bf16.msrb.mxu2 %v6229_v57 }
 0x265   : > { %4429 = vmatmul.msk.bf16.vlgmr.msrb.gmra.mxu3 %vm1249_vm3, %v1123_v6  ;;  %1569 = vmatmul.bf16.gmra.mxu1 %v4502_v22  ;;  %v4445_v6 = vld [vmem:[%s7301_s3 + $0x88] sm:$0xf0] }
 0x268   : > { %1587 = vmatpush.bf16.msrb.mxu2 %v6243_v5  ;;  %v1108_v26 = vpop.f32.mrf.mxu2 }
 0x269   : > { %v1109_v37 = vadd.f32 %v1108_v26, %v6404_v23 }
 0x26a   : > { %v1223_v30 = vpop.f32.mrf.mxu1 }
 0x26b   : > { %v1224_v32 = vadd.f32 %v1223_v30, %v1194_v24  ;;  %v5336_v30 = vld [vmem:[%s7301_s3 + $0x94] sm:$0xf] }
 0x26c   : > { %1588 = vmatpush.bf16.msrb.mxu2 %v6256_v29 }
 0x26d   : > { %v1237_v16 = vpack.c.bf16 %v1224_v32, %v1222_v31  ;;  %v4453_v31 = vld [vmem:[%s7301_s3 + $0x98] sm:$0xf0] }
 0x26f   : > { %4422 = vmatmul.msk.bf16.gmra.mxu2 %vm1249_vm3, %v1237_v16 }
 0x270   : > { %1589 = vmatpush.bf16.msrb.mxu2 %v6265_v36  ;;  %v1110_v34 = vpop.f32.mrf.mxu2 }
 0x271   : > { %v1111_v38 = vadd.f32 %v1110_v34, %v1081_v42 }
 0x272   : > { %v1226_v40 = vpop.f32.mrf.mxu1 }
 0x273   : > { %v1124_v41 = vpack.c.bf16 %v1111_v38, %v1109_v37  ;;  %v1227_v23 = vadd.f32 %v1226_v40, %v1197_v33  ;;  %v4456_v33 = vor.u32 %v5336_v30, %v4453_v31  ;;  %v5360_v37 = vld [vmem:[%s7302_s4 + $0x20] sm:$0xff]  ;;  %v4464_v38 = vor.u32 %v5338_v54, %v4461_v28  ;;  %v5340_v40 = vld [vmem:[%s7301_s3 + $0xb4] sm:$0xf] }
 0x274   : > { %1590 = vmatpush.bf16.msrb.mxu2 %v6280_v45  ;;  %v5342_v28 = vld [vmem:[%s7302_s4 + $0x10] sm:$0xff] }
 0x275   : > { %4430 = vmatmul.msk.bf16.gmra.mxu3 %vm1249_vm3, %v1124_v41  ;;  %1574 = vmatmul.bf16.gmra.mxu1 %v4510_v39  ;;  %v4469_v41 = vld [vmem:[%s7301_s3 + $0xb8] sm:$0xf0] }
 0x276   : > { %1477 = vmatpush.bf16.msra.mxu3 %v5342_v28 }
 0x278   : > { %1591 = vmatpush.bf16.msrb.mxu2 %v6288_v48  ;;  %v1113_v47 = vpop.f32.mrf.mxu2 }
 0x279   : > { %v1114_v58 = vadd.f32 %v1113_v47, %v6417_v43  ;;  %v4545_v43 = vld [vmem:[%s7301_s3 + $0x108] sm:$0xf0] }
 0x27a   : > { %v1228_v50 = vpop.f32.mrf.mxu1  ;;  %v4548_v11 = vor.u32 %v5352_v9, %v4545_v43 }
 0x27b   : > { %v1229_v42 = vadd.f32 %v1228_v50, %v1199_v46  ;;  %v4472_v46 = vor.u32 %v5340_v40, %v4469_v41  ;;  %v5354_v50 = vld [vmem:[%s7301_s3 + $0x114] sm:$0xf] }
 0x27c   : > { %1592 = vmatpush.bf16.msrb.mxu2 %v6312_v55  ;;  %v5349_v41 = vld [vmem:[%s7301_s3 + $0xf4] sm:$0xf] }
 0x27d   : > { %v1238_v15 = vpack.c.bf16 %v1229_v42, %v1227_v23  ;;  %v4553_v23 = vld [vmem:[%s7301_s3 + $0x118] sm:$0xf0] }
 0x27e   : > { %v4556_v42 = vor.u32 %v5354_v50, %v4553_v23 }
 0x27f   : > { %4423 = vmatmul.msk.bf16.gmra.mxu2 %vm1249_vm3, %v1238_v15  ;;  %v5343_v15 = vld [vmem:[%s7301_s3 + $0xc4] sm:$0xf] }
 0x280   : > { %v1115_v56 = vpop.f32.mrf.mxu2 }
 0x281   : > { %v1116_v60 = vadd.f32 %v1115_v56, %v6427_v17 }
 0x282   : > { %v1231_v14 = vpop.f32.mrf.mxu1 }
 0x283   : > { %v1125_v62 = vpack.c.bf16 %v1116_v60, %v1114_v58  ;;  %v1232_v13 = vadd.f32 %v1231_v14, %v1202_v27  ;;  %v4498_v27 = vor.u32 %v5343_v15, %v4495_v51  ;;  %v5356_v60 = vld [vmem:[%s7301_s3 + $0x124] sm:$0xf]  ;;  %v5351_v51 = vld [vmem:[%s7302_s4 + $0x18] sm:$0xff] }
 0x284   : > { %1646 = vmatpush.bf16.msrb.mxu3 %v5351_v51 }
 0x285   : > { %4431 = vmatmul.msk.bf16.gmra.mxu3 %vm1249_vm3, %v1125_v62  ;;  %1579 = vmatmul.bf16.gmra.mxu1 %v4518_v61  ;;  %v4561_v61 = vld [vmem:[%s7301_s3 + $0x128] sm:$0xf0] }
 0x286   : > { %v4564_v14 = vor.u32 %v5356_v60, %v4561_v61 }
 0x288   : > { %v1118_v0 = vpop.f32.mrf.mxu2 }
 0x289   : > { %v1119_v19 = vadd.f32 %v1118_v0, %v6435_v21  ;;  %v5345_v0 = vld [vmem:[%s7301_s3 + $0xd4] sm:$0xf] }
 0x28a   : > { %v1233_v2 = vpop.f32.mrf.mxu1 }
 0x28b   : > { %v1234_v4 = vadd.f32 %v1233_v2, %v1204_v1  ;;  %v4503_v1 = vld [vmem:[%s7301_s3 + $0xd8] sm:$0xf0] }
 0x28d   : > { %v1239_v7 = vpack.c.bf16 %v1234_v4, %v1232_v13 }
 0x28f   : > { %4424 = vmatmul.msk.bf16.gmra.mxu2 %vm1249_vm3, %v1239_v7  ;;  %v4506_v7 = vor.u32 %v5345_v0, %v4503_v1 }
 0x290   : > { %v1120_v17 = vpop.f32.mrf.mxu2 }
 0x291   : > { %v1121_v20 = vadd.f32 %v1120_v17, %v6440_v53  ;;  %v4448_v53 = vor.u32 %v5334_v25, %v4445_v6  ;;  %v5347_v25 = vld [vmem:[%s7301_s3 + $0xe4] sm:$0xf]  ;;  %v4511_v6 = vld [vmem:[%s7301_s3 + $0xe8] sm:$0xf0] }
 0x292   : > { %v6495_v22 = vpop.f32.mrf.mxu1 }
 0x293   : > { %v1126_v24 = vpack.c.bf16 %v1121_v20, %v1119_v19  ;;  %v5358_v19 = vld [vmem:[%s7301_s3 + $0x134] sm:$0xf]  ;;  %v4569_v20 = vld [vmem:[%s7301_s3 + $0x138] sm:$0xf0] }
 0x295   : > { %4432 = vmatmul.msk.bf16.gmra.mxu3 %vm1249_vm3, %v1126_v24  ;;  %1762 = vmatmul.bf16.vlgmr.msra.gmra.mxu1 %v4548_v11  ;;  %v4572_v11 = vor.u32 %v5358_v19, %v4569_v20 }
 0x296   : > { %2232 = vmatpush.bf16.msra.mxu1 %v6081_v59 }
 0x29a   : > { %2233 = vmatpush.bf16.msra.mxu1 %v6090_v3  ;;  %v6506_v21 = vpop.f32.mrf.mxu1 }
 0x29e   : > { %2234 = vmatpush.bf16.msra.mxu1 %v6100_v8 }
 0x29f   : > { %1424 = vmatmul.bf16.vlgmr.msra.gmra.mxu2 %v4448_v53 }
 0x2a0   : > { %1815 = vmatpush.bf16.msra.mxu2 %v5360_v37 }
 0x2a2   : > { %2235 = vmatpush.bf16.msra.mxu1 %v6106_v10  ;;  %v6510_v26 = vpop.f32.mrf.mxu1 }
 0x2a5   : > { %1767 = vmatmul.bf16.gmra.mxu1 %v4556_v42 }
 0x2a6   : > { %2236 = vmatpush.bf16.msra.mxu1 %v6054_v12 }
 0x2aa   : > { %2237 = vmatpush.bf16.msra.mxu1 %v6045_v63  ;;  %v6520_v32 = vpop.f32.mrf.mxu1 }
 0x2ae   : > { %2238 = vmatpush.bf16.msra.mxu1 %v6035_v49 }
 0x2af   : > { %1429 = vmatmul.bf16.gmra.mxu2 %v4456_v33  ;;  %v4514_v33 = vor.u32 %v5347_v25, %v4511_v6 }
 0x2b2   : > { %2239 = vmatpush.bf16.msra.mxu1 %v6025_v35  ;;  %v6524_v16 = vpop.f32.mrf.mxu1 }
 0x2b5   : > { %1772 = vmatmul.bf16.gmra.mxu1 %v4564_v14 }
 0x2ba   : > { %v6532_v34 = vpop.f32.mrf.mxu1 }
 0x2bf   : > { %1434 = vmatmul.bf16.gmra.mxu2 %v4464_v38 }
 0x2c2   : > { %v6537_v39 = vpop.f32.mrf.mxu1 }
 0x2c5   : > { %1777 = vmatmul.bf16.gmra.mxu1 %v4572_v11 }
 0x2ca   : > { %v6545_v44 = vpop.f32.mrf.mxu1 }
 0x2cf   : > { %1439 = vmatmul.bf16.gmra.mxu2 %v4472_v46  ;;  %v4519_v46 = vld [vmem:[%s7301_s3 + $0xf8] sm:$0xf0] }
 0x2d0   : > { %v4522_v15 = vor.u32 %v5349_v41, %v4519_v46 }
 0x2d2   : > { %v6547_v47 = vpop.f32.mrf.mxu1 }
 0x2da   : > { %v6561_v52 = vpop.f32.mrf.mxu1 }
 0x2df   : > { %1593 = vmatmul.bf16.vlgmr.msrb.gmra.mxu2 %v4498_v27  ;;  %v1734_v27 = vpop.f32.mrf.mxu0 }
 0x2e0   : > { %2063 = vmatpush.bf16.msrb.mxu2 %v6081_v59 }
 0x2e2   : > { %v1271_v56 = vpop.f32.mrf.mxu2  ;;  %v6564_v58 = vpop.f32.mrf.mxu1 }
 0x2e4   : > { %2064 = vmatpush.bf16.msrb.mxu2 %v6090_v3 }
 0x2e8   : > { %2065 = vmatpush.bf16.msrb.mxu2 %v6100_v8  ;;  %v1318_v62 = vpop.f32.mrf.mxu3 }
 0x2e9   : > { %v6580_v2 = vadd.f32 %v1318_v62, %v1271_v56  ;;  %v1736_v62 = vpop.f32.mrf.mxu0 }
 0x2ea   : > { %v6582_v13 = vpop.f32.mrf.mxu2  ;;  %v6584_v4 = vpop.f32.mrf.mxu1 }
 0x2ec   : > { %2066 = vmatpush.bf16.msrb.mxu2 %v6106_v10 }
 0x2ef   : > { %1598 = vmatmul.bf16.gmra.mxu2 %v4506_v7 }
 0x2f0   : > { %2067 = vmatpush.bf16.msrb.mxu2 %v6054_v12  ;;  %v6588_v9 = vpop.f32.mrf.mxu3 }
 0x2f1   : > { %v1739_v41 = vpop.f32.mrf.mxu0 }
 0x2f2   : > { %v1276_v43 = vpop.f32.mrf.mxu2  ;;  %v6590_v17 = vpop.f32.mrf.mxu1 }
 0x2f4   : > { %2068 = vmatpush.bf16.msrb.mxu2 %v6045_v63 }
 0x2f8   : > { %2069 = vmatpush.bf16.msrb.mxu2 %v6035_v49  ;;  %v1323_v24 = vpop.f32.mrf.mxu3 }
 0x2f9   : > { %v6606_v53 = vadd.f32 %v1323_v24, %v1276_v43 }
 0x2fa   : > { %v6608_v30 = vpop.f32.mrf.mxu2  ;;  %v6610_v31 = vpop.f32.mrf.mxu1 }
 0x2fc   : > { %2070 = vmatpush.bf16.msrb.mxu2 %v6025_v35 }
 0x2ff   : > { %1603 = vmatmul.bf16.gmra.mxu2 %v4514_v33 }
 0x300   : > { %v6613_v54 = vpop.f32.mrf.mxu3 }
 0x302   : > { %v1281_v37 = vpop.f32.mrf.mxu2  ;;  %v6618_v38 = vpop.f32.mrf.mxu1 }
 0x308   : > { %v1328_v40 = vpop.f32.mrf.mxu3 }
 0x309   : > { %v6626_v50 = vadd.f32 %v1328_v40, %v1281_v37 }
 0x30a   : > { %v6628_v23 = vpop.f32.mrf.mxu2  ;;  %v6630_v42 = vpop.f32.mrf.mxu1 }
 0x30f   : > { %1608 = vmatmul.bf16.gmra.mxu2 %v4522_v15 }
 0x310   : > { %v6635_v56 = vpop.f32.mrf.mxu3 }
 0x312   : > { %v1286_v60 = vpop.f32.mrf.mxu2  ;;  %v1763_v61 = vpop.f32.mrf.mxu1 }
 0x313   : > { %v1764_v0 = vadd.f32 %v1763_v61, %v1734_v27  ;;  %v1741_v27 = vpop.f32.mrf.mxu0 }
 0x318   : > { %v1333_v14 = vpop.f32.mrf.mxu3 }
 0x319   : > { %v6637_v1 = vadd.f32 %v1333_v14, %v1286_v60 }
 0x31a   : > { %v6639_v7 = vpop.f32.mrf.mxu2  ;;  %v1765_v43 = vpop.f32.mrf.mxu1 }
 0x31b   : > { %v1766_v19 = vadd.f32 %v1765_v43, %v1736_v62  ;;  %v1744_v61 = vpop.f32.mrf.mxu0 }
 0x31d   : > { %v1783_v20 = vpack.c.bf16 %v1766_v19, %v1764_v0 }
 0x31f   : > { %4579 = vmatmul.msk.bf16.vlgmr.msra.gmra.mxu2 %vm1249_vm3, %v1783_v20 }
 0x320   : > { %2261 = vmatpush.bf16.msra.mxu2 %v6209_v18 }
 0x322   : > { %v1425_v11 = vpop.f32.mrf.mxu2  ;;  %v1768_v46 = vpop.f32.mrf.mxu1 }
 0x323   : > { %v1426_v25 = vadd.f32 %v1425_v11, %v6495_v22  ;;  %v1769_v51 = vadd.f32 %v1768_v46, %v1739_v41  ;;  %v1746_v19 = vpop.f32.mrf.mxu0 }
 0x324   : > { %2262 = vmatpush.bf16.msra.mxu2 %v6229_v57 }
 0x328   : > { %2263 = vmatpush.bf16.msra.mxu2 %v6243_v5 }
 0x32a   : > { %v1427_v24 = vpop.f32.mrf.mxu2  ;;  %v1770_v60 = vpop.f32.mrf.mxu1 }
 0x32b   : > { %v1428_v6 = vadd.f32 %v1427_v24, %v6506_v21 }
 0x32c   : > { %2264 = vmatpush.bf16.msra.mxu2 %v6256_v29 }
 0x32d   : > { %v1445_v33 = vpack.c.bf16 %v1428_v6, %v1426_v25  ;;  %v1749_v6 = vpop.f32.mrf.mxu0 }
 0x32f   : > { %4479 = vmatmul.msk.bf16.vlgmr.msra.gmra.mxu3 %vm1249_vm3, %v1445_v33 }
 0x330   : > { %1894 = vmatpush.bf16.msra.mxu3 %v6081_v59  ;;  %2265 = vmatpush.bf16.msra.mxu2 %v6265_v36 }
 0x332   : > { %v1430_v28 = vpop.f32.mrf.mxu2  ;;  %v1773_v14 = vpop.f32.mrf.mxu1 }
 0x333   : > { %v1431_v21 = vadd.f32 %v1430_v28, %v6510_v26  ;;  %v1774_v43 = vadd.f32 %v1773_v14, %v1744_v61  ;;  %v4601_v61 = vld [vmem:[%s7301_s3 + $0x150] sm:$0xf]  ;;  %v5364_v14 = vld [vmem:[%s7301_s3 + $0x154] sm:$0xf0] }
 0x334   : > { %1895 = vmatpush.bf16.msra.mxu3 %v6090_v3  ;;  %2266 = vmatpush.bf16.msra.mxu2 %v6280_v45 }
 0x338   : > { %1896 = vmatpush.bf16.msra.mxu3 %v6100_v8  ;;  %2267 = vmatpush.bf16.msra.mxu2 %v6288_v48 }
 0x33a   : > { %v1432_v22 = vpop.f32.mrf.mxu2  ;;  %v1775_v20 = vpop.f32.mrf.mxu1 }
 0x33b   : > { %v1433_v37 = vadd.f32 %v1432_v22, %v6520_v32  ;;  %v1776_v11 = vadd.f32 %v1775_v20, %v1746_v19 }
 0x33c   : > { %1897 = vmatpush.bf16.msra.mxu3 %v6106_v10  ;;  %2268 = vmatpush.bf16.msra.mxu2 %v6312_v55 }
 0x33d   : > { %v1446_v59 = vpack.c.bf16 %v1433_v37, %v1431_v21  ;;  %v1785_v24 = vpack.c.bf16 %v1776_v11, %v1774_v43  ;;  %v1751_v37 = vpop.f32.mrf.mxu0  ;;  %v4602_v43 = vor.u32 %v5364_v14, %v4601_v61 }
 0x33f   : > { %4480 = vmatmul.msk.bf16.gmra.mxu3 %vm1249_vm3, %v1446_v59 }
 0x340   : > { %1898 = vmatpush.bf16.msra.mxu3 %v6054_v12 }
 0x342   : > { %v1435_v3 = vpop.f32.mrf.mxu2  ;;  %v1778_v33 = vpop.f32.mrf.mxu1 }
 0x343   : > { %v1436_v40 = vadd.f32 %v1435_v3, %v6524_v16  ;;  %v1771_v16 = vadd.f32 %v1770_v60, %v1741_v27  ;;  %v1779_v22 = vadd.f32 %v1778_v33, %v1749_v6  ;;  %v5365_v27 = vld [vmem:[%s7301_s3 + $0x164] sm:$0xf]  ;;  %v4611_v60 = vld [vmem:[%s7301_s3 + $0x168] sm:$0xf0]  ;;  %v5366_v6 = vld [vmem:[%s7301_s3 + $0x164] sm:$0xf0] }
 0x344   : > { %1899 = vmatpush.bf16.msra.mxu3 %v6045_v63 }
 0x348   : > { %1900 = vmatpush.bf16.msra.mxu3 %v6035_v49 }
 0x34a   : > { %v1437_v8 = vpop.f32.mrf.mxu2  ;;  %v1780_v59 = vpop.f32.mrf.mxu1 }
 0x34b   : > { %v1438_v26 = vadd.f32 %v1437_v8, %v6532_v34  ;;  %v1784_v34 = vpack.c.bf16 %v1771_v16, %v1769_v51  ;;  %v1781_v3 = vadd.f32 %v1780_v59, %v1751_v37  ;;  %v4593_v51 = vld [vmem:[%s7301_s3 + $0x140] sm:$0xf]  ;;  %v4614_v16 = vor.u32 %v5365_v27, %v4611_v60  ;;  %v4617_v37 = vld [vmem:[%s7301_s3 + $0x170] sm:$0xf]  ;;  %v5368_v59 = vld [vmem:[%s7301_s3 + $0x174] sm:$0xf0] }
 0x34c   : > { %1901 = vmatpush.bf16.msra.mxu3 %v6025_v35  ;;  %v4653_v27 = vld [vmem:[%s7301_s3 + $0x198] sm:$0xf0] }
 0x34d   : > { %v1447_v10 = vpack.c.bf16 %v1438_v26, %v1436_v40  ;;  %4580 = vmatmul.msk.bf16.gmra.mxu2 %vm1249_vm3, %v1784_v34  ;;  %v1786_v8 = vpack.c.bf16 %v1781_v3, %v1779_v22  ;;  %v5373_v22 = vld [vmem:[%s7301_s3 + $0x194] sm:$0xf0] }
 0x34f   : > { %4481 = vmatmul.msk.bf16.gmra.mxu3 %vm1249_vm3, %v1447_v10 }
 0x352   : > { %v1440_v32 = vpop.f32.mrf.mxu2 }
 0x353   : > { %v1441_v12 = vadd.f32 %v1440_v32, %v6537_v39 }
 0x35a   : > { %v1442_v15 = vpop.f32.mrf.mxu2 }
 0x35b   : > { %v1443_v63 = vadd.f32 %v1442_v15, %v6545_v44 }
 0x35d   : > { %v1448_v49 = vpack.c.bf16 %v1443_v63, %v1441_v12  ;;  %4581 = vmatmul.msk.bf16.gmra.mxu2 %vm1249_vm3, %v1785_v24  ;;  %v5363_v12 = vld [vmem:[%s7301_s3 + $0x154] sm:$0xf] }
 0x35f   : > { %4482 = vmatmul.msk.bf16.gmra.mxu3 %vm1249_vm3, %v1448_v49 }
 0x362   : > { %v1594_v35 = vpop.f32.mrf.mxu2 }
 0x363   : > { %v1595_v0 = vadd.f32 %v1594_v35, %v6547_v47 }
 0x36a   : > { %v1596_v62 = vpop.f32.mrf.mxu2 }
 0x36b   : > { %v1597_v39 = vadd.f32 %v1596_v62, %v6561_v52  ;;  %v1321_v62 = vadd.f32 %v6588_v9, %v6582_v13  ;;  %v4643_v13 = vld [vmem:[%s7301_s3 + $0x180] sm:$0xf]  ;;  %v5371_v9 = vld [vmem:[%s7301_s3 + $0x184] sm:$0xf0] }
 0x36c   : > { %v4644_v24 = vor.u32 %v5371_v9, %v4643_v13 }
 0x36d   : > { %v1614_v44 = vpack.c.bf16 %v1597_v39, %v1595_v0  ;;  %4582 = vmatmul.msk.bf16.gmra.mxu2 %vm1249_vm3, %v1786_v8 }
 0x36f   : > { %4529 = vmatmul.msk.bf16.vlgmr.msrb.gmra.mxu3 %vm1249_vm3, %v1614_v44  ;;  %v5367_v44 = vld [vmem:[%s7301_s3 + $0x174] sm:$0xf] }
 0x370   : > { %2092 = vmatpush.bf16.msrb.mxu3 %v6209_v18 }
 0x372   : > { %v1599_v25 = vpop.f32.mrf.mxu2 }
 0x373   : > { %v1600_v52 = vadd.f32 %v1599_v25, %v6564_v58  ;;  %v4609_v25 = vld [vmem:[%s7301_s3 + $0x160] sm:$0xf] }
 0x374   : > { %2093 = vmatpush.bf16.msrb.mxu3 %v6229_v57 }
 0x378   : > { %2094 = vmatpush.bf16.msrb.mxu3 %v6243_v5 }
 0x37a   : > { %v1601_v47 = vpop.f32.mrf.mxu2 }
 0x37b   : > { %v1602_v28 = vadd.f32 %v1601_v47, %v6584_v4 }
 0x37c   : > { %2095 = vmatpush.bf16.msrb.mxu3 %v6256_v29 }
 0x37d   : > { %v1615_v21 = vpack.c.bf16 %v1602_v28, %v1600_v52  ;;  %2071 = vmatmul.bf16.vlgmr.msrb.gmra.mxu2 %v4644_v24  ;;  %v4651_v28 = vld [vmem:[%s7301_s3 + $0x190] sm:$0xf]  ;;  %v5376_v24 = vld [vmem:[%s7301_s3 + $0x1b4] sm:$0xf] }
 0x37f   : > { %4530 = vmatmul.msk.bf16.gmra.mxu3 %vm1249_vm3, %v1615_v21  ;;  %v4652_v21 = vor.u32 %v5373_v22, %v4651_v28 }
 0x380   : > { %2096 = vmatpush.bf16.msrb.mxu3 %v6265_v36 }
 0x382   : > { %v1604_v40 = vpop.f32.mrf.mxu2 }
 0x383   : > { %v1605_v4 = vadd.f32 %v1604_v40, %v6590_v17  ;;  %v4603_v17 = vld [vmem:[%s7301_s3 + $0x158] sm:$0xf0] }
 0x384   : > { %2097 = vmatpush.bf16.msrb.mxu3 %v6280_v45 }
 0x388   : > { %2098 = vmatpush.bf16.msrb.mxu3 %v6288_v48 }
 0x38a   : > { %v1606_v58 = vpop.f32.mrf.mxu2 }
 0x38b   : > { %v1607_v26 = vadd.f32 %v1606_v58, %v6610_v31  ;;  %v4606_v31 = vor.u32 %v5363_v12, %v4603_v17  ;;  %v4659_v58 = vld [vmem:[%s7301_s3 + $0x1a0] sm:$0xf] }
 0x38c   : > { %2099 = vmatpush.bf16.msrb.mxu3 %v6312_v55 }
 0x38d   : > { %v1616_v10 = vpack.c.bf16 %v1607_v26, %v1605_v4  ;;  %1936 = vmatmul.bf16.gmra.mxu0 %v4606_v31  ;;  %2076 = vmatmul.bf16.gmra.mxu2 %v4652_v21  ;;  %v5375_v4 = vld [vmem:[%s7301_s3 + $0x1a4] sm:$0xf0] }
 0x38f   : > { %4531 = vmatmul.msk.bf16.gmra.mxu3 %vm1249_vm3, %v1616_v10  ;;  %v4660_v10 = vor.u32 %v5375_v4, %v4659_v58 }
 0x392   : > { %v1609_v32 = vpop.f32.mrf.mxu2 }
 0x393   : > { %v1610_v46 = vadd.f32 %v1609_v32, %v6618_v38  ;;  %v5362_v38 = vld [vmem:[%s7301_s3 + $0x144] sm:$0xf0]  ;;  %v5370_v32 = vld [vmem:[%s7301_s3 + $0x184] sm:$0xf] }
 0x394   : > { %v4594_v49 = vor.u32 %v5362_v38, %v4593_v51  ;;  %v5377_v51 = vld [vmem:[%s7301_s3 + $0x1b4] sm:$0xf0] }
 0x39a   : > { %v1611_v41 = vpop.f32.mrf.mxu2 }
 0x39b   : > { %v1612_v15 = vadd.f32 %v1611_v41, %v6630_v42  ;;  %v6705_v42 = vpop.f32.mrf.mxu3  ;;  %v4645_v41 = vld [vmem:[%s7301_s3 + $0x188] sm:$0xf0] }
 0x39d   : > { %v1617_v63 = vpack.c.bf16 %v1612_v15, %v1610_v46  ;;  %1941 = vmatmul.bf16.gmra.mxu0 %v4614_v16  ;;  %2081 = vmatmul.bf16.gmra.mxu2 %v4660_v10  ;;  %v4648_v46 = vor.u32 %v5370_v32, %v4645_v41 }
 0x39f   : > { %4532 = vmatmul.msk.bf16.gmra.mxu3 %vm1249_vm3, %v1617_v63  ;;  %v4667_v63 = vld [vmem:[%s7301_s3 + $0x1b0] sm:$0xf] }
 0x3a0   : > { %v4668_v38 = vor.u32 %v5377_v51, %v4667_v63 }
 0x3a2   : > { %v1817_v26 = vpop.f32.mrf.mxu2 }
 0x3aa   : > { %v6775_v15 = vpop.f32.mrf.mxu2 }
 0x3ad   : > { %2086 = vmatmul.bf16.gmra.mxu2 %v4668_v38 }
 0x3af   : > { %1902 = vmatmul.bf16.vlgmr.msra.gmra.mxu3 %v4594_v49  ;;  %v5372_v49 = vld [vmem:[%s7301_s3 + $0x194] sm:$0xf] }
 0x3b2   : > { %v1479_v34 = vpop.f32.mrf.mxu3 }
 0x3b3   : > { %v1499_v35 = vadd.f32 %v1479_v34, %v6580_v2  ;;  %v4619_v2 = vld [vmem:[%s7301_s3 + $0x178] sm:$0xf0]  ;;  %v4656_v34 = vor.u32 %v5372_v49, %v4653_v27 }
 0x3b4   : > { %v4622_v19 = vor.u32 %v5367_v44, %v4619_v2 }
 0x3b6   : > { %1946 = vmatmul.bf16.gmra.mxu0 %v4622_v19 }
 0x3ba   : > { %v1481_v0 = vpop.f32.mrf.mxu3 }
 0x3bb   : > { %v6722_v39 = vadd.f32 %v1481_v0, %v1321_v62  ;;  %v5374_v0 = vld [vmem:[%s7301_s3 + $0x1a4] sm:$0xf] }
 0x3bf   : > { %1907 = vmatmul.bf16.gmra.mxu3 %v4602_v43  ;;  %v4661_v43 = vld [vmem:[%s7301_s3 + $0x1a8] sm:$0xf0] }
 0x3c0   : > { %v4664_v2 = vor.u32 %v5374_v0, %v4661_v43 }
 0x3c2   : > { %v1484_v20 = vpop.f32.mrf.mxu3 }
 0x3c3   : > { %v1501_v11 = vadd.f32 %v1484_v20, %v6606_v53  ;;  %v4610_v53 = vor.u32 %v5366_v6, %v4609_v25  ;;  %v4669_v25 = vld [vmem:[%s7301_s3 + $0x1b8] sm:$0xf0] }
 0x3ca   : > { %v6743_v33 = vpop.f32.mrf.mxu3 }
 0x3cf   : > { %1912 = vmatmul.bf16.gmra.mxu3 %v4610_v53  ;;  %v4672_v53 = vor.u32 %v5376_v24, %v4669_v25  ;;  %v5383_v25 = vld [vmem:[%s7301_s3 + $0x1e4] sm:$0xf] }
 0x3d0   : > { %v1822_v16 = vpop.f32.mrf.mxu2 }
 0x3d2   : > { %v1489_v47 = vpop.f32.mrf.mxu3 }
 0x3d3   : > { %v1503_v52 = vadd.f32 %v1489_v47, %v6626_v50  ;;  %v4618_v50 = vor.u32 %v5368_v59, %v4617_v37 }
 0x3d8   : > { %v6793_v14 = vpop.f32.mrf.mxu2 }
 0x3da   : > { %v6758_v3 = vpop.f32.mrf.mxu3 }
 0x3df   : > { %1917 = vmatmul.bf16.gmra.mxu3 %v4618_v50 }
 0x3e0   : > { %v1827_v19 = vpop.f32.mrf.mxu2 }
 0x3e2   : > { %v1494_v8 = vpop.f32.mrf.mxu3 }
 0x3e3   : > { %v1505_v40 = vadd.f32 %v1494_v8, %v6637_v1 }
 0x3e8   : > { %v6807_v9 = vpop.f32.mrf.mxu2 }
 0x3ea   : > { %v6773_v1 = vpop.f32.mrf.mxu3 }
 0x3ef   : > { %2100 = vmatmul.bf16.vlgmr.msrb.gmra.mxu3 %v4648_v46 }
 0x3f0   : > { %v1832_v28 = vpop.f32.mrf.mxu2 }
 0x3f2   : > { %v1648_v12 = vpop.f32.mrf.mxu3 }
 0x3f3   : > { %v1668_v17 = vadd.f32 %v1648_v12, %v1499_v35 }
 0x3f5   : > { %v6777_v31 = vadd.f32 %v1817_v26, %v1668_v17 }
 0x3fa   : > { %v6791_v60 = vpop.f32.mrf.mxu3 }
 0x3ff   : > { %2105 = vmatmul.bf16.gmra.mxu3 %v4656_v34 }
 0x402   : > { %v1653_v35 = vpop.f32.mrf.mxu3 }
 0x403   : > { %v1670_v61 = vadd.f32 %v1653_v35, %v1501_v11 }
 0x405   : > { %v6795_v62 = vadd.f32 %v1822_v16, %v1670_v61 }
 0x40a   : > { %v6803_v44 = vpop.f32.mrf.mxu3 }
 0x40f   : > { %2110 = vmatmul.bf16.gmra.mxu3 %v4664_v2 }
 0x412   : > { %v1658_v20 = vpop.f32.mrf.mxu3 }
 0x413   : > { %v1672_v13 = vadd.f32 %v1658_v20, %v1503_v52  ;;  %v1932_v52 = vpop.f32.mrf.mxu0 }
 0x415   : > { %v6805_v11 = vadd.f32 %v1827_v19, %v1672_v13 }
 0x41a   : > { %v6815_v6 = vpop.f32.mrf.mxu3 }
 0x41b   : > { %v1934_v59 = vpop.f32.mrf.mxu0 }
 0x41f   : > { %2115 = vmatmul.bf16.gmra.mxu3 %v4672_v53  ;;  %v4711_v53 = vld [vmem:[%s7301_s3 + $0x1e8] sm:$0xf0] }
 0x422   : > { %v1663_v47 = vpop.f32.mrf.mxu3 }
 0x423   : > { %v1674_v22 = vadd.f32 %v1663_v47, %v1505_v40  ;;  %v1937_v8 = vpop.f32.mrf.mxu0  ;;  %v4714_v47 = vor.u32 %v5383_v25, %v4711_v53  ;;  %v4743_v53 = vld [vmem:[%s7301_s3 + $0x200] sm:$0xf] }
 0x425   : > { %v6817_v21 = vadd.f32 %v1832_v28, %v1674_v22  ;;  %v4693_v22 = vld [vmem:[%s7301_s3 + $0x1c0] sm:$0xf] }
 0x42a   : > { %v6819_v37 = vpop.f32.mrf.mxu3 }
 0x42b   : > { %v1939_v41 = vpop.f32.mrf.mxu0 }
 0x432   : > { %v1903_v50 = vpop.f32.mrf.mxu3 }
 0x433   : > { %v1933_v4 = vadd.f32 %v1932_v52, %v1903_v50  ;;  %v1942_v17 = vpop.f32.mrf.mxu0  ;;  %v5380_v52 = vld [vmem:[%s7301_s3 + $0x1c4] sm:$0xf0] }
 0x43a   : > { %v1905_v58 = vpop.f32.mrf.mxu3 }
 0x43b   : > { %v1935_v26 = vadd.f32 %v1934_v59, %v1905_v58  ;;  %v1944_v38 = vpop.f32.mrf.mxu0  ;;  %v4694_v58 = vor.u32 %v5380_v52, %v4693_v22  ;;  %v4745_v22 = vld [vmem:[%s7301_s3 + $0x208] sm:$0xf0] }
 0x43d   : > { %v1952_v10 = vpack.c.bf16 %v1935_v26, %v1933_v4 }
 0x43f   : > { %4629 = vmatmul.msk.bf16.vlgmr.msrb.gmra.mxu1 %vm1249_vm3, %v1952_v10 }
 0x440   : > { %2430 = vmatpush.bf16.msrb.mxu1 %v6209_v18  ;;  %v5379_v18 = vld [vmem:[%s7301_s3 + $0x1c4] sm:$0xf] }
 0x442   : > { %v1908_v32 = vpop.f32.mrf.mxu3 }
 0x443   : > { %v1938_v46 = vadd.f32 %v1937_v8, %v1908_v32  ;;  %v1947_v34 = vpop.f32.mrf.mxu0  ;;  %v5385_v32 = vld [vmem:[%s7301_s3 + $0x1f4] sm:$0xf] }
 0x444   : > { %2431 = vmatpush.bf16.msrb.mxu1 %v6229_v57  ;;  %v4695_v57 = vld [vmem:[%s7301_s3 + $0x1c8] sm:$0xf0] }
 0x448   : > { %2432 = vmatpush.bf16.msrb.mxu1 %v6243_v5  ;;  %v4698_v5 = vor.u32 %v5379_v18, %v4695_v57 }
 0x44a   : > { %v1910_v40 = vpop.f32.mrf.mxu3  ;;  %2269 = vmatmul.bf16.vlgmr.msra.gmra.mxu2 %v4698_v5 }
 0x44b   : > { %v1940_v12 = vadd.f32 %v1939_v41, %v1910_v40  ;;  %v1949_v43 = vpop.f32.mrf.mxu0  ;;  %v4719_v41 = vld [vmem:[%s7301_s3 + $0x1f8] sm:$0xf0] }
 0x44c   : > { %2433 = vmatpush.bf16.msrb.mxu1 %v6256_v29  ;;  %v4722_v40 = vor.u32 %v5385_v32, %v4719_v41 }
 0x44d   : > { %v1953_v63 = vpack.c.bf16 %v1940_v12, %v1938_v46  ;;  %v4701_v46 = vld [vmem:[%s7301_s3 + $0x1d0] sm:$0xf]  ;;  %v5382_v12 = vld [vmem:[%s7301_s3 + $0x1d4] sm:$0xf0] }
 0x44e   : > { %v4702_v18 = vor.u32 %v5382_v12, %v4701_v46 }
 0x44f   : > { %4630 = vmatmul.msk.bf16.gmra.mxu1 %vm1249_vm3, %v1953_v63 }
 0x450   : > { %2434 = vmatpush.bf16.msrb.mxu1 %v6265_v36  ;;  %v6836_v36 = vpop.f32.mrf.mxu2 }
 0x452   : > { %v1913_v51 = vpop.f32.mrf.mxu3 }
 0x453   : > { %v1943_v49 = vadd.f32 %v1942_v17, %v1913_v51 }
 0x454   : > { %2435 = vmatpush.bf16.msrb.mxu1 %v6280_v45  ;;  %v5381_v45 = vld [vmem:[%s7301_s3 + $0x1d4] sm:$0xf] }
 0x458   : > { %2436 = vmatpush.bf16.msrb.mxu1 %v6288_v48  ;;  %v4703_v48 = vld [vmem:[%s7301_s3 + $0x1d8] sm:$0xf0]  ;;  %v2072_v61 = vpop.f32.mrf.mxu2 }
 0x459   : > { %v4706_v0 = vor.u32 %v5381_v45, %v4703_v48 }
 0x45a   : > { %v1915_v29 = vpop.f32.mrf.mxu3 }
 0x45b   : > { %v1945_v27 = vadd.f32 %v1944_v38, %v1915_v29  ;;  %2274 = vmatmul.bf16.gmra.mxu2 %v4706_v0 }
 0x45c   : > { %2437 = vmatpush.bf16.msrb.mxu1 %v6312_v55 }
 0x45d   : > { %v1954_v16 = vpack.c.bf16 %v1945_v27, %v1943_v49  ;;  %v4709_v49 = vld [vmem:[%s7301_s3 + $0x1e0] sm:$0xf]  ;;  %v5384_v27 = vld [vmem:[%s7301_s3 + $0x1e4] sm:$0xf0] }
 0x45e   : > { %v4710_v45 = vor.u32 %v5384_v27, %v4709_v49  ;;  %v5387_v49 = vld [vmem:[%s7302_s4 + $0x38] sm:$0xff]  ;;  %v4767_v27 = vld [vmem:[%s7301_s3 + $0x230] sm:$0xf] }
 0x45f   : > { %4631 = vmatmul.msk.bf16.gmra.mxu1 %vm1249_vm3, %v1954_v16  ;;  %2322 = vmatpush.bf16.msra.mxu3 %v5387_v49 }
 0x460   : > { %v2074_v13 = vpop.f32.mrf.mxu2 }
 0x462   : > { %v1918_v35 = vpop.f32.mrf.mxu3 }
 0x463   : > { %v1948_v19 = vadd.f32 %v1947_v34, %v1918_v35 }
 0x468   : > { %v2077_v28 = vpop.f32.mrf.mxu2 }
 0x46a   : > { %v1920_v2 = vpop.f32.mrf.mxu3 }
 0x46b   : > { %v1950_v55 = vadd.f32 %v1949_v43, %v1920_v2  ;;  %2279 = vmatmul.bf16.gmra.mxu2 %v4714_v47  ;;  %v4717_v43 = vld [vmem:[%s7301_s3 + $0x1f0] sm:$0xf]  ;;  %v5386_v2 = vld [vmem:[%s7301_s3 + $0x1f4] sm:$0xf0]  ;;  %v5389_v47 = vld [vmem:[%s7301_s3 + $0x204] sm:$0xf0] }
 0x46c   : > { %v4744_v52 = vor.u32 %v5389_v47, %v4743_v53 }
 0x46d   : > { %v1955_v20 = vpack.c.bf16 %v1950_v55, %v1948_v19 }
 0x46f   : > { %4632 = vmatmul.msk.bf16.gmra.mxu1 %vm1249_vm3, %v1955_v20 }
 0x470   : > { %v2079_v26 = vpop.f32.mrf.mxu2 }
 0x472   : > { %v2101_v24 = vpop.f32.mrf.mxu3 }
 0x473   : > { %v2102_v50 = vadd.f32 %v2101_v24, %v2072_v61  ;;  %v4718_v24 = vor.u32 %v5386_v2, %v4717_v43 }
 0x478   : > { %v2082_v57 = vpop.f32.mrf.mxu2 }
 0x47a   : > { %v2103_v59 = vpop.f32.mrf.mxu3 }
 0x47b   : > { %v2104_v8 = vadd.f32 %v2103_v59, %v2074_v13  ;;  %2284 = vmatmul.bf16.gmra.mxu2 %v4722_v40 }
 0x47d   : > { %v2121_v4 = vpack.c.bf16 %v2104_v8, %v2102_v50 }
 0x47f   : > { %4679 = vmatmul.msk.bf16.vlgmr.msrb.gmra.mxu0 %vm1249_vm3, %v2121_v4  ;;  %2240 = vmatmul.bf16.vlgmr.msra.gmra.mxu1 %v4694_v58  ;;  %v4751_v4 = vld [vmem:[%s7301_s3 + $0x210] sm:$0xf] }
 0x480   : > { %v2084_v29 = vpop.f32.mrf.mxu2 }
 0x482   : > { %v2106_v10 = vpop.f32.mrf.mxu3 }
 0x483   : > { %v2107_v63 = vadd.f32 %v2106_v10, %v2077_v28  ;;  %v5388_v28 = vld [vmem:[%s7301_s3 + $0x204] sm:$0xf]  ;;  %v5390_v10 = vld [vmem:[%s7301_s3 + $0x214] sm:$0xf] }
 0x484   : > { %v4748_v59 = vor.u32 %v5388_v28, %v4745_v22 }
 0x488   : > { %v2087_v61 = vpop.f32.mrf.mxu2 }
 0x48a   : > { %v2108_v17 = vpop.f32.mrf.mxu3 }
 0x48b   : > { %v2109_v51 = vadd.f32 %v2108_v17, %v2079_v26  ;;  %v5391_v26 = vld [vmem:[%s7301_s3 + $0x214] sm:$0xf0]  ;;  %v4759_v17 = vld [vmem:[%s7301_s3 + $0x220] sm:$0xf] }
 0x48c   : > { %v4752_v32 = vor.u32 %v5391_v26, %v4751_v4 }
 0x48d   : > { %v2122_v5 = vpack.c.bf16 %v2109_v51, %v2107_v63  ;;  %v5393_v63 = vld [vmem:[%s7301_s3 + $0x224] sm:$0xf0]  ;;  %v5392_v51 = vld [vmem:[%s7301_s3 + $0x224] sm:$0xf] }
 0x48f   : > { %4680 = vmatmul.msk.bf16.gmra.mxu0 %vm1249_vm3, %v2122_v5  ;;  %2245 = vmatmul.bf16.gmra.mxu1 %v4702_v18  ;;  %v4760_v18 = vor.u32 %v5393_v63, %v4759_v17 }
 0x490   : > { %v2089_v19 = vpop.f32.mrf.mxu2 }
 0x492   : > { %v2111_v38 = vpop.f32.mrf.mxu3 }
 0x493   : > { %v2112_v34 = vadd.f32 %v2111_v38, %v2082_v57 }
 0x49a   : > { %v2113_v16 = vpop.f32.mrf.mxu3 }
 0x49b   : > { %v2114_v35 = vadd.f32 %v2113_v16, %v2084_v29  ;;  %v5395_v16 = vld [vmem:[%s7301_s3 + $0x234] sm:$0xf0] }
 0x49d   : > { %v2123_v48 = vpack.c.bf16 %v2114_v35, %v2112_v34  ;;  %v4769_v34 = vld [vmem:[%s7301_s3 + $0x238] sm:$0xf0]  ;;  %v4768_v35 = vor.u32 %v5395_v16, %v4767_v27 }
 0x49f   : > { %4681 = vmatmul.msk.bf16.gmra.mxu0 %vm1249_vm3, %v2123_v48  ;;  %2250 = vmatmul.bf16.gmra.mxu1 %v4710_v45 }
 0x4a2   : > { %v2116_v0 = vpop.f32.mrf.mxu3 }
 0x4a3   : > { %v2117_v20 = vadd.f32 %v2116_v0, %v2087_v61 }
 0x4aa   : > { %v2118_v55 = vpop.f32.mrf.mxu3 }
 0x4ab   : > { %v2119_v13 = vadd.f32 %v2118_v55, %v2089_v19 }
 0x4ad   : > { %v2124_v25 = vpack.c.bf16 %v2119_v13, %v2117_v20 }
 0x4af   : > { %4682 = vmatmul.msk.bf16.gmra.mxu0 %vm1249_vm3, %v2124_v25  ;;  %2255 = vmatmul.bf16.gmra.mxu1 %v4718_v24 }
 0x4bc   : > { %v1986_v50 = vpop.f32.mrf.mxu1 }
 0x4bd   : > { %v2006_v8 = vadd.f32 %v1986_v50, %v6777_v31  ;;  %v4753_v31 = vld [vmem:[%s7301_s3 + $0x218] sm:$0xf0] }
 0x4be   : > { %v4756_v41 = vor.u32 %v5390_v10, %v4753_v31 }
 0x4bf   : > { %2409 = vmatmul.bf16.vlgmr.msra.gmra.mxu0 %v4744_v52  ;;  %2438 = vmatmul.bf16.vlgmr.msrb.gmra.mxu1 %v4748_v59 }
 0x4c4   : > { %v6900_v58 = vpop.f32.mrf.mxu1 }
 0x4cc   : > { %v1991_v40 = vpop.f32.mrf.mxu1 }
 0x4cd   : > { %v2008_v46 = vadd.f32 %v1991_v40, %v6795_v62  ;;  %v4761_v62 = vld [vmem:[%s7301_s3 + $0x228] sm:$0xf0]  ;;  %v2270_v48 = vpop.f32.mrf.mxu2 }
 0x4ce   : > { %v4764_v57 = vor.u32 %v5392_v51, %v4761_v62 }
 0x4cf   : > { %2414 = vmatmul.bf16.gmra.mxu0 %v4752_v32  ;;  %2443 = vmatmul.bf16.gmra.mxu1 %v4756_v41  ;;  %v5396_v32 = vld [vmem:[%s7302_s4 + $0x40] sm:$0xff] }
 0x4d0   : > { %2491 = vmatpush.bf16.msrb.mxu2 %v5396_v32 }
 0x4d4   : > { %v6915_v12 = vpop.f32.mrf.mxu1 }
 0x4d5   : > { %v2272_v2 = vpop.f32.mrf.mxu2 }
 0x4dc   : > { %v1996_v5 = vpop.f32.mrf.mxu1 }
 0x4dd   : > { %v2010_v38 = vadd.f32 %v1996_v5, %v6805_v11  ;;  %v5394_v11 = vld [vmem:[%s7301_s3 + $0x234] sm:$0xf] }
 0x4de   : > { %v4772_v45 = vor.u32 %v5394_v11, %v4769_v34  ;;  %v2275_v13 = vpop.f32.mrf.mxu2 }
 0x4df   : > { %2419 = vmatmul.bf16.gmra.mxu0 %v4760_v18  ;;  %2448 = vmatmul.bf16.gmra.mxu1 %v4764_v57 }
 0x4e4   : > { %v6930_v29 = vpop.f32.mrf.mxu1 }
 0x4e6   : > { %v2277_v22 = vpop.f32.mrf.mxu2 }
 0x4ec   : > { %v2001_v61 = vpop.f32.mrf.mxu1 }
 0x4ed   : > { %v2012_v0 = vadd.f32 %v2001_v61, %v6817_v21 }
 0x4ee   : > { %v2280_v50 = vpop.f32.mrf.mxu2 }
 0x4ef   : > { %2424 = vmatmul.bf16.gmra.mxu0 %v4768_v35  ;;  %2453 = vmatmul.bf16.gmra.mxu1 %v4772_v45 }
 0x4f4   : > { %v6948_v43 = vpop.f32.mrf.mxu1 }
 0x4fc   : > { %v2155_v19 = vpop.f32.mrf.mxu0  ;;  %v2241_v55 = vpop.f32.mrf.mxu1 }
 0x4fd   : > { %v6950_v20 = vadd.f32 %v2155_v19, %v2006_v8  ;;  %v2271_v53 = vadd.f32 %v2270_v48, %v2241_v55 }
 0x504   : > { %v6952_v24 = vpop.f32.mrf.mxu0  ;;  %v2243_v25 = vpop.f32.mrf.mxu1 }
 0x505   : > { %v2273_v47 = vadd.f32 %v2272_v2, %v2243_v25 }
 0x507   : > { %v2290_v28 = vpack.c.bf16 %v2273_v47, %v2271_v53 }
 0x509   : > { %4729 = vmatmul.msk.bf16.vlgmr.msra.gmra.mxu3 %vm1249_vm3, %v2290_v28 }
 0x50c   : > { %v2160_v21 = vpop.f32.mrf.mxu0  ;;  %v2246_v52 = vpop.f32.mrf.mxu1 }
 0x50d   : > { %v6955_v59 = vadd.f32 %v2160_v21, %v2008_v46  ;;  %v2276_v8 = vadd.f32 %v2275_v13, %v2246_v52  ;;  %v2282_v46 = vpop.f32.mrf.mxu2 }
 0x514   : > { %v6957_v4 = vpop.f32.mrf.mxu0  ;;  %v2248_v26 = vpop.f32.mrf.mxu1 }
 0x515   : > { %v2278_v10 = vadd.f32 %v2277_v22, %v2248_v26  ;;  %v2285_v5 = vpop.f32.mrf.mxu2 }
 0x517   : > { %v2291_v31 = vpack.c.bf16 %v2278_v10, %v2276_v8 }
 0x519   : > { %4730 = vmatmul.msk.bf16.gmra.mxu3 %vm1249_vm3, %v2291_v31 }
 0x51c   : > { %v2165_v41 = vpop.f32.mrf.mxu0  ;;  %v2251_v40 = vpop.f32.mrf.mxu1 }
 0x51d   : > { %v6963_v17 = vadd.f32 %v2165_v41, %v2010_v38  ;;  %v2281_v62 = vadd.f32 %v2280_v50, %v2251_v40  ;;  %v2287_v11 = vpop.f32.mrf.mxu2 }
 0x524   : > { %v6965_v63 = vpop.f32.mrf.mxu0  ;;  %v2253_v51 = vpop.f32.mrf.mxu1 }
 0x525   : > { %v2283_v18 = vadd.f32 %v2282_v46, %v2253_v51 }
 0x527   : > { %v2292_v57 = vpack.c.bf16 %v2283_v18, %v2281_v62 }
 0x529   : > { %4731 = vmatmul.msk.bf16.gmra.mxu3 %vm1249_vm3, %v2292_v57 }
 0x52c   : > { %v2170_v49 = vpop.f32.mrf.mxu0  ;;  %v2256_v27 = vpop.f32.mrf.mxu1 }
 0x52d   : > { %v6968_v16 = vadd.f32 %v2170_v49, %v2012_v0  ;;  %v2286_v38 = vadd.f32 %v2285_v5, %v2256_v27 }
 0x534   : > { %v6970_v34 = vpop.f32.mrf.mxu0  ;;  %v2258_v35 = vpop.f32.mrf.mxu1 }
 0x535   : > { %v2288_v45 = vadd.f32 %v2287_v11, %v2258_v35 }
 0x537   : > { %v2293_v48 = vpack.c.bf16 %v2288_v45, %v2286_v38  ;;  %v2521_v38 = vld [vmem:[#allocation4] sm:$0x7]  ;;  %v1669_v45 = vadd.f32 %v6791_v60, %v6722_v39  ;;  %v1326_v39 = vadd.f32 %v6613_v54, %v6608_v30 }
 0x539   : > { %4732 = vmatmul.msk.bf16.gmra.mxu3 %vm1249_vm3, %v2293_v48  ;;  %v6980_v48 = vperm.slane %v2521_v38, 0 }
 0x53c   : > { %v2410_v61 = vpop.f32.mrf.mxu0  ;;  %v2439_v2 = vpop.f32.mrf.mxu1 }
 0x53d   : > { %v2440_v13 = vadd.f32 %v2439_v2, %v2410_v61  ;;  %v1838_v2 = vadd.f32 %v6775_v15, %v1669_v45  ;;  %v1502_v15 = vadd.f32 %v6743_v33, %v1326_v39 }
 0x544   : > { %v2412_v19 = vpop.f32.mrf.mxu0  ;;  %v2441_v55 = vpop.f32.mrf.mxu1 }
 0x545   : > { %v2442_v25 = vadd.f32 %v2441_v55, %v2412_v19 }
 0x547   : > { %v2459_v53 = vpack.c.bf16 %v2442_v25, %v2440_v13  ;;  %v2007_v13 = vadd.f32 %v6900_v58, %v1838_v2 }
 0x549   : > { %4779 = vmatmul.msk.bf16.vlgmr.msrb.gmra.mxu2 %vm1249_vm3, %v2459_v53  ;;  %v2176_v53 = vadd.f32 %v6952_v24, %v2007_v13 }
 0x54c   : > { %v2415_v0 = vpop.f32.mrf.mxu0  ;;  %v2444_v47 = vpop.f32.mrf.mxu1 }
 0x54d   : > { %v2445_v21 = vadd.f32 %v2444_v47, %v2415_v0 }
 0x554   : > { %v2417_v28 = vpop.f32.mrf.mxu0  ;;  %v2446_v22 = vpop.f32.mrf.mxu1 }
 0x555   : > { %v2447_v52 = vadd.f32 %v2446_v22, %v2417_v28  ;;  %v6988_v28 = vperm.slane %v2521_v38, 1 }
 0x557   : > { %v2460_v50 = vpack.c.bf16 %v2447_v52, %v2445_v21  ;;  %v1671_v52 = vadd.f32 %v6803_v44, %v1502_v15 }
 0x559   : > { %4780 = vmatmul.msk.bf16.gmra.mxu2 %vm1249_vm3, %v2460_v50  ;;  %v1840_v33 = vadd.f32 %v6793_v14, %v1671_v52  ;;  %v1331_v14 = vadd.f32 %v6635_v56, %v6628_v23 }
 0x55b   : > { %v2009_v44 = vadd.f32 %v6915_v12, %v1840_v33 }
 0x55c   : > { %v2420_v26 = vpop.f32.mrf.mxu0  ;;  %v2449_v8 = vpop.f32.mrf.mxu1 }
 0x55d   : > { %v2450_v32 = vadd.f32 %v2449_v8, %v2420_v26  ;;  %v6994_v26 = vperm.slane %v2521_v38, 2 }
 0x564   : > { %v2422_v10 = vpop.f32.mrf.mxu0  ;;  %v2451_v31 = vpop.f32.mrf.mxu1 }
 0x565   : > { %v2452_v41 = vadd.f32 %v2451_v31, %v2422_v10 }
 0x567   : > { %v2461_v40 = vpack.c.bf16 %v2452_v41, %v2450_v32 }
 0x569   : > { %4781 = vmatmul.msk.bf16.gmra.mxu2 %vm1249_vm3, %v2461_v40 }
 0x56c   : > { %v2425_v46 = vpop.f32.mrf.mxu0  ;;  %v2454_v51 = vpop.f32.mrf.mxu1 }
 0x56d   : > { %v2455_v57 = vadd.f32 %v2454_v51, %v2425_v46  ;;  %v2178_v51 = vadd.f32 %v6957_v4, %v2009_v44 }
 0x574   : > { %v2427_v62 = vpop.f32.mrf.mxu0  ;;  %v2456_v18 = vpop.f32.mrf.mxu1 }
 0x575   : > { %v2457_v5 = vadd.f32 %v2456_v18, %v2427_v62 }
 0x577   : > { %v2462_v49 = vpack.c.bf16 %v2457_v5, %v2455_v57 }
 0x579   : > { %4782 = vmatmul.msk.bf16.gmra.mxu2 %vm1249_vm3, %v2462_v49  ;;  %v1504_v49 = vadd.f32 %v6758_v3, %v1331_v14  ;;  %v5400_v14 = vld [vmem:[#allocation6 + $0x8] sm:$0xff] }
 0x58c   : > { %v2324_v27 = vpop.f32.mrf.mxu3 }
 0x58d   : > { %v2344_v11 = vadd.f32 %v2324_v27, %v6950_v20 }
 0x594   : > { %v2326_v35 = vpop.f32.mrf.mxu3 }
 0x595   : > { %v2345_v0 = vadd.f32 %v2326_v35, %v2176_v53 }
 0x59c   : > { %v2329_v55 = vpop.f32.mrf.mxu3 }
 0x59d   : > { %v2346_v8 = vadd.f32 %v2329_v55, %v6955_v59 }
 0x5a4   : > { %v2331_v58 = vpop.f32.mrf.mxu3 }
 0x5a5   : > { %v2347_v62 = vadd.f32 %v2331_v58, %v2178_v51 }
 0x5ac   : > { %v2334_v59 = vpop.f32.mrf.mxu3 }
 0x5ad   : > { %v2348_v38 = vadd.f32 %v2334_v59, %v6963_v17 }
 0x5cc   : > { %v2493_v61 = vpop.f32.mrf.mxu2 }
 0x5cd   : > { %v2513_v19 = vadd.f32 %v2493_v61, %v2344_v11  ;;  %v1673_v11 = vadd.f32 %v6815_v6, %v1504_v49  ;;  %v2336_v61 = vpop.f32.mrf.mxu3  ;;  %v5398_v49 = vld [vmem:[%s7305_s7] sm:$0xff] }
 0x5cf   : > { %v2523_v25 = vadd.f32 %v6980_v48, %v2513_v19  ;;  %v1842_v23 = vadd.f32 %v6807_v9, %v1673_v11  ;;  %v1336_v9 = vadd.f32 %v6705_v42, %v6639_v7 }
 0x5d1   : > { %v2539_v20 = vmul.f32 0.2, %v2523_v25  ;;  %vm2531_vm4 = vcmp.ge.f32.partialorder %v2523_v25, 0.0  ;;  %v2011_v6 = vadd.f32 %v6930_v29, %v1842_v23  ;;  %v5415_v23 = vld [vmem:[#allocation6 + $0x30] sm:$0xff] }
 0x5d3   : > { %v2547_v22 = vsel %vm2531_vm4, %v2523_v25, %v2539_v20  ;;  %v2180_v17 = vadd.f32 %v6965_v63, %v2011_v6  ;;  %v5407_v6 = vld [vmem:[%s7305_s7 + $0x30] sm:$0xff] }
 0x5d4   : > { %v2495_v47 = vpop.f32.mrf.mxu2  ;;  %v2556_v50 = vmul.f32 %v6988_v28, %v2547_v22 }
 0x5d5   : > { %v2514_v60 = vadd.f32 %v2495_v47, %v2345_v0  ;;  %v2349_v53 = vadd.f32 %v2336_v61, %v2180_v17  ;;  %v2339_v39 = vpop.f32.mrf.mxu3  ;;  %v5403_v61 = vld [vmem:[#allocation6 + $0x10] sm:$0xff]  ;;  %v5404_v17 = vld [vmem:[%s7305_s7 + $0x20] sm:$0xff] }
 0x5d6   : > { %v2565_v32 = vadd.f32 %v6994_v26, %v2556_v50  ;;  %v2350_v58 = vadd.f32 %v2339_v39, %v6968_v16 }
 0x5d7   : > { %v2524_v21 = vadd.f32 %v6980_v48, %v2514_v60  ;;  %v1506_v60 = vadd.f32 %v6773_v1, %v1336_v9 }
 0x5d9   : > { %vm2532_vm5 = vcmp.ge.f32.partialorder %v2524_v21, 0.0  ;;  %v2540_v24 = vmul.f32 0.2, %v2524_v21  ;;  %v1675_v22 = vadd.f32 %v6819_v37, %v1506_v60 }
 0x5db   : > { %v2548_v30 = vsel %vm2532_vm5, %v2524_v21, %v2540_v24  ;;  %v1844_v7 = vadd.f32 %v6836_v36, %v1675_v22 }
 0x5dc   : > { %v2557_v54 = vmul.f32 %v6988_v28, %v2548_v30  ;;  %v2498_v10 = vpop.f32.mrf.mxu2 }
 0x5dd   : > { %v2515_v31 = vadd.f32 %v2498_v10, %v2346_v8  ;;  %v2013_v30 = vadd.f32 %v6948_v43, %v1844_v7  ;;  %v5417_v7 = vld [vmem:[%s7305_s7 + $0x68] sm:$0xff] }
 0x5de   : > { %v2566_v41 = vadd.f32 %v6994_v26, %v2557_v54  ;;  %v2341_v54 = vpop.f32.mrf.mxu3 }
 0x5df   : > { %v2525_v40 = vadd.f32 %v6980_v48, %v2515_v31  ;;  %v2182_v16 = vadd.f32 %v6970_v34, %v2013_v30 }
 0x5e0   : > { %v7003_v46 = vpack.c.bf16 %v2566_v41, %v2565_v32 }
 0x5e1   : > { %v2541_v18 = vmul.f32 0.2, %v2525_v40  ;;  %vm2533_vm6 = vcmp.ge.f32.partialorder %v2525_v40, 0.0  ;;  %v2351_v33 = vadd.f32 %v2341_v54, %v2182_v16 }
 0x5e3   : > { %v2549_v27 = vsel %vm2533_vm6, %v2525_v40, %v2541_v18 }
 0x5e4   : > { %v2500_v57 = vpop.f32.mrf.mxu2  ;;  %v2558_v4 = vmul.f32 %v6988_v28, %v2549_v27 }
 0x5e5   : > { %v2516_v5 = vadd.f32 %v2500_v57, %v2347_v62  ;;  %v5401_v57 = vld [vmem:[%s7305_s7 + $0x10] sm:$0xff] }
 0x5e6   : > { %v2567_v3 = vadd.f32 %v6994_v26, %v2558_v4 }
 0x5e7   : > { %v2526_v12 = vadd.f32 %v6980_v48, %v2516_v5  ;;  %v5399_v5 = vld [vmem:[%s7305_s7 + $0x8] sm:$0xff] }
 0x5e8   : > { %2689 = vmatpush.bf16.msrb.mxu0 %v5399_v5 }
 0x5e9   : > { %vm2534_vm7 = vcmp.ge.f32.partialorder %v2526_v12, 0.0  ;;  %v2542_v35 = vmul.f32 0.2, %v2526_v12 }
 0x5eb   : > { %v2550_v45 = vsel %vm2534_vm7, %v2526_v12, %v2542_v35 }
 0x5ec   : > { %v2559_v2 = vmul.f32 %v6988_v28, %v2550_v45  ;;  %v2503_v19 = vpop.f32.mrf.mxu2  ;;  %2690 = vmatpush.bf16.msrb.mxu0 %v5398_v49  ;;  %v5429_v49 = vld [vmem:[%s7308_s10 + $0x28] sm:$0xff] }
 0x5ed   : > { %v2517_v56 = vadd.f32 %v2503_v19, %v2348_v38  ;;  %v5412_v38 = vld [vmem:[#allocation6 + $0x28] sm:$0xff]  ;;  %v5409_v19 = vld [vmem:[#allocation6 + $0x20] sm:$0xff] }
 0x5ee   : > { %v2568_v55 = vadd.f32 %v6994_v26, %v2559_v2  ;;  %v5418_v2 = vld [vmem:[#allocation6 + $0x38] sm:$0xff] }
 0x5ef   : > { %v2527_v13 = vadd.f32 %v6980_v48, %v2517_v56  ;;  %v5421_v56 = vld [vmem:[#allocation6 + $0x40] sm:$0xff] }
 0x5f0   : > { %v7019_v25 = vpack.c.bf16 %v2568_v55, %v2567_v3  ;;  %v5408_v55 = vld [vmem:[%s7305_s7 + $0x38] sm:$0xff] }
 0x5f1   : > { %v2543_v0 = vmul.f32 0.2, %v2527_v13  ;;  %vm2535_vm8 = vcmp.ge.f32.partialorder %v2527_v13, 0.0  ;;  %2811 = vmatpush.bf16.msra.mxu2 %v5408_v55 }
 0x5f3   : > { %v2551_v15 = vsel %vm2535_vm8, %v2527_v13, %v2543_v0  ;;  %v5405_v13 = vld [vmem:[%s7305_s7 + $0x28] sm:$0xff]  ;;  %v5414_v0 = vld [vmem:[%s7305_s7 + $0x58] sm:$0xff] }
 0x5f4   : > { %v2505_v20 = vpop.f32.mrf.mxu2  ;;  %v2560_v63 = vmul.f32 %v6988_v28, %v2551_v15  ;;  %2749 = vmatpush.bf16.msra.mxu0 %v5405_v13  ;;  %v5410_v15 = vld [vmem:[%s7305_s7 + $0x40] sm:$0xff] }
 0x5f5   : > { %v2518_v47 = vadd.f32 %v2505_v20, %v2349_v53  ;;  %2812 = vmatpush.bf16.msra.mxu2 %v5407_v6  ;;  %v5413_v20 = vld [vmem:[%s7305_s7 + $0x50] sm:$0xff] }
 0x5f6   : > { %v2569_v1 = vadd.f32 %v6994_v26, %v2560_v63  ;;  %v5419_v63 = vld [vmem:[%s7305_s7 + $0x70] sm:$0xff] }
 0x5f7   : > { %v2528_v29 = vadd.f32 %v6980_v48, %v2518_v47  ;;  %v5411_v47 = vld [vmem:[%s7305_s7 + $0x48] sm:$0xff] }
 0x5f8   : > { %2750 = vmatpush.bf16.msra.mxu0 %v5404_v17 }
 0x5f9   : > { %vm2536_vm9 = vcmp.ge.f32.partialorder %v2528_v29, 0.0  ;;  %v2544_v21 = vmul.f32 0.2, %v2528_v29  ;;  %2935 = vmatpush.bf16.msrb.mxu2 %v5414_v0 }
 0x5fb   : > { %v2552_v52 = vsel %vm2536_vm9, %v2528_v29, %v2544_v21  ;;  %v5420_v21 = vld [vmem:[%s7305_s7 + $0x78] sm:$0xff] }
 0x5fc   : > { %v2561_v24 = vmul.f32 %v6988_v28, %v2552_v52  ;;  %v2508_v50 = vpop.f32.mrf.mxu2 }
 0x5fd   : > { %v2519_v42 = vadd.f32 %v2508_v50, %v2350_v58  ;;  %2936 = vmatpush.bf16.msrb.mxu2 %v5413_v20 }
 0x5fe   : > { %v2570_v8 = vadd.f32 %v6994_v26, %v2561_v24 }
 0x5ff   : > { %v2529_v37 = vadd.f32 %v6980_v48, %v2519_v42 }
 0x600   : > { %v7035_v10 = vpack.c.bf16 %v2570_v8, %v2569_v1  ;;  %v5416_v1 = vld [vmem:[%s7305_s7 + $0x60] sm:$0xff] }
 0x601   : > { %v2545_v31 = vmul.f32 0.2, %v2529_v37  ;;  %vm2537_vm10 = vcmp.ge.f32.partialorder %v2529_v37, 0.0 }
 0x603   : > { %v2553_v36 = vsel %vm2537_vm10, %v2529_v37, %v2545_v31  ;;  %v5423_v37 = vld [vmem:[%s7305_s7 + $0x88] sm:$0xff] }
 0x604   : > { %v2510_v32 = vpop.f32.mrf.mxu2  ;;  %v2562_v51 = vmul.f32 %v6988_v28, %v2553_v36 }
 0x605   : > { %v2520_v41 = vadd.f32 %v2510_v32, %v2351_v33 }
 0x606   : > { %v2571_v62 = vadd.f32 %v6994_v26, %v2562_v51 }
 0x607   : > { %v2530_v44 = vadd.f32 %v6980_v48, %v2520_v41  ;;  %v5397_v48 = vld [vmem:[#allocation6] sm:$0xff] }
 0x609   : > { %vm2538_vm11 = vcmp.ge.f32.partialorder %v2530_v44, 0.0  ;;  %v2546_v40 = vmul.f32 0.2, %v2530_v44 }
 0x60b   : > { %v2554_v43 = vsel %vm2538_vm11, %v2530_v44, %v2546_v40 }
 0x60c   : > { %v2563_v59 = vmul.f32 %v6988_v28, %v2554_v43  ;;  %v5406_v28 = vld [vmem:[#allocation6 + $0x18] sm:$0xff] }
 0x60e   : > { %v2572_v18 = vadd.f32 %v6994_v26, %v2563_v59  ;;  %v5402_v26 = vld [vmem:[%s7305_s7 + $0x18] sm:$0xff] }
 0x610   : > { %v7043_v34 = vpack.c.bf16 %v2572_v18, %v2571_v62 }
 0x612   : > { %2592 = vmatpush.bf16.msrb.mxu3 %v7043_v34  ;;  %2774 = vmatpush.bf16.msra.mxu1 %v7043_v34 }
 0x616   : > { %2593 = vmatpush.bf16.msrb.mxu3 %v7035_v10  ;;  %2775 = vmatpush.bf16.msra.mxu1 %v7035_v10 }
 0x61a   : > { %2594 = vmatpush.bf16.msrb.mxu3 %v7019_v25  ;;  %2776 = vmatpush.bf16.msra.mxu1 %v7019_v25 }
 0x61e   : > { %2595 = vmatpush.bf16.msrb.mxu3 %v7003_v46  ;;  %2777 = vmatpush.bf16.msra.mxu1 %v7003_v46 }
 0x621   : > { %4787 = vmatmul.msk.bf16.vlgmr.msrb.gmra.mxu3 %vm2584_vm12, %v5397_v48  ;;  %4837 = vmatmul.msk.bf16.vlgmr.msra.gmra.mxu1 %vm2584_vm12, %v5406_v28  ;;  %v5431_v28 = vld [vmem:[%s7308_s10 + $0x38] sm:$0xff] }
 0x622   : > { %2622 = vmatpush.bf16.msra.mxu3 %v7043_v34  ;;  %2898 = vmatpush.bf16.msrb.mxu1 %v7043_v34 }
 0x626   : > { %2623 = vmatpush.bf16.msra.mxu3 %v7035_v10  ;;  %2899 = vmatpush.bf16.msrb.mxu1 %v7035_v10 }
 0x62a   : > { %2624 = vmatpush.bf16.msra.mxu3 %v7019_v25  ;;  %2900 = vmatpush.bf16.msrb.mxu1 %v7019_v25 }
 0x62e   : > { %2625 = vmatpush.bf16.msra.mxu3 %v7003_v46  ;;  %2901 = vmatpush.bf16.msrb.mxu1 %v7003_v46 }
 0x631   : > { %4792 = vmatmul.msk.bf16.vlgmr.msra.gmra.mxu3 %vm2584_vm12, %v5400_v14  ;;  %4873 = vmatmul.msk.bf16.vlgmr.msrb.gmra.mxu1 %vm2584_vm12, %v5412_v38 }
 0x632   : > { %2660 = vmatpush.bf16.msrb.mxu3 %v5402_v26  ;;  %3022 = vmatpush.bf16.msra.mxu1 %v7043_v34  ;;  %v5430_v26 = vld [vmem:[%s7308_s10 + $0x30] sm:$0xff] }
 0x636   : > { %2661 = vmatpush.bf16.msrb.mxu3 %v5401_v57  ;;  %3023 = vmatpush.bf16.msra.mxu1 %v7035_v10 }
 0x63a   : > { %2712 = vmatpush.bf16.msra.mxu3 %v7043_v34  ;;  %3024 = vmatpush.bf16.msra.mxu1 %v7019_v25 }
 0x63e   : > { %2713 = vmatpush.bf16.msra.mxu3 %v7035_v10  ;;  %3025 = vmatpush.bf16.msra.mxu1 %v7003_v46 }
 0x641   : > { %4909 = vmatmul.msk.bf16.vlgmr.msra.gmra.mxu1 %vm2584_vm12, %v5418_v2 }
 0x642   : > { %2714 = vmatpush.bf16.msra.mxu3 %v7019_v25 }
 0x646   : > { %2715 = vmatpush.bf16.msra.mxu3 %v7003_v46 }
 0x69e   : > { %v2779_v3 = vpop.f32.mrf.mxu1 }
 0x6a4   : > { %v2597_v27 = vpop.f32.mrf.mxu3 }
 0x6ac   : > { %v2599_v12 = vpop.f32.mrf.mxu3 }
 0x6ad   : > { %v2602_v11 = vpack.c.bf16 %v2599_v12, %v2597_v27 }
 0x6af   : > { %4814 = vmatmul.msk.bf16.vlgmr.msrb.gmra.mxu0 %vm2650_vm13, %v2602_v11  ;;  %v5428_v11 = vld [vmem:[%s7308_s10 + $0x20] sm:$0xff] }
 0x6b0   : > { %2873 = vmatpush.bf16.msrb.mxu0 %v5411_v47 }
 0x6b4   : > { %v2627_v35 = vpop.f32.mrf.mxu3  ;;  %2874 = vmatpush.bf16.msrb.mxu0 %v5410_v15 }
 0x6bc   : > { %v2629_v4 = vpop.f32.mrf.mxu3 }
 0x6bd   : > { %v2632_v45 = vpack.c.bf16 %v2629_v4, %v2627_v35 }
 0x6bf   : > { %4805 = vmatmul.msk.bf16.vlgmr.msrb.gmra.mxu3 %vm2650_vm13, %v2632_v45 }
 0x6c0   : > { %2836 = vmatpush.bf16.msrb.mxu3 %v7043_v34 }
 0x6c4   : > { %2837 = vmatpush.bf16.msrb.mxu3 %v7035_v10 }
 0x6c8   : > { %2838 = vmatpush.bf16.msrb.mxu3 %v7019_v25 }
 0x6cc   : > { %2839 = vmatpush.bf16.msrb.mxu3 %v7003_v46 }
 0x6cf   : > { %4819 = vmatmul.msk.bf16.vlgmr.msra.gmra.mxu3 %vm2584_vm12, %v5403_v61 }
 0x6d0   : > { %2960 = vmatpush.bf16.msra.mxu3 %v7043_v34 }
 0x6d4   : > { %2961 = vmatpush.bf16.msra.mxu3 %v7035_v10 }
 0x6d8   : > { %2962 = vmatpush.bf16.msra.mxu3 %v7019_v25 }
 0x6dc   : > { %2963 = vmatpush.bf16.msra.mxu3 %v7003_v46 }
 0x6df   : > { %4855 = vmatmul.msk.bf16.vlgmr.msrb.gmra.mxu3 %vm2584_vm12, %v5409_v19 }
 0x6e0   : > { %3084 = vmatpush.bf16.msrb.mxu3 %v7043_v34 }
 0x6e4   : > { %3085 = vmatpush.bf16.msrb.mxu3 %v7035_v10  ;;  %v5422_v10 = vld [vmem:[%s7305_s7 + $0x80] sm:$0xff] }
 0x6e8   : > { %3086 = vmatpush.bf16.msrb.mxu3 %v7019_v25 }
 0x6ec   : > { %3087 = vmatpush.bf16.msrb.mxu3 %v7003_v46  ;;  %v2781_v46 = vpop.f32.mrf.mxu1 }
 0x6ed   : > { %v2784_v25 = vpack.c.bf16 %v2781_v46, %v2779_v3 }
 0x6ef   : > { %4891 = vmatmul.msk.bf16.vlgmr.msra.gmra.mxu3 %vm2584_vm12, %v5415_v23  ;;  %4850 = vmatmul.msk.bf16.vlgmr.msra.gmra.mxu2 %vm2650_vm13, %v2784_v25 }
 0x6f0   : > { %3059 = vmatpush.bf16.msra.mxu2 %v5420_v21  ;;  %3233 = vmatpush.bf16.msra.mxu3 %v5431_v28  ;;  %v3352_v28 = vld [vmem:[#allocation9 + $0x6] sm:$0x3] }
 0x6f4   : > { %v2903_v53 = vpop.f32.mrf.mxu1  ;;  %3060 = vmatpush.bf16.msra.mxu2 %v5419_v63  ;;  %3234 = vmatpush.bf16.msra.mxu3 %v5430_v26 }
 0x6f8   : > { %3235 = vmatpush.bf16.msra.mxu3 %v5429_v49  ;;  %v5442_v49 = vld [vmem:[%s7308_s10 + $0x90] sm:$0xff] }
 0x6fc   : > { %v2905_v39 = vpop.f32.mrf.mxu1  ;;  %3236 = vmatpush.bf16.msra.mxu3 %v5428_v11  ;;  %v5440_v11 = vld [vmem:[%s7308_s10 + $0x80] sm:$0xff] }
 0x6fd   : > { %v2908_v60 = vpack.c.bf16 %v2905_v39, %v2903_v53 }
 0x6ff   : > { %4927 = vmatmul.msk.bf16.vlgmr.msrb.gmra.mxu3 %vm2584_vm12, %v5421_v56  ;;  %4886 = vmatmul.msk.bf16.vlgmr.msrb.gmra.mxu2 %vm2650_vm13, %v2908_v60  ;;  %v3131_v56 = vld [vmem:[#allocation7] sm:$0x7] }
 0x700   : > { %v3132_v6 = vperm.slane %v3131_v56, 0  ;;  %v3141_v60 = vperm.slane %v3131_v56, 1  ;;  %v3144_v63 = vperm.slane %v3131_v56, 2  ;;  %v5449_v56 = vld [vmem:[%s7308_s10 + $0xc8] sm:$0xff] }
 0x704   : > { %v3027_v22 = vpop.f32.mrf.mxu1 }
 0x70c   : > { %v3029_v52 = vpop.f32.mrf.mxu1 }
 0x70d   : > { %v3032_v24 = vpack.c.bf16 %v3029_v52, %v3027_v22 }
 0x70f   : > { %4922 = vmatmul.msk.bf16.vlgmr.msra.gmra.mxu2 %vm2650_vm13, %v3032_v24 }
 0x72c   : > { %v2692_v44 = vpop.f32.mrf.mxu0 }
 0x734   : > { %v2694_v40 = vpop.f32.mrf.mxu0 }
 0x742   : > { %v2663_v9 = vpop.f32.mrf.mxu3 }
 0x743   : > { %v2693_v57 = vadd.f32 %v2692_v44, %v2663_v9 }
 0x74a   : > { %v2665_v29 = vpop.f32.mrf.mxu3 }
 0x74b   : > { %v2695_v35 = vadd.f32 %v2694_v40, %v2665_v29  ;;  %v3559_v40 = vld [vmem:[#allocation9 + $0xc] sm:$0x3] }
 0x752   : > { %v2717_v58 = vpop.f32.mrf.mxu3 }
 0x75a   : > { %v2719_v50 = vpop.f32.mrf.mxu3 }
 0x75b   : > { %v2722_v42 = vpack.c.bf16 %v2719_v50, %v2717_v58 }
 0x75d   : > { %4832 = vmatmul.msk.bf16.vlgmr.msra.gmra.mxu0 %vm2650_vm13, %v2722_v42  ;;  %v3148_v42 = vld [vmem:[#allocation9] sm:$0x3] }
 0x75e   : > { %2997 = vmatpush.bf16.msra.mxu0 %v5417_v7 }
 0x762   : > { %v2841_v8 = vpop.f32.mrf.mxu3  ;;  %2998 = vmatpush.bf16.msra.mxu0 %v5416_v1  ;;  %v3175_v1 = vld [vmem:[#allocation9 + $0x2] sm:$0x3] }
 0x76a   : > { %v2843_v30 = vpop.f32.mrf.mxu3 }
 0x76b   : > { %v2846_v54 = vpack.c.bf16 %v2843_v30, %v2841_v8  ;;  %v3283_v8 = vld [vmem:[#allocation9 + $0x4] sm:$0x3]  ;;  %v3421_v30 = vld [vmem:[#allocation9 + $0x8] sm:$0x3] }
 0x76d   : > { %4868 = vmatmul.msk.bf16.vlgmr.msrb.gmra.mxu0 %vm2650_vm13, %v2846_v54  ;;  %v5435_v54 = vld [vmem:[%s7308_s10 + $0x58] sm:$0xff] }
 0x76e   : > { %3121 = vmatpush.bf16.msrb.mxu0 %v5423_v37  ;;  %v5427_v37 = vld [vmem:[%s7308_s10 + $0x18] sm:$0xff] }
 0x772   : > { %v2965_v16 = vpop.f32.mrf.mxu3  ;;  %3122 = vmatpush.bf16.msrb.mxu0 %v5422_v10  ;;  %v2814_v43 = vpop.f32.mrf.mxu2  ;;  %v5426_v10 = vld [vmem:[%s7308_s10 + $0x10] sm:$0xff] }
 0x77a   : > { %v2967_v33 = vpop.f32.mrf.mxu3  ;;  %v2816_v62 = vpop.f32.mrf.mxu2 }
 0x77b   : > { %v2970_v31 = vpack.c.bf16 %v2967_v33, %v2965_v16  ;;  %v5434_v16 = vld [vmem:[%s7308_s10 + $0x50] sm:$0xff]  ;;  %v5425_v33 = vld [vmem:[%s7308_s10 + $0x8] sm:$0xff] }
 0x77d   : > { %4904 = vmatmul.msk.bf16.vlgmr.msra.gmra.mxu0 %vm2650_vm13, %v2970_v31  ;;  %v5433_v31 = vld [vmem:[%s7308_s10 + $0x48] sm:$0xff] }
 0x77e   : > { %3273 = vmatpush.bf16.msra.mxu0 %v5427_v37  ;;  %v5453_v37 = vld [vmem:[%s7308_s10 + $0xe8] sm:$0xff] }
 0x782   : > { %v3089_v32 = vpop.f32.mrf.mxu3  ;;  %v2938_v34 = vpop.f32.mrf.mxu2  ;;  %3274 = vmatpush.bf16.msra.mxu0 %v5426_v10 }
 0x786   : > { %3275 = vmatpush.bf16.msra.mxu0 %v5425_v33 }
 0x78a   : > { %v3091_v41 = vpop.f32.mrf.mxu3  ;;  %v2940_v27 = vpop.f32.mrf.mxu2 }
 0x78b   : > { %v3094_v36 = vpack.c.bf16 %v3091_v41, %v3089_v32  ;;  %v5424_v32 = vld [vmem:[%s7308_s10] sm:$0xff] }
 0x78c   : > { %3276 = vmatpush.bf16.msra.mxu0 %v5424_v32  ;;  %v5432_v41 = vld [vmem:[%s7308_s10 + $0x40] sm:$0xff] }
 0x78d   : > { %4940 = vmatmul.msk.bf16.vlgmr.msrb.gmra.mxu0 %vm2650_vm13, %v3094_v36 }
 0x792   : > { %v3062_v23 = vpop.f32.mrf.mxu2 }
 0x79a   : > { %v3064_v0 = vpop.f32.mrf.mxu2 }
 0x7da   : > { %v2752_v51 = vpop.f32.mrf.mxu0 }
 0x7db   : > { %v2757_v14 = vadd.f32 %v2752_v51, %v2693_v57  ;;  %v3490_v57 = vld [vmem:[#allocation9 + $0xa] sm:$0x3] }
 0x7dd   : > { %v2819_v12 = vadd.f32 %v2814_v43, %v2757_v14  ;;  %v3628_v14 = vld [vmem:[#allocation9 + $0xe] sm:$0x3] }
 0x7e2   : > { %v2754_v59 = vpop.f32.mrf.mxu0 }
 0x7e3   : > { %v2758_v38 = vadd.f32 %v2754_v59, %v2695_v35 }
 0x7e5   : > { %v2820_v2 = vadd.f32 %v2816_v62, %v2758_v38  ;;  %v5438_v38 = vld [vmem:[%s7308_s10 + $0x70] sm:$0xff] }
 0x7ea   : > { %v2876_v18 = vpop.f32.mrf.mxu0 }
 0x7eb   : > { %v2881_v4 = vadd.f32 %v2876_v18, %v2819_v12  ;;  %v5439_v12 = vld [vmem:[%s7308_s10 + $0x78] sm:$0xff] }
 0x7ec   : > { %3410 = vmatpush.bf16.msrb.mxu0 %v5439_v12 }
 0x7ed   : > { %v2943_v61 = vadd.f32 %v2938_v34, %v2881_v4 }
 0x7f0   : > { %3411 = vmatpush.bf16.msrb.mxu0 %v5438_v38  ;;  %v5480_v38 = vld [vmem:[#allocation10 + $0xa0] sm:$0xff] }
 0x7f2   : > { %v2878_v48 = vpop.f32.mrf.mxu0 }
 0x7f3   : > { %v2882_v3 = vadd.f32 %v2878_v48, %v2820_v2  ;;  %v3697_v48 = vld [vmem:[#allocation9 + $0x10] sm:$0x3]  ;;  %v5450_v2 = vld [vmem:[%s7308_s10 + $0xd0] sm:$0xff] }
 0x7f5   : > { %v2944_v46 = vadd.f32 %v2940_v27, %v2882_v3  ;;  %v5441_v27 = vld [vmem:[%s7308_s10 + $0x88] sm:$0xff]  ;;  %v5447_v3 = vld [vmem:[%s7308_s10 + $0xb8] sm:$0xff] }
 0x7fa   : > { %v3000_v5 = vpop.f32.mrf.mxu0 }
 0x7fb   : > { %v3005_v19 = vadd.f32 %v3000_v5, %v2943_v61  ;;  %v5443_v5 = vld [vmem:[%s7308_s10 + $0x98] sm:$0xff]  ;;  %v5437_v61 = vld [vmem:[%s7308_s10 + $0x68] sm:$0xff] }
 0x7fc   : > { %3412 = vmatpush.bf16.msrb.mxu0 %v5437_v61  ;;  %v5462_v61 = vld [vmem:[#allocation10 + $0x10] sm:$0xff] }
 0x7fd   : > { %v3067_v55 = vadd.f32 %v3062_v23, %v3005_v19  ;;  %v5436_v23 = vld [vmem:[%s7308_s10 + $0x60] sm:$0xff] }
 0x800   : > { %3413 = vmatpush.bf16.msrb.mxu0 %v5436_v23  ;;  %v5479_v23 = vld [vmem:[#allocation10 + $0x98] sm:$0xff] }
 0x802   : > { %v3002_v45 = vpop.f32.mrf.mxu0 }
 0x803   : > { %v3006_v17 = vadd.f32 %v3002_v45, %v2944_v46  ;;  %v5451_v45 = vld [vmem:[%s7308_s10 + $0xd8] sm:$0xff] }
 0x805   : > { %v3068_v20 = vadd.f32 %v3064_v0, %v3006_v17  ;;  %v5459_v17 = vld [vmem:[%s7308_s10 + $0x118] sm:$0xff]  ;;  %v5458_v0 = vld [vmem:[%s7308_s10 + $0x110] sm:$0xff] }
 0x80a   : > { %v3124_v13 = vpop.f32.mrf.mxu0 }
 0x80b   : > { %v3129_v25 = vadd.f32 %v3124_v13, %v3067_v55  ;;  %v5448_v55 = vld [vmem:[%s7308_s10 + $0xc0] sm:$0xff] }
 0x80d   : > { %v3133_v53 = vadd.f32 %v3132_v6, %v3129_v25  ;;  %v5446_v25 = vld [vmem:[%s7308_s10 + $0xb0] sm:$0xff] }
 0x80f   : > { %v3137_v9 = vmul.f32 0.2, %v3133_v53  ;;  %vm3135_vm14 = vcmp.ge.f32.partialorder %v3133_v53, 0.0 }
 0x811   : > { %v3139_v15 = vsel %vm3135_vm14, %v3133_v53, %v3137_v9  ;;  %v5445_v53 = vld [vmem:[%s7308_s10 + $0xa8] sm:$0xff] }
 0x812   : > { %v3126_v47 = vpop.f32.mrf.mxu0  ;;  %v3142_v21 = vmul.f32 %v3141_v60, %v3139_v15 }
 0x813   : > { %v3130_v39 = vadd.f32 %v3126_v47, %v3068_v20  ;;  %v5444_v47 = vld [vmem:[%s7308_s10 + $0xa0] sm:$0xff] }
 0x814   : > { %v3145_v24 = vadd.f32 %v3144_v63, %v3142_v21 }
 0x815   : > { %v3134_v29 = vadd.f32 %v3132_v6, %v3130_v39  ;;  %v5457_v39 = vld [vmem:[%s7308_s10 + $0x108] sm:$0xff] }
 0x817   : > { %vm3136_vm15 = vcmp.ge.f32.partialorder %v3134_v29, 0.0  ;;  %v3138_v22 = vmul.f32 0.2, %v3134_v29 }
 0x819   : > { %v3140_v58 = vsel %vm3136_vm15, %v3134_v29, %v3138_v22  ;;  %v5456_v29 = vld [vmem:[%s7308_s10 + $0x100] sm:$0xff] }
 0x81a   : > { %v3143_v52 = vmul.f32 %v3141_v60, %v3140_v58 }
 0x81c   : > { %v3146_v50 = vadd.f32 %v3144_v63, %v3143_v52 }
 0x81e   : > { %v3147_v7 = vpack.c.bf16 %v3146_v50, %v3145_v24 }
 0x820   : > { %3159 = vmatpush.bf16.msrb.mxu1 %v3147_v7  ;;  %3186 = vmatpush.bf16.msrb.mxu2 %v3147_v7 }
 0x821   : > { %3363 = vmatpush.bf16.msrb.mxu3 %v3147_v7 }
 0x823   : > { %4941 = vmatmul.msk.bf16.vlgmr.msrb.gmra.mxu1 %vm1249_vm3, %v3148_v42  ;;  %4942 = vmatmul.msk.bf16.vlgmr.msrb.gmra.mxu2 %vm1249_vm3, %v3175_v1 }
 0x824   : > { %3294 = vmatpush.bf16.msra.mxu1 %v3147_v7  ;;  %3341 = vmatpush.bf16.msra.mxu2 %v5435_v54  ;;  %v5452_v54 = vld [vmem:[%s7308_s10 + $0xe0] sm:$0xff] }
 0x828   : > { %3432 = vmatpush.bf16.msrb.mxu1 %v3147_v7  ;;  %3342 = vmatpush.bf16.msra.mxu2 %v5434_v16 }
 0x82c   : > { %3343 = vmatpush.bf16.msra.mxu2 %v5433_v31 }
 0x830   : > { %3344 = vmatpush.bf16.msra.mxu2 %v5432_v41 }
 0x833   : > { %4985 = vmatmul.msk.bf16.vlgmr.msra.gmra.mxu1 %vm1249_vm3, %v3283_v8  ;;  %v5454_v8 = vld [vmem:[%s7308_s10 + $0xf0] sm:$0xff] }
 0x834   : > { %3570 = vmatpush.bf16.msra.mxu1 %v3147_v7  ;;  %3479 = vmatpush.bf16.msrb.mxu2 %v5443_v5  ;;  %v5473_v5 = vld [vmem:[#allocation10 + $0x68] sm:$0xff] }
 0x838   : > { %3480 = vmatpush.bf16.msrb.mxu2 %v5442_v49  ;;  %v5481_v49 = vld [vmem:[#allocation10 + $0xa8] sm:$0xff] }
 0x83c   : > { %3481 = vmatpush.bf16.msrb.mxu2 %v5441_v27 }
 0x840   : > { %3482 = vmatpush.bf16.msrb.mxu2 %v5440_v11  ;;  %v5463_v11 = vld [vmem:[#allocation10 + $0x18] sm:$0xff] }
 0x843   : > { %5037 = vmatmul.msk.bf16.vlgmr.msrb.gmra.mxu1 %vm1249_vm3, %v3421_v30 }
 0x844   : > { %3708 = vmatpush.bf16.msrb.mxu1 %v3147_v7 }
 0x853   : > { %5089 = vmatmul.msk.bf16.vlgmr.msra.gmra.mxu1 %vm1249_vm3, %v3559_v40 }
 0x863   : > { %5141 = vmatmul.msk.bf16.vlgmr.msrb.gmra.mxu1 %vm1249_vm3, %v3697_v48  ;;  %v5491_v48 = vld [vmem:[#allocation10 + $0xf8] sm:$0xff] }
 0x8a0   : > { %v3161_v36 = vpop.f32.mrf.mxu1 }
 0x8a1   : > { %v3165_v44 = vpack.c.bf16 %v3161_v36, %v3161_v36 }
 0x8a3   : > { %4984 = vmatmul.msk.bf16.vlgmr.msra.gmra.mxu0 %vm2584_vm12, %v3165_v44 }
 0x8a4   : > { %3548 = vmatpush.bf16.msra.mxu0 %v5447_v3  ;;  %v5461_v3 = vld [vmem:[#allocation10 + $0x8] sm:$0xff] }
 0x8a6   : > { %v3188_v51 = vpop.f32.mrf.mxu2 }
 0x8a7   : > { %v3192_v43 = vpack.c.bf16 %v3188_v51, %v3188_v51  ;;  %v5467_v51 = vld [vmem:[#allocation10 + $0x38] sm:$0xff] }
 0x8a8   : > { %v3163_v59 = vpop.f32.mrf.mxu1  ;;  %3549 = vmatpush.bf16.msra.mxu0 %v5446_v25  ;;  %v5486_v25 = vld [vmem:[#allocation10 + $0xd0] sm:$0xff] }
 0x8a9   : > { %4967 = vmatmul.msk.bf16.vlgmr.msra.gmra.mxu3 %vm2584_vm12, %v3192_v43  ;;  %v5466_v43 = vld [vmem:[#allocation10 + $0x30] sm:$0xff]  ;;  %v5475_v59 = vld [vmem:[#allocation10 + $0x78] sm:$0xff] }
 0x8aa   : > { %3501 = vmatpush.bf16.msra.mxu3 %v3147_v7 }
 0x8ac   : > { %3550 = vmatpush.bf16.msra.mxu0 %v5445_v53  ;;  %v5477_v53 = vld [vmem:[#allocation10 + $0x88] sm:$0xff] }
 0x8ae   : > { %v3190_v62 = vpop.f32.mrf.mxu2 }
 0x8af   : > { %v5483_v62 = vld [vmem:[#allocation10 + $0xb8] sm:$0xff] }
 0x8b0   : > { %v3296_v18 = vpop.f32.mrf.mxu1  ;;  %3551 = vmatpush.bf16.msra.mxu0 %v5444_v47  ;;  %4005 = vmatpush.bf16.msra.mxu1 %v5483_v62  ;;  %v5476_v47 = vld [vmem:[#allocation10 + $0x80] sm:$0xff] }
 0x8b1   : > { %v3300_v34 = vpack.c.bf16 %v3296_v18, %v3296_v18 }
 0x8b3   : > { %5010 = vmatmul.msk.bf16.vlgmr.msra.gmra.mxu2 %vm2584_vm12, %v3300_v34  ;;  %v5465_v34 = vld [vmem:[#allocation10 + $0x28] sm:$0xff] }
 0x8b4   : > { %3617 = vmatpush.bf16.msra.mxu2 %v5451_v45 }
 0x8b8   : > { %v3298_v26 = vpop.f32.mrf.mxu1  ;;  %3618 = vmatpush.bf16.msra.mxu2 %v5450_v2  ;;  %v5488_v2 = vld [vmem:[#allocation10 + $0xe0] sm:$0xff] }
 0x8b9   : > { %5011 = vmatmul.msk.bf16.vlgmr.msrb.gmra.mxu3 %vm1249_vm3, %v3352_v28  ;;  %v5474_v28 = vld [vmem:[#allocation10 + $0x70] sm:$0xff] }
 0x8ba   : > { %3639 = vmatpush.bf16.msrb.mxu3 %v3147_v7  ;;  %v5455_v7 = vld [vmem:[%s7308_s10 + $0xf8] sm:$0xff] }
 0x8bb   : > { %v5482_v26 = vld [vmem:[#allocation10 + $0xb0] sm:$0xff] }
 0x8bc   : > { %3619 = vmatpush.bf16.msra.mxu2 %v5449_v56  ;;  %4006 = vmatpush.bf16.msra.mxu1 %v5482_v26 }
 0x8c0   : > { %v3434_v35 = vpop.f32.mrf.mxu1  ;;  %3620 = vmatpush.bf16.msra.mxu2 %v5448_v55  ;;  %4007 = vmatpush.bf16.msra.mxu1 %v5481_v49  ;;  %v5487_v55 = vld [vmem:[#allocation10 + $0xd8] sm:$0xff] }
 0x8c1   : > { %v3438_v4 = vpack.c.bf16 %v3434_v35, %v3434_v35  ;;  %v5489_v35 = vld [vmem:[#allocation10 + $0xe8] sm:$0xff] }
 0x8c3   : > { %5062 = vmatmul.msk.bf16.vlgmr.msrb.gmra.mxu2 %vm2584_vm12, %v3438_v4  ;;  %v5472_v4 = vld [vmem:[#allocation10 + $0x60] sm:$0xff] }
 0x8c4   : > { %3755 = vmatpush.bf16.msrb.mxu2 %v5459_v17  ;;  %4008 = vmatpush.bf16.msra.mxu1 %v5480_v38  ;;  %v5469_v17 = vld [vmem:[#allocation10 + $0x48] sm:$0xff] }
 0x8c8   : > { %v3436_v19 = vpop.f32.mrf.mxu1  ;;  %3756 = vmatpush.bf16.msrb.mxu2 %v5458_v0  ;;  %4009 = vmatpush.bf16.msra.mxu1 %v5479_v23 }
 0x8c9   : > { %5063 = vmatmul.msk.bf16.vlgmr.msra.gmra.mxu3 %vm1249_vm3, %v3490_v57  ;;  %v5464_v57 = vld [vmem:[#allocation10 + $0x20] sm:$0xff]  ;;  %v5471_v19 = vld [vmem:[#allocation10 + $0x58] sm:$0xff] }
 0x8ca   : > { %3864 = vmatpush.bf16.msra.mxu3 %v5475_v59 }
 0x8cc   : > { %3757 = vmatpush.bf16.msrb.mxu2 %v5457_v39  ;;  %v5484_v39 = vld [vmem:[#allocation10 + $0xc0] sm:$0xff] }
 0x8ce   : > { %3865 = vmatpush.bf16.msra.mxu3 %v5474_v28 }
 0x8d0   : > { %v3572_v13 = vpop.f32.mrf.mxu1  ;;  %3758 = vmatpush.bf16.msrb.mxu2 %v5456_v29 }
 0x8d1   : > { %v3576_v46 = vpack.c.bf16 %v3572_v13, %v3572_v13  ;;  %v5478_v13 = vld [vmem:[#allocation10 + $0x90] sm:$0xff] }
 0x8d2   : > { %3866 = vmatpush.bf16.msra.mxu3 %v5473_v5  ;;  %4010 = vmatpush.bf16.msra.mxu1 %v5478_v13 }
 0x8d3   : > { %5114 = vmatmul.msk.bf16.vlgmr.msra.gmra.mxu2 %vm2584_vm12, %v3576_v46  ;;  %v5460_v46 = vld [vmem:[#allocation10] sm:$0xff] }
 0x8d4   : > { %4086 = vmatpush.bf16.msra.mxu2 %v5491_v48  ;;  %v4100_v48 = vld [vmem:[#allocation12] sm:$0x1] }
 0x8d6   : > { %3867 = vmatpush.bf16.msra.mxu3 %v5472_v4  ;;  %4011 = vmatpush.bf16.msra.mxu1 %v5477_v53 }
 0x8d8   : > { %v3574_v9 = vpop.f32.mrf.mxu1 }
 0x8d9   : > { %5115 = vmatmul.msk.bf16.vlgmr.msrb.gmra.mxu3 %vm1249_vm3, %v3628_v14  ;;  %v5490_v14 = vld [vmem:[#allocation10 + $0xf0] sm:$0xff]  ;;  %v5468_v9 = vld [vmem:[#allocation10 + $0x40] sm:$0xff] }
 0x8da   : > { %4087 = vmatpush.bf16.msra.mxu2 %v5490_v14  ;;  %3868 = vmatpush.bf16.msra.mxu3 %v5471_v19 }
 0x8db   : > { %4012 = vmatpush.bf16.msra.mxu1 %v5476_v47 }
 0x8de   : > { %4088 = vmatpush.bf16.msra.mxu2 %v5489_v35 }
 0x8e0   : > { %v3710_v22 = vpop.f32.mrf.mxu1 }
 0x8e1   : > { %v3714_v21 = vpack.c.bf16 %v3710_v22, %v3710_v22 }
 0x8e2   : > { %4089 = vmatpush.bf16.msra.mxu2 %v5488_v2 }
 0x8e3   : > { %5166 = vmatmul.msk.bf16.vlgmr.msrb.gmra.mxu2 %vm2584_vm12, %v3714_v21  ;;  %v3765_v21 = vld [vmem:[%s7309_s11] sm:$0x7] }
 0x8e6   : > { %4090 = vmatpush.bf16.msra.mxu2 %v5487_v55 }
 0x8e8   : > { %v3712_v24 = vpop.f32.mrf.mxu1 }
 0x8ea   : > { %4091 = vmatpush.bf16.msra.mxu2 %v5486_v25 }
 0x920   : > { %v3278_v6 = vpop.f32.mrf.mxu0 }
 0x928   : > { %v3280_v20 = vpop.f32.mrf.mxu0 }
 0x929   : > { %v5485_v20 = vld [vmem:[#allocation10 + $0xc8] sm:$0xff] }
 0x92a   : > { %4092 = vmatpush.bf16.msra.mxu2 %v5485_v20 }
 0x92c   : > { %v3238_v60 = vpop.f32.mrf.mxu3 }
 0x92d   : > { %v3279_v15 = vadd.f32 %v3278_v6, %v3238_v60  ;;  %v5470_v6 = vld [vmem:[#allocation10 + $0x50] sm:$0xff] }
 0x92e   : > { %3869 = vmatpush.bf16.msra.mxu3 %v5470_v6  ;;  %4093 = vmatpush.bf16.msra.mxu2 %v5484_v39 }
 0x932   : > { %3870 = vmatpush.bf16.msra.mxu3 %v5469_v17 }
 0x934   : > { %v3240_v63 = vpop.f32.mrf.mxu3 }
 0x936   : > { %v3346_v58 = vpop.f32.mrf.mxu2  ;;  %3871 = vmatpush.bf16.msra.mxu3 %v5468_v9 }
 0x937   : > { %v7264_v52 = vadd.f32 %v3346_v58, %v3279_v15 }
 0x93c   : > { %v3365_v50 = vpop.f32.mrf.mxu3 }
 0x93d   : > { %v3369_v42 = vpack.c.bf16 %v3365_v50, %v3365_v50  ;;  %v3766_v50 = vperm.slane %v3765_v21, 0 }
 0x93e   : > { %v3348_v1 = vpop.f32.mrf.mxu2 }
 0x93f   : > { %5036 = vmatmul.msk.bf16.vlgmr.msrb.gmra.mxu0 %vm2584_vm12, %v3369_v42  ;;  %v3771_v1 = vperm.slane %v3765_v21, 1 }
 0x940   : > { %3686 = vmatpush.bf16.msrb.mxu0 %v5455_v7 }
 0x944   : > { %v3367_v30 = vpop.f32.mrf.mxu3  ;;  %3687 = vmatpush.bf16.msrb.mxu0 %v5454_v8 }
 0x946   : > { %v7281_v36 = vpop.f32.mrf.mxu2 }
 0x948   : > { %3688 = vmatpush.bf16.msrb.mxu0 %v5453_v37 }
 0x94c   : > { %v3503_v10 = vpop.f32.mrf.mxu3  ;;  %3689 = vmatpush.bf16.msrb.mxu0 %v5452_v54 }
 0x94d   : > { %v3507_v16 = vpack.c.bf16 %v3503_v10, %v3503_v10 }
 0x94e   : > { %v3486_v44 = vpop.f32.mrf.mxu2 }
 0x94f   : > { %5088 = vmatmul.msk.bf16.vlgmr.msra.gmra.mxu0 %vm2584_vm12, %v3507_v16 }
 0x950   : > { %3925 = vmatpush.bf16.msra.mxu0 %v5467_v51 }
 0x954   : > { %v3505_v33 = vpop.f32.mrf.mxu3  ;;  %3926 = vmatpush.bf16.msra.mxu0 %v5466_v43 }
 0x956   : > { %v7283_v40 = vpop.f32.mrf.mxu2 }
 0x958   : > { %3927 = vmatpush.bf16.msra.mxu0 %v5465_v34 }
 0x95c   : > { %v3641_v31 = vpop.f32.mrf.mxu3  ;;  %3928 = vmatpush.bf16.msra.mxu0 %v5464_v57 }
 0x95d   : > { %v3645_v32 = vpack.c.bf16 %v3641_v31, %v3641_v31 }
 0x95e   : > { %v3624_v18 = vpop.f32.mrf.mxu2 }
 0x95f   : > { %5140 = vmatmul.msk.bf16.vlgmr.msrb.gmra.mxu0 %vm2584_vm12, %v3645_v32 }
 0x960   : > { %3929 = vmatpush.bf16.msra.mxu0 %v5463_v11 }
 0x964   : > { %v3643_v41 = vpop.f32.mrf.mxu3  ;;  %3930 = vmatpush.bf16.msra.mxu0 %v5462_v61 }
 0x966   : > { %v3760_v27 = vpop.f32.mrf.mxu2 }
 0x968   : > { %3931 = vmatpush.bf16.msra.mxu0 %v5461_v3 }
 0x96c   : > { %3932 = vmatpush.bf16.msra.mxu0 %v5460_v46 }
 0x96e   : > { %v3762_v45 = vpop.f32.mrf.mxu2 }
 0x9bc   : > { %v3415_v12 = vpop.f32.mrf.mxu0 }
 0x9bd   : > { %v3419_v60 = vadd.f32 %v3415_v12, %v7264_v52  ;;  %v3773_v52 = vperm.slane %v3765_v21, 2 }
 0x9bf   : > { %v3488_v29 = vadd.f32 %v7281_v36, %v3419_v60 }
 0x9c4   : > { %v3417_v56 = vpop.f32.mrf.mxu0 }
 0x9cc   : > { %v3553_v0 = vpop.f32.mrf.mxu0 }
 0x9cd   : > { %v3557_v22 = vadd.f32 %v3553_v0, %v3488_v29 }
 0x9cf   : > { %v3626_v63 = vadd.f32 %v7283_v40, %v3557_v22 }
 0x9d4   : > { %v3555_v15 = vpop.f32.mrf.mxu0 }
 0x9dc   : > { %v3691_v58 = vpop.f32.mrf.mxu0 }
 0x9dd   : > { %v3695_v24 = vadd.f32 %v3691_v58, %v3626_v63 }
 0x9df   : > { %v3764_v7 = vadd.f32 %v3760_v27, %v3695_v24 }
 0x9e1   : > { %v3767_v42 = vadd.f32 %v3766_v50, %v3764_v7 }
 0x9e3   : > { %vm3768_vm0 = vcmp.ge.f32.partialorder %v3767_v42, 0.0  ;;  %v3769_v8 = vmul.f32 0.2, %v3767_v42 }
 0x9e4   : > { %v3693_v30 = vpop.f32.mrf.mxu0 }
 0x9e5   : > { %v3770_v37 = vsel %vm3768_vm0, %v3767_v42, %v3769_v8 }
 0x9e6   : > { %v3772_v54 = vmul.f32 %v3771_v1, %v3770_v37 }
 0x9e8   : > { %v3774_v10 = vadd.f32 %v3773_v52, %v3772_v54 }
 0x9ea   : > { %v3775_v16 = vpack.c.bf16 %v3774_v10, %v3774_v10 }
 0x9ec   : > { %v3810_v33 = vunpack.c.l.b16 %v3775_v16  ;;  %3933 = vmatmul.bf16.vlgmr.msra.gmra.mxu0 %v3775_v16 }
 0x9ee   : > { %v3811_v31 = vpack.c.b16 %v3810_v33, %v3810_v33 }
 0x9f0   : > { %v3813_v32 = vshrl.u32 %v3811_v31, 16  ;;  %v3955_v41 = vrot.slane %v3811_v31, 1 }
 0x9f2   : > { %3872 = vmatmul.bf16.vlgmr.msra.gmra.mxu3 %v3813_v32  ;;  %4013 = vmatmul.bf16.vlgmr.msra.gmra.mxu1 %v3955_v41  ;;  %v4036_v36 = vrot.slane %v3813_v32, 1 }
 0x9f4   : > { %4094 = vmatmul.bf16.vlgmr.msra.gmra.mxu2 %v4036_v36 }
 0xa69   : > { %v3934_v44 = vpop.f32.mrf.mxu0 }
 0xa6f   : > { %v4014_v40 = vpop.f32.mrf.mxu1 }
 0xa71   : > { %v3936_v51 = vpop.f32.mrf.mxu0 }
 0xa75   : > { %v3873_v43 = vpop.f32.mrf.mxu3 }
 0xa76   : > { %v3935_v59 = vadd.f32 %v3934_v44, %v3873_v43 }
 0xa77   : > { %v4016_v62 = vpop.f32.mrf.mxu1  ;;  %v4095_v18 = vpop.f32.mrf.mxu2 }
 0xa78   : > { %v4018_v34 = vadd.f32 %v4014_v40, %v3935_v59 }
 0xa7a   : > { %v4099_v28 = vadd.f32 %v4095_v18, %v4018_v34 }
 0xa7c   : > { %v4101_v26 = vadd.f32 %v4100_v48, %v4099_v28 }
 0xa7d   : > { %v3875_v57 = vpop.f32.mrf.mxu3 }
 0xa7e   : > { %v5295_v14 = vmul.f32 -1.442695, %v4101_v26 }
 0xa7f   : > { %v4097_v5 = vpop.f32.mrf.mxu2 }
 0xa80   : > { %5576 = vpow2.f32 %v5295_v14 }
 0xa86   : > { %v5577_v49 = vpop.eup %5576 }
 0xa87   : > { %v4105_v27 = vadd.f32 1.0, %v5577_v49 }
 0xa89   : > { %5578 = vrcp.f32 %v4105_v27  ;;  %v4117_v4 = vand.u32 2147483648, %v4105_v27  ;;  %v4115_v45 = vand.u32 2147483647, %v4105_v27  ;;  %vm4111_vm2 = vweird.f32 %v4105_v27 }
 0xa8b   : > { %v4118_v2 = vor.u32 1.1754944e-38, %v4117_v4  ;;  %vm4116_vm4 = vcmp.eq.f32.partialorder %v4115_v45, 8.507059e+37 }
 0xa8f   : > { %v5579_v12 = vpop.eup %5578 }
 0xa90   : > { %v4107_v11 = vmul.f32 %v5579_v12, %v4105_v27  ;;  %vm4112_vm1 = vweird.f32 %v5579_v12 }
 0xa91   : > { %vm4113_vm3 = vmor %vm4111_vm2, %vm4112_vm1 }
 0xa92   : > { %v4108_v35 = vsub.f32 1.0, %v4107_v11 }
 0xa94   : > { %v4109_v38 = vmul.f32 %v5579_v12, %v4108_v35 }
 0xa96   : > { %v4110_v61 = vadd.f32 %v5579_v12, %v4109_v38 }
 0xa98   : > { %v4114_v19 = vsel %vm4113_vm3, %v5579_v12, %v4110_v61 }
 0xa99   : > { %v4119_v23 = vsel %vm4116_vm4, %v4118_v2, %v4114_v19 }
 0xa9a   : > { %4121 = vst [vmem:[%s571_s27] sm:$0x1] %v4119_v23 }
 0xa9b PF: > { %s28_s29 = sadd.s32 1, %s5812_s29  }
 0xa9c   : > { %p25_p7 = scmp.ge.s32.totalorder %s28_s29, 4  }
 0xa9e   :  { %27 = sbr.rel (!%p25_p7) target bundleno = 9 (0x9), region = 186 }
 0xaa3   :  { %4139 = vsyncpa [#allocation3], 1 }
 0xaa4   :  { %4141 = vsyncpa [#allocation3 + $0x1], 1 }
 0xaa5   :  { %4142 = vsyncpa [#allocation5], 1 }
 0xaa6   :  { %4143 = vsyncpa [#allocation8], 1 }
 0xaa7   :  { %4144 = vsyncpa [#allocation11], 1 }

</bundles_post_ra>
